<compile_context>
chip_gen: v7x
topology: tpu7x:2x2x1
jax: 0.10.0
libtpu: 0.0.40
codegen_flags: <defaults>
</compile_context>

<pallas_src>
import functools
import math

import jax
import jax.numpy as jnp
from jax.experimental import pallas as pl
from jax.experimental.pallas import tpu as pltpu


_EPS = 1e-5  # nn.LayerNorm default


def _default_vmem_limit():
    # v5e / v6e have 128 MiB VMEM -> use ~100 MiB; v7x has 64 MiB / TC -> keep
    # headroom at 48 MiB (also the safe default for unknown chips).
    try:
        kind = jax.devices()[0].device_kind.lower()
    except Exception:  # pragma: no cover
        kind = ""
    if "v5" in kind or "v6" in kind:
        return 100 * 1024 * 1024
    return 48 * 1024 * 1024


_VMEM_LIMIT = _default_vmem_limit()


# ---------------------------- fused decoder kernel ---------------------------


def _decoder_kernel(
    x_ref, enc_ref, cond_ref, emb_w_ref, emb_b_ref,
    cond_w_ref, cond_b_ref,
    sa_wq_ref, sa_wk_ref, sa_wv_ref, sa_bq_ref, sa_bk_ref, sa_bv_ref,
    sa_wo_ref, sa_bo_ref,
    ca_wq_ref, ca_bq_ref, ca_wk_ref, ca_wv_ref, ca_bk_ref, ca_bv_ref,
    ca_wo_ref, ca_bo_ref,
    ffn_w1_ref, ffn_b1_ref, ffn_w2_ref, ffn_b2_ref,
    out_ref,
    *, B, S, S_enc, n_heads, eps,
):
    D = out_ref.shape[-1]
    Dh = D // n_heads
    BS = B * S
    scale = 1.0 / math.sqrt(Dh)
    l = pl.program_id(0)

    # ---- grid step 0: fused embedding (whole forward is one pallas_call) ----
    @pl.when(l == 0)
    def _embed():
        out_ref[...] = (
            jnp.dot(x_ref[...].astype(jnp.bfloat16), emb_w_ref[...],
                    preferred_element_type=jnp.float32)
            + emb_b_ref[...]
        )

    # activation carried across layers in the VMEM-resident output block
    h = out_ref[...]                                        # (B*S, D) f32

    # ---- per-layer condition vectors: ONE tiny GEMM, 9 slices --------------
    cv = (
        jnp.dot(cond_ref[...].astype(jnp.bfloat16), cond_w_ref[0],
                preferred_element_type=jnp.float32)
        + cond_b_ref[0]
    )                                                       # (B, 9*D)
    g0, b0, r0, g1, b1, rc, g2, b2, r1 = (
        cv[:, i * D:(i + 1) * D].reshape(B, 1, D) for i in range(9)
    )

    def cond_ln(x_flat, gamma, beta):
        xb = x_flat.reshape(B, S, D)
        mean = jnp.mean(xb, axis=-1, keepdims=True)
        var = jnp.mean(jnp.square(xb - mean), axis=-1, keepdims=True)
        xn = (xb - mean) * jax.lax.rsqrt(var + eps)
        return (xn * gamma + beta).reshape(BS, D)

    def rescale_residual(x_ln_flat, y_flat, r):
        out = x_ln_flat.reshape(B, S, D) + r * y_flat.reshape(B, S, D)
        return out.reshape(BS, D)

    def mha(x_ln_flat, kv_flat, s_kv, wq, bq, wk, bk, wv, bv, wo, bo):
        """Multi-head attention.  Per-head projection weights (no lane slicing
        of a wide QKV result, no concatenate); flash-style batched einsums over
        the batch axis; heads accumulated through the per-head out-proj."""
        xq = x_ln_flat.astype(jnp.bfloat16)                 # (B*S, D)
        xkv = kv_flat.astype(jnp.bfloat16)                  # (B*s_kv, D_kv)
        acc = jnp.zeros((BS, D), jnp.float32)
        for hh in range(n_heads):
            q = jnp.dot(xq, wq[hh], preferred_element_type=jnp.float32) + bq[hh]
            k = jnp.dot(xkv, wk[hh], preferred_element_type=jnp.float32) + bk[hh]
            v = jnp.dot(xkv, wv[hh], preferred_element_type=jnp.float32) + bv[hh]
            qh = (q * scale).astype(jnp.bfloat16).reshape(B, S, Dh)
            kh = k.astype(jnp.bfloat16).reshape(B, s_kv, Dh)
            vh = v.astype(jnp.bfloat16).reshape(B, s_kv, Dh)
            s = jnp.einsum("bqd,bkd->bqk", qh, kh,
                           preferred_element_type=jnp.float32)        # (B,S,s_kv)
            m = jnp.max(s, axis=-1, keepdims=True)
            p = jnp.exp(s - m)
            p = p * pl.reciprocal(jnp.sum(p, axis=-1, keepdims=True), approx=True)
            o = jnp.einsum("bqk,bkd->bqd", p.astype(jnp.bfloat16), vh,
                           preferred_element_type=jnp.float32)        # (B,S,Dh)
            acc = acc + jnp.dot(o.reshape(BS, Dh).astype(jnp.bfloat16), wo[hh],
                                preferred_element_type=jnp.float32)
        return acc + bo                                               # (B*S, D)

    # ---- CondLN0 -> self-MHA -> Rescale0 -> residual ----
    x_ln = cond_ln(h, g0, b0)
    att = mha(x_ln, x_ln, S,
              sa_wq_ref[0], sa_bq_ref[0], sa_wk_ref[0], sa_bk_ref[0],
              sa_wv_ref[0], sa_bv_ref[0], sa_wo_ref[0], sa_bo_ref[0])
    h = rescale_residual(x_ln, att, r0)

    # ---- CondLN1 -> cross-MHA(encoder) -> RescaleC -> residual ----
    x_ln = cond_ln(h, g1, b1)
    att = mha(x_ln, enc_ref[...], S_enc,
              ca_wq_ref[0], ca_bq_ref[0], ca_wk_ref[0], ca_bk_ref[0],
              ca_wv_ref[0], ca_bv_ref[0], ca_wo_ref[0], ca_bo_ref[0])
    h = rescale_residual(x_ln, att, rc)

    # ---- CondLN2 -> FFN -> Rescale1 -> residual ----
    x_ln = cond_ln(h, g2, b2)
    t = (jnp.dot(x_ln.astype(jnp.bfloat16), ffn_w1_ref[0],
                 preferred_element_type=jnp.float32) + ffn_b1_ref[0])
    t = jnp.maximum(t, 0.0)                                  # ReLU (dropout = id)
    y = (jnp.dot(t.astype(jnp.bfloat16), ffn_w2_ref[0],
                 preferred_element_type=jnp.float32) + ffn_b2_ref[0])
    h = rescale_residual(x_ln, y, r1)

    out_ref[...] = h


# ------------------------------ model wrapper --------------------------------


def transformer_decoder_conditional_forward(params, x, x_encoder, condition, n_heads):
    """x: (B, S, F), x_encoder: (B, S_enc, D_enc), condition: (B, C) -> (B, S, D)."""
    B, S, Fin = x.shape
    _, S_enc, D_enc = x_encoder.shape
    D = params["emb_w"].shape[1]
    L = params["cond_w"].shape[0]
    C = condition.shape[1]
    Dff = params["ffn_w1"].shape[2]
    H = n_heads
    Dh = D // H
    assert D % H == 0

    def const_spec(shape):
        n = len(shape)
        return pl.BlockSpec(shape, lambda l, n=n: (0,) * n)

    def layer_spec(tail):
        n = 1 + len(tail)
        return pl.BlockSpec((1,) + tail, lambda l, n=n: (l,) + (0,) * (n - 1))

    in_specs = [
        const_spec((B * S, Fin)),          # x (flattened)
        const_spec((B * S_enc, D_enc)),    # encoder output (flattened)
        const_spec((B, C)),                # condition
        const_spec((Fin, D)),              # embedding weight
        const_spec((1, D)),                # embedding bias
        layer_spec((C, 9 * D)),            # cond_w  (gamma/beta/rescale x3 packed)
        layer_spec((1, 9 * D)),            # cond_b
        layer_spec((H, D, Dh)),            # sa_wq
        layer_spec((H, D, Dh)),            # sa_wk
        layer_spec((H, D, Dh)),            # sa_wv
        layer_spec((H, 1, Dh)),            # sa_bq
        layer_spec((H, 1, Dh)),            # sa_bk
        layer_spec((H, 1, Dh)),            # sa_bv
        layer_spec((H, Dh, D)),            # sa_wo
        layer_spec((1, D)),                # sa_bo
        layer_spec((H, D, Dh)),            # ca_wq
        layer_spec((H, 1, Dh)),            # ca_bq
        layer_spec((H, D_enc, Dh)),        # ca_wk
        layer_spec((H, D_enc, Dh)),        # ca_wv
        layer_spec((H, 1, Dh)),            # ca_bk
        layer_spec((H, 1, Dh)),            # ca_bv
        layer_spec((H, Dh, D)),            # ca_wo
        layer_spec((1, D)),                # ca_bo
        layer_spec((D, Dff)),              # ffn_w1
        layer_spec((1, Dff)),              # ffn_b1
        layer_spec((Dff, D)),              # ffn_w2
        layer_spec((1, D)),                # ffn_b2
    ]

    out = pl.pallas_call(
        functools.partial(_decoder_kernel, B=B, S=S, S_enc=S_enc,
                          n_heads=n_heads, eps=_EPS),
        out_shape=jax.ShapeDtypeStruct((B * S, D), jnp.float32),
        grid=(L,),
        in_specs=in_specs,
        out_specs=pl.BlockSpec((B * S, D), lambda l: (0, 0)),
        compiler_params=pltpu.CompilerParams(
            dimension_semantics=("arbitrary",),   # layer axis carries state
            vmem_limit_bytes=_VMEM_LIMIT,
        ),
    )(
        x.reshape(B * S, Fin),
        x_encoder.reshape(B * S_enc, D_enc),
        condition,
        params["emb_w"], params["emb_b"],
        params["cond_w"], params["cond_b"],
        params["sa_wq"], params["sa_wk"], params["sa_wv"],
        params["sa_bq"], params["sa_bk"], params["sa_bv"],
        params["sa_wo"], params["sa_bo"],
        params["ca_wq"], params["ca_bq"],
        params["ca_wk"], params["ca_wv"],
        params["ca_bk"], params["ca_bv"],
        params["ca_wo"], params["ca_bo"],
        params["ffn_w1"], params["ffn_b1"], params["ffn_w2"], params["ffn_b2"],
    )
    return out.reshape(B, S, D)


# --------------------------------- params ------------------------------------


def init_params(key, n_input_features, d_model_dec, d_model_enc, n_heads, d_ff,
                n_condition_features, n_layers):
    """Matmul weights stored bf16 (MXU-native, halves weight HBM traffic);
    biases stay f32.  Q/K/V/out-proj weights are stored per head, stacked over
    layers so a single layer-grid pallas_call can index them.  Rescale layers
    use small random init here (PyTorch zero-inits them); forward math is
    identical."""
    assert d_model_dec % n_heads == 0
    D, De, H, C, L = d_model_dec, d_model_enc, n_heads, n_condition_features, n_layers
    Dh = D // H
    Dff = d_ff

    kit = iter(jax.random.split(key, 64))

    def wgt(shape, scale=0.05):
        return (scale * jax.random.normal(next(kit), shape, jnp.float32)
                ).astype(jnp.bfloat16)

    def vec(shape, scale=0.05):
        return scale * jax.random.normal(next(kit), shape, jnp.float32)

    return dict(
        emb_w=wgt((n_input_features, D)),
        emb_b=vec((1, D)),
        # [gamma0 | beta0 | rescale0 | gamma1 | beta1 | rescale_cross
        #  | gamma2 | beta2 | rescale1] packed column-wise:
        cond_w=wgt((L, C, 9 * D)),
        cond_b=vec((L, 1, 9 * D)),
        # self-attention (per-head weight layout)
        sa_wq=wgt((L, H, D, Dh)), sa_wk=wgt((L, H, D, Dh)), sa_wv=wgt((L, H, D, Dh)),
        sa_bq=vec((L, H, 1, Dh)), sa_bk=vec((L, H, 1, Dh)), sa_bv=vec((L, H, 1, Dh)),
        sa_wo=wgt((L, H, Dh, D)), sa_bo=vec((L, 1, D)),
        # cross-attention (kdim = vdim = d_model_encoder)
        ca_wq=wgt((L, H, D, Dh)), ca_bq=vec((L, H, 1, Dh)),
        ca_wk=wgt((L, H, De, Dh)), ca_wv=wgt((L, H, De, Dh)),
        ca_bk=vec((L, H, 1, Dh)), ca_bv=vec((L, H, 1, Dh)),
        ca_wo=wgt((L, H, Dh, D)), ca_bo=vec((L, 1, D)),
        # position-wise FFN
        ffn_w1=wgt((L, D, Dff)), ffn_b1=jnp.zeros((L, 1, Dff), jnp.float32),
        ffn_w2=wgt((L, Dff, D)), ffn_b2=jnp.zeros((L, 1, D), jnp.float32),
    )


# ----------------------------------- main ------------------------------------


if __name__ == "__main__":
    batch = 2
    seq_len = 8
    seq_len_enc = 8
    n_input_features = 4
    d_model_decoder = 32
    d_model_encoder = 48        # exercises the kdim/vdim != embed_dim path
    n_heads = 4
    d_ff = 64
    n_condition_features = 16
    n_layers = 2

    key = jax.random.PRNGKey(0)
    pkey, xkey, ekey, ckey = jax.random.split(key, 4)
    params = init_params(pkey, n_input_features, d_model_decoder, d_model_encoder,
                         n_heads, d_ff, n_condition_features, n_layers)
    x = jax.random.normal(xkey, (batch, seq_len, n_input_features), dtype=jnp.float32)
    x_encoder = jax.random.normal(ekey, (batch, seq_len_enc, d_model_encoder),
                                  dtype=jnp.float32)
    condition = jax.random.normal(ckey, (batch, n_condition_features),
                                  dtype=jnp.float32)

    fwd = jax.jit(functools.partial(transformer_decoder_conditional_forward,
                                    n_heads=n_heads))
    out = jax.block_until_ready(fwd(params, x, x_encoder, condition))

    assert out.shape == (batch, seq_len, d_model_decoder)
    assert bool(jnp.all(jnp.isfinite(out)))
    print("KERNEL_OK")
</pallas_src>

<mosaic_0001>
module attributes {stable_mosaic.version = 11 : i64} {
  func.func @_decoder_kernel(%arg0: i32, %arg1: memref<16x4xf32, #tpu.memory_space<vmem>>, %arg2: memref<16x48xf32, #tpu.memory_space<vmem>>, %arg3: memref<2x16xf32, #tpu.memory_space<vmem>>, %arg4: memref<4x32xbf16, #tpu.memory_space<vmem>>, %arg5: memref<1x32xf32, #tpu.memory_space<vmem>>, %arg6: memref<1x16x288xbf16, #tpu.memory_space<vmem>>, %arg7: memref<1x1x288xf32, #tpu.memory_space<vmem>>, %arg8: memref<1x4x32x8xbf16, #tpu.memory_space<vmem>>, %arg9: memref<1x4x32x8xbf16, #tpu.memory_space<vmem>>, %arg10: memref<1x4x32x8xbf16, #tpu.memory_space<vmem>>, %arg11: memref<1x4x1x8xf32, #tpu.memory_space<vmem>>, %arg12: memref<1x4x1x8xf32, #tpu.memory_space<vmem>>, %arg13: memref<1x4x1x8xf32, #tpu.memory_space<vmem>>, %arg14: memref<1x4x8x32xbf16, #tpu.memory_space<vmem>>, %arg15: memref<1x1x32xf32, #tpu.memory_space<vmem>>, %arg16: memref<1x4x32x8xbf16, #tpu.memory_space<vmem>>, %arg17: memref<1x4x1x8xf32, #tpu.memory_space<vmem>>, %arg18: memref<1x4x48x8xbf16, #tpu.memory_space<vmem>>, %arg19: memref<1x4x48x8xbf16, #tpu.memory_space<vmem>>, %arg20: memref<1x4x1x8xf32, #tpu.memory_space<vmem>>, %arg21: memref<1x4x1x8xf32, #tpu.memory_space<vmem>>, %arg22: memref<1x4x8x32xbf16, #tpu.memory_space<vmem>>, %arg23: memref<1x1x32xf32, #tpu.memory_space<vmem>>, %arg24: memref<1x32x64xbf16, #tpu.memory_space<vmem>>, %arg25: memref<1x1x64xf32, #tpu.memory_space<vmem>>, %arg26: memref<1x64x32xbf16, #tpu.memory_space<vmem>>, %arg27: memref<1x1x32xf32, #tpu.memory_space<vmem>>, %arg28: memref<16x32xf32, #tpu.memory_space<vmem>>) attributes {dimension_semantics = [#tpu.dimension_semantics<arbitrary>], iteration_bounds = array<i64: 2>, scalar_prefetch = 0 : i64, scratch_operands = 0 : i64, tpu.core_type = #tpu.core_type<tc>, window_params = [{pipeline_mode = #tpu.pipeline_mode<synchronous>, transform_indices = @transform_0, window_bounds = array<i64: 16, 4>}, {pipeline_mode = #tpu.pipeline_mode<synchronous>, transform_indices = @transform_1, window_bounds = array<i64: 16, 48>}, {pipeline_mode = #tpu.pipeline_mode<synchronous>, transform_indices = @transform_2, window_bounds = array<i64: 2, 16>}, {pipeline_mode = #tpu.pipeline_mode<synchronous>, transform_indices = @transform_3, window_bounds = array<i64: 4, 32>}, {pipeline_mode = #tpu.pipeline_mode<synchronous>, transform_indices = @transform_4, window_bounds = array<i64: 1, 32>}, {transform_indices = @transform_5, window_bounds = array<i64: 1, 16, 288>}, {transform_indices = @transform_6, window_bounds = array<i64: 1, 1, 288>}, {transform_indices = @transform_7, window_bounds = array<i64: 1, 4, 32, 8>}, {transform_indices = @transform_8, window_bounds = array<i64: 1, 4, 32, 8>}, {transform_indices = @transform_9, window_bounds = array<i64: 1, 4, 32, 8>}, {transform_indices = @transform_10, window_bounds = array<i64: 1, 4, 1, 8>}, {transform_indices = @transform_11, window_bounds = array<i64: 1, 4, 1, 8>}, {transform_indices = @transform_12, window_bounds = array<i64: 1, 4, 1, 8>}, {transform_indices = @transform_13, window_bounds = array<i64: 1, 4, 8, 32>}, {transform_indices = @transform_14, window_bounds = array<i64: 1, 1, 32>}, {transform_indices = @transform_15, window_bounds = array<i64: 1, 4, 32, 8>}, {transform_indices = @transform_16, window_bounds = array<i64: 1, 4, 1, 8>}, {transform_indices = @transform_17, window_bounds = array<i64: 1, 4, 48, 8>}, {transform_indices = @transform_18, window_bounds = array<i64: 1, 4, 48, 8>}, {transform_indices = @transform_19, window_bounds = array<i64: 1, 4, 1, 8>}, {transform_indices = @transform_20, window_bounds = array<i64: 1, 4, 1, 8>}, {transform_indices = @transform_21, window_bounds = array<i64: 1, 4, 8, 32>}, {transform_indices = @transform_22, window_bounds = array<i64: 1, 1, 32>}, {transform_indices = @transform_23, window_bounds = array<i64: 1, 32, 64>}, {transform_indices = @transform_24, window_bounds = array<i64: 1, 1, 64>}, {transform_indices = @transform_25, window_bounds = array<i64: 1, 64, 32>}, {transform_indices = @transform_26, window_bounds = array<i64: 1, 1, 32>}, {pipeline_mode = #tpu.pipeline_mode<synchronous>, transform_indices = @transform_27, window_bounds = array<i64: 16, 32>}]} {
    %c0_i32 = arith.constant 0 : i32
    %0 = arith.cmpi eq, %arg0, %c0_i32 : i32
    %1 = arith.extui %0 : i1 to i32
    %c0_i32_0 = arith.constant 0 : i32
    %2 = arith.cmpi ne, %1, %c0_i32_0 : i32
    scf.if %2 {
      %c0_180 = arith.constant 0 : index
      %c0_181 = arith.constant 0 : index
      %567 = vector.load %arg1[%c0_180, %c0_181] : memref<16x4xf32, #tpu.memory_space<vmem>>, vector<16x4xf32>
      %568 = arith.truncf %567 : vector<16x4xf32> to vector<16x4xbf16>
      %c0_182 = arith.constant 0 : index
      %c0_183 = arith.constant 0 : index
      %569 = vector.load %arg4[%c0_182, %c0_183] : memref<4x32xbf16, #tpu.memory_space<vmem>>, vector<4x32xbf16>
      %cst_184 = arith.constant dense<0.000000e+00> : vector<16x32xf32>
      %570 = tpu.matmul %568, %569, %cst_184 {dimension_numbers = #tpu.dot_dimension_numbers<[1], [0], [0], [1], [0, 0, 1, 1], [], []>} : vector<16x4xbf16>, vector<4x32xbf16>, vector<16x32xf32> -> vector<16x32xf32>
      %c0_185 = arith.constant 0 : index
      %c0_186 = arith.constant 0 : index
      %571 = vector.load %arg5[%c0_185, %c0_186] : memref<1x32xf32, #tpu.memory_space<vmem>>, vector<1x32xf32>
      %572 = vector.broadcast %571 : vector<1x32xf32> to vector<16x32xf32>
      %573 = arith.addf %570, %572 : vector<16x32xf32>
      %c0_187 = arith.constant 0 : index
      %c0_188 = arith.constant 0 : index
      %574 = vector.load %arg28[%c0_187, %c0_188] : memref<16x32xf32, #tpu.memory_space<vmem>>, vector<16x32xf32>
      tpu.vector_store %arg28[%c0_187, %c0_188], %573 {strides = array<i32>} : memref<16x32xf32, #tpu.memory_space<vmem>>, vector<16x32xf32>,
    } else {
    }
    %c0 = arith.constant 0 : index
    %c0_1 = arith.constant 0 : index
    %3 = vector.load %arg28[%c0, %c0_1] : memref<16x32xf32, #tpu.memory_space<vmem>>, vector<16x32xf32>
    %c0_2 = arith.constant 0 : index
    %c0_3 = arith.constant 0 : index
    %4 = vector.load %arg3[%c0_2, %c0_3] : memref<2x16xf32, #tpu.memory_space<vmem>>, vector<2x16xf32>
    %5 = arith.truncf %4 : vector<2x16xf32> to vector<2x16xbf16>
    %c0_4 = arith.constant 0 : index
    %c0_5 = arith.constant 0 : index
    %c0_6 = arith.constant 0 : index
    %6 = vector.load %arg6[%c0_4, %c0_5, %c0_6] : memref<1x16x288xbf16, #tpu.memory_space<vmem>>, vector<1x16x288xbf16>
    %7 = vector.shape_cast %6 : vector<1x16x288xbf16> to vector<16x288xbf16>
    %cst = arith.constant dense<0.000000e+00> : vector<2x288xf32>
    %8 = tpu.matmul %5, %7, %cst {dimension_numbers = #tpu.dot_dimension_numbers<[1], [0], [0], [1], [0, 0, 1, 1], [], []>} : vector<2x16xbf16>, vector<16x288xbf16>, vector<2x288xf32> -> vector<2x288xf32>
    %c0_7 = arith.constant 0 : index
    %c0_8 = arith.constant 0 : index
    %c0_9 = arith.constant 0 : index
    %9 = vector.load %arg7[%c0_7, %c0_8, %c0_9] : memref<1x1x288xf32, #tpu.memory_space<vmem>>, vector<1x1x288xf32>
    %10 = vector.shape_cast %9 : vector<1x1x288xf32> to vector<1x288xf32>
    %11 = vector.broadcast %10 : vector<1x288xf32> to vector<2x288xf32>
    %12 = arith.addf %8, %11 : vector<2x288xf32>
    %13 = vector.extract_strided_slice %12 {offsets = [0, 0], sizes = [2, 32], strides = [1, 1]} : vector<2x288xf32> to vector<2x32xf32>
    %14 = vector.shape_cast %13 : vector<2x32xf32> to vector<2x1x32xf32>
    %15 = vector.extract_strided_slice %12 {offsets = [0, 32], sizes = [2, 32], strides = [1, 1]} : vector<2x288xf32> to vector<2x32xf32>
    %16 = vector.shape_cast %15 : vector<2x32xf32> to vector<2x1x32xf32>
    %17 = vector.extract_strided_slice %12 {offsets = [0, 64], sizes = [2, 32], strides = [1, 1]} : vector<2x288xf32> to vector<2x32xf32>
    %18 = vector.shape_cast %17 : vector<2x32xf32> to vector<2x1x32xf32>
    %19 = vector.extract_strided_slice %12 {offsets = [0, 96], sizes = [2, 32], strides = [1, 1]} : vector<2x288xf32> to vector<2x32xf32>
    %20 = vector.shape_cast %19 : vector<2x32xf32> to vector<2x1x32xf32>
    %21 = vector.extract_strided_slice %12 {offsets = [0, 128], sizes = [2, 32], strides = [1, 1]} : vector<2x288xf32> to vector<2x32xf32>
    %22 = vector.shape_cast %21 : vector<2x32xf32> to vector<2x1x32xf32>
    %23 = vector.extract_strided_slice %12 {offsets = [0, 160], sizes = [2, 32], strides = [1, 1]} : vector<2x288xf32> to vector<2x32xf32>
    %24 = vector.shape_cast %23 : vector<2x32xf32> to vector<2x1x32xf32>
    %25 = vector.extract_strided_slice %12 {offsets = [0, 192], sizes = [2, 32], strides = [1, 1]} : vector<2x288xf32> to vector<2x32xf32>
    %26 = vector.shape_cast %25 : vector<2x32xf32> to vector<2x1x32xf32>
    %27 = vector.extract_strided_slice %12 {offsets = [0, 224], sizes = [2, 32], strides = [1, 1]} : vector<2x288xf32> to vector<2x32xf32>
    %28 = vector.shape_cast %27 : vector<2x32xf32> to vector<2x1x32xf32>
    %29 = vector.extract_strided_slice %12 {offsets = [0, 256], sizes = [2, 32], strides = [1, 1]} : vector<2x288xf32> to vector<2x32xf32>
    %30 = vector.shape_cast %29 : vector<2x32xf32> to vector<2x1x32xf32>
    %31 = vector.shape_cast %3 : vector<16x32xf32> to vector<2x8x32xf32>
    %cst_10 = arith.constant dense<0.000000e+00> : vector<2x8xf32>
    %32 = vector.multi_reduction <add>, %31, %cst_10 [2] : vector<2x8x32xf32> to vector<2x8xf32>
    %33 = vector.shape_cast %32 : vector<2x8xf32> to vector<2x8x1xf32>
    %cst_11 = arith.constant 3.200000e+01 : f32
    %34 = vector.broadcast %cst_11 : f32 to vector<2x8x1xf32>
    %35 = arith.divf %33, %34 : vector<2x8x1xf32>
    %36 = vector.broadcast %35 : vector<2x8x1xf32> to vector<2x8x32xf32>
    %37 = arith.subf %31, %36 : vector<2x8x32xf32>
    %38 = arith.mulf %37, %37 : vector<2x8x32xf32>
    %cst_12 = arith.constant dense<0.000000e+00> : vector<2x8xf32>
    %39 = vector.multi_reduction <add>, %38, %cst_12 [2] : vector<2x8x32xf32> to vector<2x8xf32>
    %40 = vector.shape_cast %39 : vector<2x8xf32> to vector<2x8x1xf32>
    %cst_13 = arith.constant 3.200000e+01 : f32
    %41 = vector.broadcast %cst_13 : f32 to vector<2x8x1xf32>
    %42 = arith.divf %40, %41 : vector<2x8x1xf32>
    %43 = vector.broadcast %35 : vector<2x8x1xf32> to vector<2x8x32xf32>
    %44 = arith.subf %31, %43 : vector<2x8x32xf32>
    %cst_14 = arith.constant 9.99999974E-6 : f32
    %45 = vector.broadcast %cst_14 : f32 to vector<2x8x1xf32>
    %46 = arith.addf %42, %45 : vector<2x8x1xf32>
    %47 = math.rsqrt %46 : vector<2x8x1xf32>
    %48 = vector.broadcast %47 : vector<2x8x1xf32> to vector<2x8x32xf32>
    %49 = arith.mulf %44, %48 : vector<2x8x32xf32>
    %50 = vector.broadcast %14 : vector<2x1x32xf32> to vector<2x8x32xf32>
    %51 = arith.mulf %49, %50 : vector<2x8x32xf32>
    %52 = vector.broadcast %16 : vector<2x1x32xf32> to vector<2x8x32xf32>
    %53 = arith.addf %51, %52 : vector<2x8x32xf32>
    %54 = vector.shape_cast %53 : vector<2x8x32xf32> to vector<16x32xf32>
    %c0_15 = arith.constant 0 : index
    %c0_16 = arith.constant 0 : index
    %c0_17 = arith.constant 0 : index
    %c0_18 = arith.constant 0 : index
    %55 = vector.load %arg8[%c0_15, %c0_16, %c0_17, %c0_18] : memref<1x4x32x8xbf16, #tpu.memory_space<vmem>>, vector<1x4x32x8xbf16>
    %56 = vector.shape_cast %55 : vector<1x4x32x8xbf16> to vector<4x32x8xbf16>
    %c0_19 = arith.constant 0 : index
    %c0_20 = arith.constant 0 : index
    %c0_21 = arith.constant 0 : index
    %c0_22 = arith.constant 0 : index
    %57 = vector.load %arg11[%c0_19, %c0_20, %c0_21, %c0_22] : memref<1x4x1x8xf32, #tpu.memory_space<vmem>>, vector<1x4x1x8xf32>
    %58 = vector.shape_cast %57 : vector<1x4x1x8xf32> to vector<4x1x8xf32>
    %c0_23 = arith.constant 0 : index
    %c0_24 = arith.constant 0 : index
    %c0_25 = arith.constant 0 : index
    %c0_26 = arith.constant 0 : index
    %59 = vector.load %arg9[%c0_23, %c0_24, %c0_25, %c0_26] : memref<1x4x32x8xbf16, #tpu.memory_space<vmem>>, vector<1x4x32x8xbf16>
    %60 = vector.shape_cast %59 : vector<1x4x32x8xbf16> to vector<4x32x8xbf16>
    %c0_27 = arith.constant 0 : index
    %c0_28 = arith.constant 0 : index
    %c0_29 = arith.constant 0 : index
    %c0_30 = arith.constant 0 : index
    %61 = vector.load %arg12[%c0_27, %c0_28, %c0_29, %c0_30] : memref<1x4x1x8xf32, #tpu.memory_space<vmem>>, vector<1x4x1x8xf32>
    %62 = vector.shape_cast %61 : vector<1x4x1x8xf32> to vector<4x1x8xf32>
    %c0_31 = arith.constant 0 : index
    %c0_32 = arith.constant 0 : index
    %c0_33 = arith.constant 0 : index
    %c0_34 = arith.constant 0 : index
    %63 = vector.load %arg10[%c0_31, %c0_32, %c0_33, %c0_34] : memref<1x4x32x8xbf16, #tpu.memory_space<vmem>>, vector<1x4x32x8xbf16>
    %64 = vector.shape_cast %63 : vector<1x4x32x8xbf16> to vector<4x32x8xbf16>
    %c0_35 = arith.constant 0 : index
    %c0_36 = arith.constant 0 : index
    %c0_37 = arith.constant 0 : index
    %c0_38 = arith.constant 0 : index
    %65 = vector.load %arg13[%c0_35, %c0_36, %c0_37, %c0_38] : memref<1x4x1x8xf32, #tpu.memory_space<vmem>>, vector<1x4x1x8xf32>
    %66 = vector.shape_cast %65 : vector<1x4x1x8xf32> to vector<4x1x8xf32>
    %c0_39 = arith.constant 0 : index
    %c0_40 = arith.constant 0 : index
    %c0_41 = arith.constant 0 : index
    %c0_42 = arith.constant 0 : index
    %67 = vector.load %arg14[%c0_39, %c0_40, %c0_41, %c0_42] : memref<1x4x8x32xbf16, #tpu.memory_space<vmem>>, vector<1x4x8x32xbf16>
    %68 = vector.shape_cast %67 : vector<1x4x8x32xbf16> to vector<4x8x32xbf16>
    %c0_43 = arith.constant 0 : index
    %c0_44 = arith.constant 0 : index
    %c0_45 = arith.constant 0 : index
    %69 = vector.load %arg15[%c0_43, %c0_44, %c0_45] : memref<1x1x32xf32, #tpu.memory_space<vmem>>, vector<1x1x32xf32>
    %70 = vector.shape_cast %69 : vector<1x1x32xf32> to vector<1x32xf32>
    %71 = arith.truncf %54 : vector<16x32xf32> to vector<16x32xbf16>
    %72 = arith.truncf %54 : vector<16x32xf32> to vector<16x32xbf16>
    %cst_46 = arith.constant 0.000000e+00 : f32
    %73 = vector.broadcast %cst_46 : f32 to vector<16x32xf32>
    %74 = vector.extract_strided_slice %56 {offsets = [0, 0, 0], sizes = [1, 32, 8], strides = [1, 1, 1]} : vector<4x32x8xbf16> to vector<1x32x8xbf16>
    %75 = vector.shape_cast %74 : vector<1x32x8xbf16> to vector<32x8xbf16>
    %cst_47 = arith.constant dense<0.000000e+00> : vector<16x8xf32>
    %76 = tpu.matmul %71, %75, %cst_47 {dimension_numbers = #tpu.dot_dimension_numbers<[1], [0], [0], [1], [0, 0, 1, 1], [], []>} : vector<16x32xbf16>, vector<32x8xbf16>, vector<16x8xf32> -> vector<16x8xf32>
    %77 = vector.extract_strided_slice %58 {offsets = [0, 0, 0], sizes = [1, 1, 8], strides = [1, 1, 1]} : vector<4x1x8xf32> to vector<1x1x8xf32>
    %78 = vector.shape_cast %77 : vector<1x1x8xf32> to vector<1x8xf32>
    %79 = vector.broadcast %78 : vector<1x8xf32> to vector<16x8xf32>
    %80 = arith.addf %76, %79 : vector<16x8xf32>
    %81 = vector.extract_strided_slice %60 {offsets = [0, 0, 0], sizes = [1, 32, 8], strides = [1, 1, 1]} : vector<4x32x8xbf16> to vector<1x32x8xbf16>
    %82 = vector.shape_cast %81 : vector<1x32x8xbf16> to vector<32x8xbf16>
    %cst_48 = arith.constant dense<0.000000e+00> : vector<16x8xf32>
    %83 = tpu.matmul %72, %82, %cst_48 {dimension_numbers = #tpu.dot_dimension_numbers<[1], [0], [0], [1], [0, 0, 1, 1], [], []>} : vector<16x32xbf16>, vector<32x8xbf16>, vector<16x8xf32> -> vector<16x8xf32>
    %84 = vector.extract_strided_slice %62 {offsets = [0, 0, 0], sizes = [1, 1, 8], strides = [1, 1, 1]} : vector<4x1x8xf32> to vector<1x1x8xf32>
    %85 = vector.shape_cast %84 : vector<1x1x8xf32> to vector<1x8xf32>
    %86 = vector.broadcast %85 : vector<1x8xf32> to vector<16x8xf32>
    %87 = arith.addf %83, %86 : vector<16x8xf32>
    %88 = vector.extract_strided_slice %64 {offsets = [0, 0, 0], sizes = [1, 32, 8], strides = [1, 1, 1]} : vector<4x32x8xbf16> to vector<1x32x8xbf16>
    %89 = vector.shape_cast %88 : vector<1x32x8xbf16> to vector<32x8xbf16>
    %cst_49 = arith.constant dense<0.000000e+00> : vector<16x8xf32>
    %90 = tpu.matmul %72, %89, %cst_49 {dimension_numbers = #tpu.dot_dimension_numbers<[1], [0], [0], [1], [0, 0, 1, 1], [], []>} : vector<16x32xbf16>, vector<32x8xbf16>, vector<16x8xf32> -> vector<16x8xf32>
    %91 = vector.extract_strided_slice %66 {offsets = [0, 0, 0], sizes = [1, 1, 8], strides = [1, 1, 1]} : vector<4x1x8xf32> to vector<1x1x8xf32>
    %92 = vector.shape_cast %91 : vector<1x1x8xf32> to vector<1x8xf32>
    %93 = vector.broadcast %92 : vector<1x8xf32> to vector<16x8xf32>
    %94 = arith.addf %90, %93 : vector<16x8xf32>
    %cst_50 = arith.constant 0.353553385 : f32
    %95 = vector.broadcast %cst_50 : f32 to vector<16x8xf32>
    %96 = arith.mulf %80, %95 : vector<16x8xf32>
    %97 = arith.truncf %96 : vector<16x8xf32> to vector<16x8xbf16>
    %98 = vector.shape_cast %97 : vector<16x8xbf16> to vector<2x8x8xbf16>
    %99 = arith.truncf %87 : vector<16x8xf32> to vector<16x8xbf16>
    %100 = vector.shape_cast %99 : vector<16x8xbf16> to vector<2x8x8xbf16>
    %101 = arith.truncf %94 : vector<16x8xf32> to vector<16x8xbf16>
    %102 = vector.shape_cast %101 : vector<16x8xbf16> to vector<2x8x8xbf16>
    "tpu.trace_start"() <{level = 10 : i32, message = "bqd,bkd->bqk"}> : () -> ()
    %cst_51 = arith.constant dense<0.000000e+00> : vector<2x8x8xf32>
    %103 = tpu.matmul %98, %100, %cst_51 {dimension_numbers = #tpu.dot_dimension_numbers<[2], [2], [1], [1], [0, 0, 0, 1, 1, 1], [0], [0]>} : vector<2x8x8xbf16>, vector<2x8x8xbf16>, vector<2x8x8xf32> -> vector<2x8x8xf32>
    "tpu.trace_stop"() : () -> ()
    %cst_52 = arith.constant dense<0xFF800000> : vector<2x8xf32>
    %104 = vector.multi_reduction <maximumf>, %103, %cst_52 [2] : vector<2x8x8xf32> to vector<2x8xf32>
    %105 = vector.shape_cast %104 : vector<2x8xf32> to vector<2x8x1xf32>
    %106 = vector.broadcast %105 : vector<2x8x1xf32> to vector<2x8x8xf32>
    %107 = arith.subf %103, %106 : vector<2x8x8xf32>
    %108 = math.exp %107 : vector<2x8x8xf32>
    %cst_53 = arith.constant dense<0.000000e+00> : vector<2x8xf32>
    %109 = vector.multi_reduction <add>, %108, %cst_53 [2] : vector<2x8x8xf32> to vector<2x8xf32>
    %110 = vector.shape_cast %109 : vector<2x8xf32> to vector<2x8x1xf32>
    %111 = tpu.reciprocal %110 {approx = true} : vector<2x8x1xf32> -> vector<2x8x1xf32>
    %112 = vector.broadcast %111 : vector<2x8x1xf32> to vector<2x8x8xf32>
    %113 = arith.mulf %108, %112 : vector<2x8x8xf32>
    %114 = arith.truncf %113 : vector<2x8x8xf32> to vector<2x8x8xbf16>
    "tpu.trace_start"() <{level = 10 : i32, message = "bqk,bkd->bqd"}> : () -> ()
    %cst_54 = arith.constant dense<0.000000e+00> : vector<2x8x8xf32>
    %115 = tpu.matmul %114, %102, %cst_54 {dimension_numbers = #tpu.dot_dimension_numbers<[2], [1], [1], [2], [0, 0, 0, 1, 1, 2], [0], [0]>} : vector<2x8x8xbf16>, vector<2x8x8xbf16>, vector<2x8x8xf32> -> vector<2x8x8xf32>
    "tpu.trace_stop"() : () -> ()
    %116 = vector.shape_cast %115 : vector<2x8x8xf32> to vector<16x8xf32>
    %117 = arith.truncf %116 : vector<16x8xf32> to vector<16x8xbf16>
    %118 = vector.extract_strided_slice %68 {offsets = [0, 0, 0], sizes = [1, 8, 32], strides = [1, 1, 1]} : vector<4x8x32xbf16> to vector<1x8x32xbf16>
    %119 = vector.shape_cast %118 : vector<1x8x32xbf16> to vector<8x32xbf16>
    %cst_55 = arith.constant dense<0.000000e+00> : vector<16x32xf32>
    %120 = tpu.matmul %117, %119, %cst_55 {dimension_numbers = #tpu.dot_dimension_numbers<[1], [0], [0], [1], [0, 0, 1, 1], [], []>} : vector<16x8xbf16>, vector<8x32xbf16>, vector<16x32xf32> -> vector<16x32xf32>
    %121 = arith.addf %73, %120 : vector<16x32xf32>
    %122 = vector.extract_strided_slice %56 {offsets = [1, 0, 0], sizes = [1, 32, 8], strides = [1, 1, 1]} : vector<4x32x8xbf16> to vector<1x32x8xbf16>
    %123 = vector.shape_cast %122 : vector<1x32x8xbf16> to vector<32x8xbf16>
    %cst_56 = arith.constant dense<0.000000e+00> : vector<16x8xf32>
    %124 = tpu.matmul %71, %123, %cst_56 {dimension_numbers = #tpu.dot_dimension_numbers<[1], [0], [0], [1], [0, 0, 1, 1], [], []>} : vector<16x32xbf16>, vector<32x8xbf16>, vector<16x8xf32> -> vector<16x8xf32>
    %125 = vector.extract_strided_slice %58 {offsets = [1, 0, 0], sizes = [1, 1, 8], strides = [1, 1, 1]} : vector<4x1x8xf32> to vector<1x1x8xf32>
    %126 = vector.shape_cast %125 : vector<1x1x8xf32> to vector<1x8xf32>
    %127 = vector.broadcast %126 : vector<1x8xf32> to vector<16x8xf32>
    %128 = arith.addf %124, %127 : vector<16x8xf32>
    %129 = vector.extract_strided_slice %60 {offsets = [1, 0, 0], sizes = [1, 32, 8], strides = [1, 1, 1]} : vector<4x32x8xbf16> to vector<1x32x8xbf16>
    %130 = vector.shape_cast %129 : vector<1x32x8xbf16> to vector<32x8xbf16>
    %cst_57 = arith.constant dense<0.000000e+00> : vector<16x8xf32>
    %131 = tpu.matmul %72, %130, %cst_57 {dimension_numbers = #tpu.dot_dimension_numbers<[1], [0], [0], [1], [0, 0, 1, 1], [], []>} : vector<16x32xbf16>, vector<32x8xbf16>, vector<16x8xf32> -> vector<16x8xf32>
    %132 = vector.extract_strided_slice %62 {offsets = [1, 0, 0], sizes = [1, 1, 8], strides = [1, 1, 1]} : vector<4x1x8xf32> to vector<1x1x8xf32>
    %133 = vector.shape_cast %132 : vector<1x1x8xf32> to vector<1x8xf32>
    %134 = vector.broadcast %133 : vector<1x8xf32> to vector<16x8xf32>
    %135 = arith.addf %131, %134 : vector<16x8xf32>
    %136 = vector.extract_strided_slice %64 {offsets = [1, 0, 0], sizes = [1, 32, 8], strides = [1, 1, 1]} : vector<4x32x8xbf16> to vector<1x32x8xbf16>
    %137 = vector.shape_cast %136 : vector<1x32x8xbf16> to vector<32x8xbf16>
    %cst_58 = arith.constant dense<0.000000e+00> : vector<16x8xf32>
    %138 = tpu.matmul %72, %137, %cst_58 {dimension_numbers = #tpu.dot_dimension_numbers<[1], [0], [0], [1], [0, 0, 1, 1], [], []>} : vector<16x32xbf16>, vector<32x8xbf16>, vector<16x8xf32> -> vector<16x8xf32>
    %139 = vector.extract_strided_slice %66 {offsets = [1, 0, 0], sizes = [1, 1, 8], strides = [1, 1, 1]} : vector<4x1x8xf32> to vector<1x1x8xf32>
    %140 = vector.shape_cast %139 : vector<1x1x8xf32> to vector<1x8xf32>
    %141 = vector.broadcast %140 : vector<1x8xf32> to vector<16x8xf32>
    %142 = arith.addf %138, %141 : vector<16x8xf32>
    %cst_59 = arith.constant 0.353553385 : f32
    %143 = vector.broadcast %cst_59 : f32 to vector<16x8xf32>
    %144 = arith.mulf %128, %143 : vector<16x8xf32>
    %145 = arith.truncf %144 : vector<16x8xf32> to vector<16x8xbf16>
    %146 = vector.shape_cast %145 : vector<16x8xbf16> to vector<2x8x8xbf16>
    %147 = arith.truncf %135 : vector<16x8xf32> to vector<16x8xbf16>
    %148 = vector.shape_cast %147 : vector<16x8xbf16> to vector<2x8x8xbf16>
    %149 = arith.truncf %142 : vector<16x8xf32> to vector<16x8xbf16>
    %150 = vector.shape_cast %149 : vector<16x8xbf16> to vector<2x8x8xbf16>
    "tpu.trace_start"() <{level = 10 : i32, message = "bqd,bkd->bqk"}> : () -> ()
    %cst_60 = arith.constant dense<0.000000e+00> : vector<2x8x8xf32>
    %151 = tpu.matmul %146, %148, %cst_60 {dimension_numbers = #tpu.dot_dimension_numbers<[2], [2], [1], [1], [0, 0, 0, 1, 1, 1], [0], [0]>} : vector<2x8x8xbf16>, vector<2x8x8xbf16>, vector<2x8x8xf32> -> vector<2x8x8xf32>
    "tpu.trace_stop"() : () -> ()
    %cst_61 = arith.constant dense<0xFF800000> : vector<2x8xf32>
    %152 = vector.multi_reduction <maximumf>, %151, %cst_61 [2] : vector<2x8x8xf32> to vector<2x8xf32>
    %153 = vector.shape_cast %152 : vector<2x8xf32> to vector<2x8x1xf32>
    %154 = vector.broadcast %153 : vector<2x8x1xf32> to vector<2x8x8xf32>
    %155 = arith.subf %151, %154 : vector<2x8x8xf32>
    %156 = math.exp %155 : vector<2x8x8xf32>
    %cst_62 = arith.constant dense<0.000000e+00> : vector<2x8xf32>
    %157 = vector.multi_reduction <add>, %156, %cst_62 [2] : vector<2x8x8xf32> to vector<2x8xf32>
    %158 = vector.shape_cast %157 : vector<2x8xf32> to vector<2x8x1xf32>
    %159 = tpu.reciprocal %158 {approx = true} : vector<2x8x1xf32> -> vector<2x8x1xf32>
    %160 = vector.broadcast %159 : vector<2x8x1xf32> to vector<2x8x8xf32>
    %161 = arith.mulf %156, %160 : vector<2x8x8xf32>
    %162 = arith.truncf %161 : vector<2x8x8xf32> to vector<2x8x8xbf16>
    "tpu.trace_start"() <{level = 10 : i32, message = "bqk,bkd->bqd"}> : () -> ()
    %cst_63 = arith.constant dense<0.000000e+00> : vector<2x8x8xf32>
    %163 = tpu.matmul %162, %150, %cst_63 {dimension_numbers = #tpu.dot_dimension_numbers<[2], [1], [1], [2], [0, 0, 0, 1, 1, 2], [0], [0]>} : vector<2x8x8xbf16>, vector<2x8x8xbf16>, vector<2x8x8xf32> -> vector<2x8x8xf32>
    "tpu.trace_stop"() : () -> ()
    %164 = vector.shape_cast %163 : vector<2x8x8xf32> to vector<16x8xf32>
    %165 = arith.truncf %164 : vector<16x8xf32> to vector<16x8xbf16>
    %166 = vector.extract_strided_slice %68 {offsets = [1, 0, 0], sizes = [1, 8, 32], strides = [1, 1, 1]} : vector<4x8x32xbf16> to vector<1x8x32xbf16>
    %167 = vector.shape_cast %166 : vector<1x8x32xbf16> to vector<8x32xbf16>
    %cst_64 = arith.constant dense<0.000000e+00> : vector<16x32xf32>
    %168 = tpu.matmul %165, %167, %cst_64 {dimension_numbers = #tpu.dot_dimension_numbers<[1], [0], [0], [1], [0, 0, 1, 1], [], []>} : vector<16x8xbf16>, vector<8x32xbf16>, vector<16x32xf32> -> vector<16x32xf32>
    %169 = arith.addf %121, %168 : vector<16x32xf32>
    %170 = vector.extract_strided_slice %56 {offsets = [2, 0, 0], sizes = [1, 32, 8], strides = [1, 1, 1]} : vector<4x32x8xbf16> to vector<1x32x8xbf16>
    %171 = vector.shape_cast %170 : vector<1x32x8xbf16> to vector<32x8xbf16>
    %cst_65 = arith.constant dense<0.000000e+00> : vector<16x8xf32>
    %172 = tpu.matmul %71, %171, %cst_65 {dimension_numbers = #tpu.dot_dimension_numbers<[1], [0], [0], [1], [0, 0, 1, 1], [], []>} : vector<16x32xbf16>, vector<32x8xbf16>, vector<16x8xf32> -> vector<16x8xf32>
    %173 = vector.extract_strided_slice %58 {offsets = [2, 0, 0], sizes = [1, 1, 8], strides = [1, 1, 1]} : vector<4x1x8xf32> to vector<1x1x8xf32>
    %174 = vector.shape_cast %173 : vector<1x1x8xf32> to vector<1x8xf32>
    %175 = vector.broadcast %174 : vector<1x8xf32> to vector<16x8xf32>
    %176 = arith.addf %172, %175 : vector<16x8xf32>
    %177 = vector.extract_strided_slice %60 {offsets = [2, 0, 0], sizes = [1, 32, 8], strides = [1, 1, 1]} : vector<4x32x8xbf16> to vector<1x32x8xbf16>
    %178 = vector.shape_cast %177 : vector<1x32x8xbf16> to vector<32x8xbf16>
    %cst_66 = arith.constant dense<0.000000e+00> : vector<16x8xf32>
    %179 = tpu.matmul %72, %178, %cst_66 {dimension_numbers = #tpu.dot_dimension_numbers<[1], [0], [0], [1], [0, 0, 1, 1], [], []>} : vector<16x32xbf16>, vector<32x8xbf16>, vector<16x8xf32> -> vector<16x8xf32>
    %180 = vector.extract_strided_slice %62 {offsets = [2, 0, 0], sizes = [1, 1, 8], strides = [1, 1, 1]} : vector<4x1x8xf32> to vector<1x1x8xf32>
    %181 = vector.shape_cast %180 : vector<1x1x8xf32> to vector<1x8xf32>
    %182 = vector.broadcast %181 : vector<1x8xf32> to vector<16x8xf32>
    %183 = arith.addf %179, %182 : vector<16x8xf32>
    %184 = vector.extract_strided_slice %64 {offsets = [2, 0, 0], sizes = [1, 32, 8], strides = [1, 1, 1]} : vector<4x32x8xbf16> to vector<1x32x8xbf16>
    %185 = vector.shape_cast %184 : vector<1x32x8xbf16> to vector<32x8xbf16>
    %cst_67 = arith.constant dense<0.000000e+00> : vector<16x8xf32>
    %186 = tpu.matmul %72, %185, %cst_67 {dimension_numbers = #tpu.dot_dimension_numbers<[1], [0], [0], [1], [0, 0, 1, 1], [], []>} : vector<16x32xbf16>, vector<32x8xbf16>, vector<16x8xf32> -> vector<16x8xf32>
    %187 = vector.extract_strided_slice %66 {offsets = [2, 0, 0], sizes = [1, 1, 8], strides = [1, 1, 1]} : vector<4x1x8xf32> to vector<1x1x8xf32>
    %188 = vector.shape_cast %187 : vector<1x1x8xf32> to vector<1x8xf32>
    %189 = vector.broadcast %188 : vector<1x8xf32> to vector<16x8xf32>
    %190 = arith.addf %186, %189 : vector<16x8xf32>
    %cst_68 = arith.constant 0.353553385 : f32
    %191 = vector.broadcast %cst_68 : f32 to vector<16x8xf32>
    %192 = arith.mulf %176, %191 : vector<16x8xf32>
    %193 = arith.truncf %192 : vector<16x8xf32> to vector<16x8xbf16>
    %194 = vector.shape_cast %193 : vector<16x8xbf16> to vector<2x8x8xbf16>
    %195 = arith.truncf %183 : vector<16x8xf32> to vector<16x8xbf16>
    %196 = vector.shape_cast %195 : vector<16x8xbf16> to vector<2x8x8xbf16>
    %197 = arith.truncf %190 : vector<16x8xf32> to vector<16x8xbf16>
    %198 = vector.shape_cast %197 : vector<16x8xbf16> to vector<2x8x8xbf16>
    "tpu.trace_start"() <{level = 10 : i32, message = "bqd,bkd->bqk"}> : () -> ()
    %cst_69 = arith.constant dense<0.000000e+00> : vector<2x8x8xf32>
    %199 = tpu.matmul %194, %196, %cst_69 {dimension_numbers = #tpu.dot_dimension_numbers<[2], [2], [1], [1], [0, 0, 0, 1, 1, 1], [0], [0]>} : vector<2x8x8xbf16>, vector<2x8x8xbf16>, vector<2x8x8xf32> -> vector<2x8x8xf32>
    "tpu.trace_stop"() : () -> ()
    %cst_70 = arith.constant dense<0xFF800000> : vector<2x8xf32>
    %200 = vector.multi_reduction <maximumf>, %199, %cst_70 [2] : vector<2x8x8xf32> to vector<2x8xf32>
    %201 = vector.shape_cast %200 : vector<2x8xf32> to vector<2x8x1xf32>
    %202 = vector.broadcast %201 : vector<2x8x1xf32> to vector<2x8x8xf32>
    %203 = arith.subf %199, %202 : vector<2x8x8xf32>
    %204 = math.exp %203 : vector<2x8x8xf32>
    %cst_71 = arith.constant dense<0.000000e+00> : vector<2x8xf32>
    %205 = vector.multi_reduction <add>, %204, %cst_71 [2] : vector<2x8x8xf32> to vector<2x8xf32>
    %206 = vector.shape_cast %205 : vector<2x8xf32> to vector<2x8x1xf32>
    %207 = tpu.reciprocal %206 {approx = true} : vector<2x8x1xf32> -> vector<2x8x1xf32>
    %208 = vector.broadcast %207 : vector<2x8x1xf32> to vector<2x8x8xf32>
    %209 = arith.mulf %204, %208 : vector<2x8x8xf32>
    %210 = arith.truncf %209 : vector<2x8x8xf32> to vector<2x8x8xbf16>
    "tpu.trace_start"() <{level = 10 : i32, message = "bqk,bkd->bqd"}> : () -> ()
    %cst_72 = arith.constant dense<0.000000e+00> : vector<2x8x8xf32>
    %211 = tpu.matmul %210, %198, %cst_72 {dimension_numbers = #tpu.dot_dimension_numbers<[2], [1], [1], [2], [0, 0, 0, 1, 1, 2], [0], [0]>} : vector<2x8x8xbf16>, vector<2x8x8xbf16>, vector<2x8x8xf32> -> vector<2x8x8xf32>
    "tpu.trace_stop"() : () -> ()
    %212 = vector.shape_cast %211 : vector<2x8x8xf32> to vector<16x8xf32>
    %213 = arith.truncf %212 : vector<16x8xf32> to vector<16x8xbf16>
    %214 = vector.extract_strided_slice %68 {offsets = [2, 0, 0], sizes = [1, 8, 32], strides = [1, 1, 1]} : vector<4x8x32xbf16> to vector<1x8x32xbf16>
    %215 = vector.shape_cast %214 : vector<1x8x32xbf16> to vector<8x32xbf16>
    %cst_73 = arith.constant dense<0.000000e+00> : vector<16x32xf32>
    %216 = tpu.matmul %213, %215, %cst_73 {dimension_numbers = #tpu.dot_dimension_numbers<[1], [0], [0], [1], [0, 0, 1, 1], [], []>} : vector<16x8xbf16>, vector<8x32xbf16>, vector<16x32xf32> -> vector<16x32xf32>
    %217 = arith.addf %169, %216 : vector<16x32xf32>
    %218 = vector.extract_strided_slice %56 {offsets = [3, 0, 0], sizes = [1, 32, 8], strides = [1, 1, 1]} : vector<4x32x8xbf16> to vector<1x32x8xbf16>
    %219 = vector.shape_cast %218 : vector<1x32x8xbf16> to vector<32x8xbf16>
    %cst_74 = arith.constant dense<0.000000e+00> : vector<16x8xf32>
    %220 = tpu.matmul %71, %219, %cst_74 {dimension_numbers = #tpu.dot_dimension_numbers<[1], [0], [0], [1], [0, 0, 1, 1], [], []>} : vector<16x32xbf16>, vector<32x8xbf16>, vector<16x8xf32> -> vector<16x8xf32>
    %221 = vector.extract_strided_slice %58 {offsets = [3, 0, 0], sizes = [1, 1, 8], strides = [1, 1, 1]} : vector<4x1x8xf32> to vector<1x1x8xf32>
    %222 = vector.shape_cast %221 : vector<1x1x8xf32> to vector<1x8xf32>
    %223 = vector.broadcast %222 : vector<1x8xf32> to vector<16x8xf32>
    %224 = arith.addf %220, %223 : vector<16x8xf32>
    %225 = vector.extract_strided_slice %60 {offsets = [3, 0, 0], sizes = [1, 32, 8], strides = [1, 1, 1]} : vector<4x32x8xbf16> to vector<1x32x8xbf16>
    %226 = vector.shape_cast %225 : vector<1x32x8xbf16> to vector<32x8xbf16>
    %cst_75 = arith.constant dense<0.000000e+00> : vector<16x8xf32>
    %227 = tpu.matmul %72, %226, %cst_75 {dimension_numbers = #tpu.dot_dimension_numbers<[1], [0], [0], [1], [0, 0, 1, 1], [], []>} : vector<16x32xbf16>, vector<32x8xbf16>, vector<16x8xf32> -> vector<16x8xf32>
    %228 = vector.extract_strided_slice %62 {offsets = [3, 0, 0], sizes = [1, 1, 8], strides = [1, 1, 1]} : vector<4x1x8xf32> to vector<1x1x8xf32>
    %229 = vector.shape_cast %228 : vector<1x1x8xf32> to vector<1x8xf32>
    %230 = vector.broadcast %229 : vector<1x8xf32> to vector<16x8xf32>
    %231 = arith.addf %227, %230 : vector<16x8xf32>
    %232 = vector.extract_strided_slice %64 {offsets = [3, 0, 0], sizes = [1, 32, 8], strides = [1, 1, 1]} : vector<4x32x8xbf16> to vector<1x32x8xbf16>
    %233 = vector.shape_cast %232 : vector<1x32x8xbf16> to vector<32x8xbf16>
    %cst_76 = arith.constant dense<0.000000e+00> : vector<16x8xf32>
    %234 = tpu.matmul %72, %233, %cst_76 {dimension_numbers = #tpu.dot_dimension_numbers<[1], [0], [0], [1], [0, 0, 1, 1], [], []>} : vector<16x32xbf16>, vector<32x8xbf16>, vector<16x8xf32> -> vector<16x8xf32>
    %235 = vector.extract_strided_slice %66 {offsets = [3, 0, 0], sizes = [1, 1, 8], strides = [1, 1, 1]} : vector<4x1x8xf32> to vector<1x1x8xf32>
    %236 = vector.shape_cast %235 : vector<1x1x8xf32> to vector<1x8xf32>
    %237 = vector.broadcast %236 : vector<1x8xf32> to vector<16x8xf32>
    %238 = arith.addf %234, %237 : vector<16x8xf32>
    %cst_77 = arith.constant 0.353553385 : f32
    %239 = vector.broadcast %cst_77 : f32 to vector<16x8xf32>
    %240 = arith.mulf %224, %239 : vector<16x8xf32>
    %241 = arith.truncf %240 : vector<16x8xf32> to vector<16x8xbf16>
    %242 = vector.shape_cast %241 : vector<16x8xbf16> to vector<2x8x8xbf16>
    %243 = arith.truncf %231 : vector<16x8xf32> to vector<16x8xbf16>
    %244 = vector.shape_cast %243 : vector<16x8xbf16> to vector<2x8x8xbf16>
    %245 = arith.truncf %238 : vector<16x8xf32> to vector<16x8xbf16>
    %246 = vector.shape_cast %245 : vector<16x8xbf16> to vector<2x8x8xbf16>
    "tpu.trace_start"() <{level = 10 : i32, message = "bqd,bkd->bqk"}> : () -> ()
    %cst_78 = arith.constant dense<0.000000e+00> : vector<2x8x8xf32>
    %247 = tpu.matmul %242, %244, %cst_78 {dimension_numbers = #tpu.dot_dimension_numbers<[2], [2], [1], [1], [0, 0, 0, 1, 1, 1], [0], [0]>} : vector<2x8x8xbf16>, vector<2x8x8xbf16>, vector<2x8x8xf32> -> vector<2x8x8xf32>
    "tpu.trace_stop"() : () -> ()
    %cst_79 = arith.constant dense<0xFF800000> : vector<2x8xf32>
    %248 = vector.multi_reduction <maximumf>, %247, %cst_79 [2] : vector<2x8x8xf32> to vector<2x8xf32>
    %249 = vector.shape_cast %248 : vector<2x8xf32> to vector<2x8x1xf32>
    %250 = vector.broadcast %249 : vector<2x8x1xf32> to vector<2x8x8xf32>
    %251 = arith.subf %247, %250 : vector<2x8x8xf32>
    %252 = math.exp %251 : vector<2x8x8xf32>
    %cst_80 = arith.constant dense<0.000000e+00> : vector<2x8xf32>
    %253 = vector.multi_reduction <add>, %252, %cst_80 [2] : vector<2x8x8xf32> to vector<2x8xf32>
    %254 = vector.shape_cast %253 : vector<2x8xf32> to vector<2x8x1xf32>
    %255 = tpu.reciprocal %254 {approx = true} : vector<2x8x1xf32> -> vector<2x8x1xf32>
    %256 = vector.broadcast %255 : vector<2x8x1xf32> to vector<2x8x8xf32>
    %257 = arith.mulf %252, %256 : vector<2x8x8xf32>
    %258 = arith.truncf %257 : vector<2x8x8xf32> to vector<2x8x8xbf16>
    "tpu.trace_start"() <{level = 10 : i32, message = "bqk,bkd->bqd"}> : () -> ()
    %cst_81 = arith.constant dense<0.000000e+00> : vector<2x8x8xf32>
    %259 = tpu.matmul %258, %246, %cst_81 {dimension_numbers = #tpu.dot_dimension_numbers<[2], [1], [1], [2], [0, 0, 0, 1, 1, 2], [0], [0]>} : vector<2x8x8xbf16>, vector<2x8x8xbf16>, vector<2x8x8xf32> -> vector<2x8x8xf32>
    "tpu.trace_stop"() : () -> ()
    %260 = vector.shape_cast %259 : vector<2x8x8xf32> to vector<16x8xf32>
    %261 = arith.truncf %260 : vector<16x8xf32> to vector<16x8xbf16>
    %262 = vector.extract_strided_slice %68 {offsets = [3, 0, 0], sizes = [1, 8, 32], strides = [1, 1, 1]} : vector<4x8x32xbf16> to vector<1x8x32xbf16>
    %263 = vector.shape_cast %262 : vector<1x8x32xbf16> to vector<8x32xbf16>
    %cst_82 = arith.constant dense<0.000000e+00> : vector<16x32xf32>
    %264 = tpu.matmul %261, %263, %cst_82 {dimension_numbers = #tpu.dot_dimension_numbers<[1], [0], [0], [1], [0, 0, 1, 1], [], []>} : vector<16x8xbf16>, vector<8x32xbf16>, vector<16x32xf32> -> vector<16x32xf32>
    %265 = arith.addf %217, %264 : vector<16x32xf32>
    %266 = vector.broadcast %70 : vector<1x32xf32> to vector<16x32xf32>
    %267 = arith.addf %265, %266 : vector<16x32xf32>
    %268 = vector.shape_cast %54 : vector<16x32xf32> to vector<2x8x32xf32>
    %269 = vector.shape_cast %267 : vector<16x32xf32> to vector<2x8x32xf32>
    %270 = vector.broadcast %18 : vector<2x1x32xf32> to vector<2x8x32xf32>
    %271 = arith.mulf %270, %269 : vector<2x8x32xf32>
    %272 = arith.addf %268, %271 : vector<2x8x32xf32>
    %273 = vector.shape_cast %272 : vector<2x8x32xf32> to vector<16x32xf32>
    %274 = vector.shape_cast %273 : vector<16x32xf32> to vector<2x8x32xf32>
    %cst_83 = arith.constant dense<0.000000e+00> : vector<2x8xf32>
    %275 = vector.multi_reduction <add>, %274, %cst_83 [2] : vector<2x8x32xf32> to vector<2x8xf32>
    %276 = vector.shape_cast %275 : vector<2x8xf32> to vector<2x8x1xf32>
    %cst_84 = arith.constant 3.200000e+01 : f32
    %277 = vector.broadcast %cst_84 : f32 to vector<2x8x1xf32>
    %278 = arith.divf %276, %277 : vector<2x8x1xf32>
    %279 = vector.broadcast %278 : vector<2x8x1xf32> to vector<2x8x32xf32>
    %280 = arith.subf %274, %279 : vector<2x8x32xf32>
    %281 = arith.mulf %280, %280 : vector<2x8x32xf32>
    %cst_85 = arith.constant dense<0.000000e+00> : vector<2x8xf32>
    %282 = vector.multi_reduction <add>, %281, %cst_85 [2] : vector<2x8x32xf32> to vector<2x8xf32>
    %283 = vector.shape_cast %282 : vector<2x8xf32> to vector<2x8x1xf32>
    %cst_86 = arith.constant 3.200000e+01 : f32
    %284 = vector.broadcast %cst_86 : f32 to vector<2x8x1xf32>
    %285 = arith.divf %283, %284 : vector<2x8x1xf32>
    %286 = vector.broadcast %278 : vector<2x8x1xf32> to vector<2x8x32xf32>
    %287 = arith.subf %274, %286 : vector<2x8x32xf32>
    %cst_87 = arith.constant 9.99999974E-6 : f32
    %288 = vector.broadcast %cst_87 : f32 to vector<2x8x1xf32>
    %289 = arith.addf %285, %288 : vector<2x8x1xf32>
    %290 = math.rsqrt %289 : vector<2x8x1xf32>
    %291 = vector.broadcast %290 : vector<2x8x1xf32> to vector<2x8x32xf32>
    %292 = arith.mulf %287, %291 : vector<2x8x32xf32>
    %293 = vector.broadcast %20 : vector<2x1x32xf32> to vector<2x8x32xf32>
    %294 = arith.mulf %292, %293 : vector<2x8x32xf32>
    %295 = vector.broadcast %22 : vector<2x1x32xf32> to vector<2x8x32xf32>
    %296 = arith.addf %294, %295 : vector<2x8x32xf32>
    %297 = vector.shape_cast %296 : vector<2x8x32xf32> to vector<16x32xf32>
    %c0_88 = arith.constant 0 : index
    %c0_89 = arith.constant 0 : index
    %298 = vector.load %arg2[%c0_88, %c0_89] : memref<16x48xf32, #tpu.memory_space<vmem>>, vector<16x48xf32>
    %c0_90 = arith.constant 0 : index
    %c0_91 = arith.constant 0 : index
    %c0_92 = arith.constant 0 : index
    %c0_93 = arith.constant 0 : index
    %299 = vector.load %arg16[%c0_90, %c0_91, %c0_92, %c0_93] : memref<1x4x32x8xbf16, #tpu.memory_space<vmem>>, vector<1x4x32x8xbf16>
    %300 = vector.shape_cast %299 : vector<1x4x32x8xbf16> to vector<4x32x8xbf16>
    %c0_94 = arith.constant 0 : index
    %c0_95 = arith.constant 0 : index
    %c0_96 = arith.constant 0 : index
    %c0_97 = arith.constant 0 : index
    %301 = vector.load %arg17[%c0_94, %c0_95, %c0_96, %c0_97] : memref<1x4x1x8xf32, #tpu.memory_space<vmem>>, vector<1x4x1x8xf32>
    %302 = vector.shape_cast %301 : vector<1x4x1x8xf32> to vector<4x1x8xf32>
    %c0_98 = arith.constant 0 : index
    %c0_99 = arith.constant 0 : index
    %c0_100 = arith.constant 0 : index
    %c0_101 = arith.constant 0 : index
    %303 = vector.load %arg18[%c0_98, %c0_99, %c0_100, %c0_101] : memref<1x4x48x8xbf16, #tpu.memory_space<vmem>>, vector<1x4x48x8xbf16>
    %304 = vector.shape_cast %303 : vector<1x4x48x8xbf16> to vector<4x48x8xbf16>
    %c0_102 = arith.constant 0 : index
    %c0_103 = arith.constant 0 : index
    %c0_104 = arith.constant 0 : index
    %c0_105 = arith.constant 0 : index
    %305 = vector.load %arg20[%c0_102, %c0_103, %c0_104, %c0_105] : memref<1x4x1x8xf32, #tpu.memory_space<vmem>>, vector<1x4x1x8xf32>
    %306 = vector.shape_cast %305 : vector<1x4x1x8xf32> to vector<4x1x8xf32>
    %c0_106 = arith.constant 0 : index
    %c0_107 = arith.constant 0 : index
    %c0_108 = arith.constant 0 : index
    %c0_109 = arith.constant 0 : index
    %307 = vector.load %arg19[%c0_106, %c0_107, %c0_108, %c0_109] : memref<1x4x48x8xbf16, #tpu.memory_space<vmem>>, vector<1x4x48x8xbf16>
    %308 = vector.shape_cast %307 : vector<1x4x48x8xbf16> to vector<4x48x8xbf16>
    %c0_110 = arith.constant 0 : index
    %c0_111 = arith.constant 0 : index
    %c0_112 = arith.constant 0 : index
    %c0_113 = arith.constant 0 : index
    %309 = vector.load %arg21[%c0_110, %c0_111, %c0_112, %c0_113] : memref<1x4x1x8xf32, #tpu.memory_space<vmem>>, vector<1x4x1x8xf32>
    %310 = vector.shape_cast %309 : vector<1x4x1x8xf32> to vector<4x1x8xf32>
    %c0_114 = arith.constant 0 : index
    %c0_115 = arith.constant 0 : index
    %c0_116 = arith.constant 0 : index
    %c0_117 = arith.constant 0 : index
    %311 = vector.load %arg22[%c0_114, %c0_115, %c0_116, %c0_117] : memref<1x4x8x32xbf16, #tpu.memory_space<vmem>>, vector<1x4x8x32xbf16>
    %312 = vector.shape_cast %311 : vector<1x4x8x32xbf16> to vector<4x8x32xbf16>
    %c0_118 = arith.constant 0 : index
    %c0_119 = arith.constant 0 : index
    %c0_120 = arith.constant 0 : index
    %313 = vector.load %arg23[%c0_118, %c0_119, %c0_120] : memref<1x1x32xf32, #tpu.memory_space<vmem>>, vector<1x1x32xf32>
    %314 = vector.shape_cast %313 : vector<1x1x32xf32> to vector<1x32xf32>
    %315 = arith.truncf %297 : vector<16x32xf32> to vector<16x32xbf16>
    %316 = arith.truncf %298 : vector<16x48xf32> to vector<16x48xbf16>
    %cst_121 = arith.constant 0.000000e+00 : f32
    %317 = vector.broadcast %cst_121 : f32 to vector<16x32xf32>
    %318 = vector.extract_strided_slice %300 {offsets = [0, 0, 0], sizes = [1, 32, 8], strides = [1, 1, 1]} : vector<4x32x8xbf16> to vector<1x32x8xbf16>
    %319 = vector.shape_cast %318 : vector<1x32x8xbf16> to vector<32x8xbf16>
    %cst_122 = arith.constant dense<0.000000e+00> : vector<16x8xf32>
    %320 = tpu.matmul %315, %319, %cst_122 {dimension_numbers = #tpu.dot_dimension_numbers<[1], [0], [0], [1], [0, 0, 1, 1], [], []>} : vector<16x32xbf16>, vector<32x8xbf16>, vector<16x8xf32> -> vector<16x8xf32>
    %321 = vector.extract_strided_slice %302 {offsets = [0, 0, 0], sizes = [1, 1, 8], strides = [1, 1, 1]} : vector<4x1x8xf32> to vector<1x1x8xf32>
    %322 = vector.shape_cast %321 : vector<1x1x8xf32> to vector<1x8xf32>
    %323 = vector.broadcast %322 : vector<1x8xf32> to vector<16x8xf32>
    %324 = arith.addf %320, %323 : vector<16x8xf32>
    %325 = vector.extract_strided_slice %304 {offsets = [0, 0, 0], sizes = [1, 48, 8], strides = [1, 1, 1]} : vector<4x48x8xbf16> to vector<1x48x8xbf16>
    %326 = vector.shape_cast %325 : vector<1x48x8xbf16> to vector<48x8xbf16>
    %cst_123 = arith.constant dense<0.000000e+00> : vector<16x8xf32>
    %327 = tpu.matmul %316, %326, %cst_123 {dimension_numbers = #tpu.dot_dimension_numbers<[1], [0], [0], [1], [0, 0, 1, 1], [], []>} : vector<16x48xbf16>, vector<48x8xbf16>, vector<16x8xf32> -> vector<16x8xf32>
    %328 = vector.extract_strided_slice %306 {offsets = [0, 0, 0], sizes = [1, 1, 8], strides = [1, 1, 1]} : vector<4x1x8xf32> to vector<1x1x8xf32>
    %329 = vector.shape_cast %328 : vector<1x1x8xf32> to vector<1x8xf32>
    %330 = vector.broadcast %329 : vector<1x8xf32> to vector<16x8xf32>
    %331 = arith.addf %327, %330 : vector<16x8xf32>
    %332 = vector.extract_strided_slice %308 {offsets = [0, 0, 0], sizes = [1, 48, 8], strides = [1, 1, 1]} : vector<4x48x8xbf16> to vector<1x48x8xbf16>
    %333 = vector.shape_cast %332 : vector<1x48x8xbf16> to vector<48x8xbf16>
    %cst_124 = arith.constant dense<0.000000e+00> : vector<16x8xf32>
    %334 = tpu.matmul %316, %333, %cst_124 {dimension_numbers = #tpu.dot_dimension_numbers<[1], [0], [0], [1], [0, 0, 1, 1], [], []>} : vector<16x48xbf16>, vector<48x8xbf16>, vector<16x8xf32> -> vector<16x8xf32>
    %335 = vector.extract_strided_slice %310 {offsets = [0, 0, 0], sizes = [1, 1, 8], strides = [1, 1, 1]} : vector<4x1x8xf32> to vector<1x1x8xf32>
    %336 = vector.shape_cast %335 : vector<1x1x8xf32> to vector<1x8xf32>
    %337 = vector.broadcast %336 : vector<1x8xf32> to vector<16x8xf32>
    %338 = arith.addf %334, %337 : vector<16x8xf32>
    %cst_125 = arith.constant 0.353553385 : f32
    %339 = vector.broadcast %cst_125 : f32 to vector<16x8xf32>
    %340 = arith.mulf %324, %339 : vector<16x8xf32>
    %341 = arith.truncf %340 : vector<16x8xf32> to vector<16x8xbf16>
    %342 = vector.shape_cast %341 : vector<16x8xbf16> to vector<2x8x8xbf16>
    %343 = arith.truncf %331 : vector<16x8xf32> to vector<16x8xbf16>
    %344 = vector.shape_cast %343 : vector<16x8xbf16> to vector<2x8x8xbf16>
    %345 = arith.truncf %338 : vector<16x8xf32> to vector<16x8xbf16>
    %346 = vector.shape_cast %345 : vector<16x8xbf16> to vector<2x8x8xbf16>
    "tpu.trace_start"() <{level = 10 : i32, message = "bqd,bkd->bqk"}> : () -> ()
    %cst_126 = arith.constant dense<0.000000e+00> : vector<2x8x8xf32>
    %347 = tpu.matmul %342, %344, %cst_126 {dimension_numbers = #tpu.dot_dimension_numbers<[2], [2], [1], [1], [0, 0, 0, 1, 1, 1], [0], [0]>} : vector<2x8x8xbf16>, vector<2x8x8xbf16>, vector<2x8x8xf32> -> vector<2x8x8xf32>
    "tpu.trace_stop"() : () -> ()
    %cst_127 = arith.constant dense<0xFF800000> : vector<2x8xf32>
    %348 = vector.multi_reduction <maximumf>, %347, %cst_127 [2] : vector<2x8x8xf32> to vector<2x8xf32>
    %349 = vector.shape_cast %348 : vector<2x8xf32> to vector<2x8x1xf32>
    %350 = vector.broadcast %349 : vector<2x8x1xf32> to vector<2x8x8xf32>
    %351 = arith.subf %347, %350 : vector<2x8x8xf32>
    %352 = math.exp %351 : vector<2x8x8xf32>
    %cst_128 = arith.constant dense<0.000000e+00> : vector<2x8xf32>
    %353 = vector.multi_reduction <add>, %352, %cst_128 [2] : vector<2x8x8xf32> to vector<2x8xf32>
    %354 = vector.shape_cast %353 : vector<2x8xf32> to vector<2x8x1xf32>
    %355 = tpu.reciprocal %354 {approx = true} : vector<2x8x1xf32> -> vector<2x8x1xf32>
    %356 = vector.broadcast %355 : vector<2x8x1xf32> to vector<2x8x8xf32>
    %357 = arith.mulf %352, %356 : vector<2x8x8xf32>
    %358 = arith.truncf %357 : vector<2x8x8xf32> to vector<2x8x8xbf16>
    "tpu.trace_start"() <{level = 10 : i32, message = "bqk,bkd->bqd"}> : () -> ()
    %cst_129 = arith.constant dense<0.000000e+00> : vector<2x8x8xf32>
    %359 = tpu.matmul %358, %346, %cst_129 {dimension_numbers = #tpu.dot_dimension_numbers<[2], [1], [1], [2], [0, 0, 0, 1, 1, 2], [0], [0]>} : vector<2x8x8xbf16>, vector<2x8x8xbf16>, vector<2x8x8xf32> -> vector<2x8x8xf32>
    "tpu.trace_stop"() : () -> ()
    %360 = vector.shape_cast %359 : vector<2x8x8xf32> to vector<16x8xf32>
    %361 = arith.truncf %360 : vector<16x8xf32> to vector<16x8xbf16>
    %362 = vector.extract_strided_slice %312 {offsets = [0, 0, 0], sizes = [1, 8, 32], strides = [1, 1, 1]} : vector<4x8x32xbf16> to vector<1x8x32xbf16>
    %363 = vector.shape_cast %362 : vector<1x8x32xbf16> to vector<8x32xbf16>
    %cst_130 = arith.constant dense<0.000000e+00> : vector<16x32xf32>
    %364 = tpu.matmul %361, %363, %cst_130 {dimension_numbers = #tpu.dot_dimension_numbers<[1], [0], [0], [1], [0, 0, 1, 1], [], []>} : vector<16x8xbf16>, vector<8x32xbf16>, vector<16x32xf32> -> vector<16x32xf32>
    %365 = arith.addf %317, %364 : vector<16x32xf32>
    %366 = vector.extract_strided_slice %300 {offsets = [1, 0, 0], sizes = [1, 32, 8], strides = [1, 1, 1]} : vector<4x32x8xbf16> to vector<1x32x8xbf16>
    %367 = vector.shape_cast %366 : vector<1x32x8xbf16> to vector<32x8xbf16>
    %cst_131 = arith.constant dense<0.000000e+00> : vector<16x8xf32>
    %368 = tpu.matmul %315, %367, %cst_131 {dimension_numbers = #tpu.dot_dimension_numbers<[1], [0], [0], [1], [0, 0, 1, 1], [], []>} : vector<16x32xbf16>, vector<32x8xbf16>, vector<16x8xf32> -> vector<16x8xf32>
    %369 = vector.extract_strided_slice %302 {offsets = [1, 0, 0], sizes = [1, 1, 8], strides = [1, 1, 1]} : vector<4x1x8xf32> to vector<1x1x8xf32>
    %370 = vector.shape_cast %369 : vector<1x1x8xf32> to vector<1x8xf32>
    %371 = vector.broadcast %370 : vector<1x8xf32> to vector<16x8xf32>
    %372 = arith.addf %368, %371 : vector<16x8xf32>
    %373 = vector.extract_strided_slice %304 {offsets = [1, 0, 0], sizes = [1, 48, 8], strides = [1, 1, 1]} : vector<4x48x8xbf16> to vector<1x48x8xbf16>
    %374 = vector.shape_cast %373 : vector<1x48x8xbf16> to vector<48x8xbf16>
    %cst_132 = arith.constant dense<0.000000e+00> : vector<16x8xf32>
    %375 = tpu.matmul %316, %374, %cst_132 {dimension_numbers = #tpu.dot_dimension_numbers<[1], [0], [0], [1], [0, 0, 1, 1], [], []>} : vector<16x48xbf16>, vector<48x8xbf16>, vector<16x8xf32> -> vector<16x8xf32>
    %376 = vector.extract_strided_slice %306 {offsets = [1, 0, 0], sizes = [1, 1, 8], strides = [1, 1, 1]} : vector<4x1x8xf32> to vector<1x1x8xf32>
    %377 = vector.shape_cast %376 : vector<1x1x8xf32> to vector<1x8xf32>
    %378 = vector.broadcast %377 : vector<1x8xf32> to vector<16x8xf32>
    %379 = arith.addf %375, %378 : vector<16x8xf32>
    %380 = vector.extract_strided_slice %308 {offsets = [1, 0, 0], sizes = [1, 48, 8], strides = [1, 1, 1]} : vector<4x48x8xbf16> to vector<1x48x8xbf16>
    %381 = vector.shape_cast %380 : vector<1x48x8xbf16> to vector<48x8xbf16>
    %cst_133 = arith.constant dense<0.000000e+00> : vector<16x8xf32>
    %382 = tpu.matmul %316, %381, %cst_133 {dimension_numbers = #tpu.dot_dimension_numbers<[1], [0], [0], [1], [0, 0, 1, 1], [], []>} : vector<16x48xbf16>, vector<48x8xbf16>, vector<16x8xf32> -> vector<16x8xf32>
    %383 = vector.extract_strided_slice %310 {offsets = [1, 0, 0], sizes = [1, 1, 8], strides = [1, 1, 1]} : vector<4x1x8xf32> to vector<1x1x8xf32>
    %384 = vector.shape_cast %383 : vector<1x1x8xf32> to vector<1x8xf32>
    %385 = vector.broadcast %384 : vector<1x8xf32> to vector<16x8xf32>
    %386 = arith.addf %382, %385 : vector<16x8xf32>
    %cst_134 = arith.constant 0.353553385 : f32
    %387 = vector.broadcast %cst_134 : f32 to vector<16x8xf32>
    %388 = arith.mulf %372, %387 : vector<16x8xf32>
    %389 = arith.truncf %388 : vector<16x8xf32> to vector<16x8xbf16>
    %390 = vector.shape_cast %389 : vector<16x8xbf16> to vector<2x8x8xbf16>
    %391 = arith.truncf %379 : vector<16x8xf32> to vector<16x8xbf16>
    %392 = vector.shape_cast %391 : vector<16x8xbf16> to vector<2x8x8xbf16>
    %393 = arith.truncf %386 : vector<16x8xf32> to vector<16x8xbf16>
    %394 = vector.shape_cast %393 : vector<16x8xbf16> to vector<2x8x8xbf16>
    "tpu.trace_start"() <{level = 10 : i32, message = "bqd,bkd->bqk"}> : () -> ()
    %cst_135 = arith.constant dense<0.000000e+00> : vector<2x8x8xf32>
    %395 = tpu.matmul %390, %392, %cst_135 {dimension_numbers = #tpu.dot_dimension_numbers<[2], [2], [1], [1], [0, 0, 0, 1, 1, 1], [0], [0]>} : vector<2x8x8xbf16>, vector<2x8x8xbf16>, vector<2x8x8xf32> -> vector<2x8x8xf32>
    "tpu.trace_stop"() : () -> ()
    %cst_136 = arith.constant dense<0xFF800000> : vector<2x8xf32>
    %396 = vector.multi_reduction <maximumf>, %395, %cst_136 [2] : vector<2x8x8xf32> to vector<2x8xf32>
    %397 = vector.shape_cast %396 : vector<2x8xf32> to vector<2x8x1xf32>
    %398 = vector.broadcast %397 : vector<2x8x1xf32> to vector<2x8x8xf32>
    %399 = arith.subf %395, %398 : vector<2x8x8xf32>
    %400 = math.exp %399 : vector<2x8x8xf32>
    %cst_137 = arith.constant dense<0.000000e+00> : vector<2x8xf32>
    %401 = vector.multi_reduction <add>, %400, %cst_137 [2] : vector<2x8x8xf32> to vector<2x8xf32>
    %402 = vector.shape_cast %401 : vector<2x8xf32> to vector<2x8x1xf32>
    %403 = tpu.reciprocal %402 {approx = true} : vector<2x8x1xf32> -> vector<2x8x1xf32>
    %404 = vector.broadcast %403 : vector<2x8x1xf32> to vector<2x8x8xf32>
    %405 = arith.mulf %400, %404 : vector<2x8x8xf32>
    %406 = arith.truncf %405 : vector<2x8x8xf32> to vector<2x8x8xbf16>
    "tpu.trace_start"() <{level = 10 : i32, message = "bqk,bkd->bqd"}> : () -> ()
    %cst_138 = arith.constant dense<0.000000e+00> : vector<2x8x8xf32>
    %407 = tpu.matmul %406, %394, %cst_138 {dimension_numbers = #tpu.dot_dimension_numbers<[2], [1], [1], [2], [0, 0, 0, 1, 1, 2], [0], [0]>} : vector<2x8x8xbf16>, vector<2x8x8xbf16>, vector<2x8x8xf32> -> vector<2x8x8xf32>
    "tpu.trace_stop"() : () -> ()
    %408 = vector.shape_cast %407 : vector<2x8x8xf32> to vector<16x8xf32>
    %409 = arith.truncf %408 : vector<16x8xf32> to vector<16x8xbf16>
    %410 = vector.extract_strided_slice %312 {offsets = [1, 0, 0], sizes = [1, 8, 32], strides = [1, 1, 1]} : vector<4x8x32xbf16> to vector<1x8x32xbf16>
    %411 = vector.shape_cast %410 : vector<1x8x32xbf16> to vector<8x32xbf16>
    %cst_139 = arith.constant dense<0.000000e+00> : vector<16x32xf32>
    %412 = tpu.matmul %409, %411, %cst_139 {dimension_numbers = #tpu.dot_dimension_numbers<[1], [0], [0], [1], [0, 0, 1, 1], [], []>} : vector<16x8xbf16>, vector<8x32xbf16>, vector<16x32xf32> -> vector<16x32xf32>
    %413 = arith.addf %365, %412 : vector<16x32xf32>
    %414 = vector.extract_strided_slice %300 {offsets = [2, 0, 0], sizes = [1, 32, 8], strides = [1, 1, 1]} : vector<4x32x8xbf16> to vector<1x32x8xbf16>
    %415 = vector.shape_cast %414 : vector<1x32x8xbf16> to vector<32x8xbf16>
    %cst_140 = arith.constant dense<0.000000e+00> : vector<16x8xf32>
    %416 = tpu.matmul %315, %415, %cst_140 {dimension_numbers = #tpu.dot_dimension_numbers<[1], [0], [0], [1], [0, 0, 1, 1], [], []>} : vector<16x32xbf16>, vector<32x8xbf16>, vector<16x8xf32> -> vector<16x8xf32>
    %417 = vector.extract_strided_slice %302 {offsets = [2, 0, 0], sizes = [1, 1, 8], strides = [1, 1, 1]} : vector<4x1x8xf32> to vector<1x1x8xf32>
    %418 = vector.shape_cast %417 : vector<1x1x8xf32> to vector<1x8xf32>
    %419 = vector.broadcast %418 : vector<1x8xf32> to vector<16x8xf32>
    %420 = arith.addf %416, %419 : vector<16x8xf32>
    %421 = vector.extract_strided_slice %304 {offsets = [2, 0, 0], sizes = [1, 48, 8], strides = [1, 1, 1]} : vector<4x48x8xbf16> to vector<1x48x8xbf16>
    %422 = vector.shape_cast %421 : vector<1x48x8xbf16> to vector<48x8xbf16>
    %cst_141 = arith.constant dense<0.000000e+00> : vector<16x8xf32>
    %423 = tpu.matmul %316, %422, %cst_141 {dimension_numbers = #tpu.dot_dimension_numbers<[1], [0], [0], [1], [0, 0, 1, 1], [], []>} : vector<16x48xbf16>, vector<48x8xbf16>, vector<16x8xf32> -> vector<16x8xf32>
    %424 = vector.extract_strided_slice %306 {offsets = [2, 0, 0], sizes = [1, 1, 8], strides = [1, 1, 1]} : vector<4x1x8xf32> to vector<1x1x8xf32>
    %425 = vector.shape_cast %424 : vector<1x1x8xf32> to vector<1x8xf32>
    %426 = vector.broadcast %425 : vector<1x8xf32> to vector<16x8xf32>
    %427 = arith.addf %423, %426 : vector<16x8xf32>
    %428 = vector.extract_strided_slice %308 {offsets = [2, 0, 0], sizes = [1, 48, 8], strides = [1, 1, 1]} : vector<4x48x8xbf16> to vector<1x48x8xbf16>
    %429 = vector.shape_cast %428 : vector<1x48x8xbf16> to vector<48x8xbf16>
    %cst_142 = arith.constant dense<0.000000e+00> : vector<16x8xf32>
    %430 = tpu.matmul %316, %429, %cst_142 {dimension_numbers = #tpu.dot_dimension_numbers<[1], [0], [0], [1], [0, 0, 1, 1], [], []>} : vector<16x48xbf16>, vector<48x8xbf16>, vector<16x8xf32> -> vector<16x8xf32>
    %431 = vector.extract_strided_slice %310 {offsets = [2, 0, 0], sizes = [1, 1, 8], strides = [1, 1, 1]} : vector<4x1x8xf32> to vector<1x1x8xf32>
    %432 = vector.shape_cast %431 : vector<1x1x8xf32> to vector<1x8xf32>
    %433 = vector.broadcast %432 : vector<1x8xf32> to vector<16x8xf32>
    %434 = arith.addf %430, %433 : vector<16x8xf32>
    %cst_143 = arith.constant 0.353553385 : f32
    %435 = vector.broadcast %cst_143 : f32 to vector<16x8xf32>
    %436 = arith.mulf %420, %435 : vector<16x8xf32>
    %437 = arith.truncf %436 : vector<16x8xf32> to vector<16x8xbf16>
    %438 = vector.shape_cast %437 : vector<16x8xbf16> to vector<2x8x8xbf16>
    %439 = arith.truncf %427 : vector<16x8xf32> to vector<16x8xbf16>
    %440 = vector.shape_cast %439 : vector<16x8xbf16> to vector<2x8x8xbf16>
    %441 = arith.truncf %434 : vector<16x8xf32> to vector<16x8xbf16>
    %442 = vector.shape_cast %441 : vector<16x8xbf16> to vector<2x8x8xbf16>
    "tpu.trace_start"() <{level = 10 : i32, message = "bqd,bkd->bqk"}> : () -> ()
    %cst_144 = arith.constant dense<0.000000e+00> : vector<2x8x8xf32>
    %443 = tpu.matmul %438, %440, %cst_144 {dimension_numbers = #tpu.dot_dimension_numbers<[2], [2], [1], [1], [0, 0, 0, 1, 1, 1], [0], [0]>} : vector<2x8x8xbf16>, vector<2x8x8xbf16>, vector<2x8x8xf32> -> vector<2x8x8xf32>
    "tpu.trace_stop"() : () -> ()
    %cst_145 = arith.constant dense<0xFF800000> : vector<2x8xf32>
    %444 = vector.multi_reduction <maximumf>, %443, %cst_145 [2] : vector<2x8x8xf32> to vector<2x8xf32>
    %445 = vector.shape_cast %444 : vector<2x8xf32> to vector<2x8x1xf32>
    %446 = vector.broadcast %445 : vector<2x8x1xf32> to vector<2x8x8xf32>
    %447 = arith.subf %443, %446 : vector<2x8x8xf32>
    %448 = math.exp %447 : vector<2x8x8xf32>
    %cst_146 = arith.constant dense<0.000000e+00> : vector<2x8xf32>
    %449 = vector.multi_reduction <add>, %448, %cst_146 [2] : vector<2x8x8xf32> to vector<2x8xf32>
    %450 = vector.shape_cast %449 : vector<2x8xf32> to vector<2x8x1xf32>
    %451 = tpu.reciprocal %450 {approx = true} : vector<2x8x1xf32> -> vector<2x8x1xf32>
    %452 = vector.broadcast %451 : vector<2x8x1xf32> to vector<2x8x8xf32>
    %453 = arith.mulf %448, %452 : vector<2x8x8xf32>
    %454 = arith.truncf %453 : vector<2x8x8xf32> to vector<2x8x8xbf16>
    "tpu.trace_start"() <{level = 10 : i32, message = "bqk,bkd->bqd"}> : () -> ()
    %cst_147 = arith.constant dense<0.000000e+00> : vector<2x8x8xf32>
    %455 = tpu.matmul %454, %442, %cst_147 {dimension_numbers = #tpu.dot_dimension_numbers<[2], [1], [1], [2], [0, 0, 0, 1, 1, 2], [0], [0]>} : vector<2x8x8xbf16>, vector<2x8x8xbf16>, vector<2x8x8xf32> -> vector<2x8x8xf32>
    "tpu.trace_stop"() : () -> ()
    %456 = vector.shape_cast %455 : vector<2x8x8xf32> to vector<16x8xf32>
    %457 = arith.truncf %456 : vector<16x8xf32> to vector<16x8xbf16>
    %458 = vector.extract_strided_slice %312 {offsets = [2, 0, 0], sizes = [1, 8, 32], strides = [1, 1, 1]} : vector<4x8x32xbf16> to vector<1x8x32xbf16>
    %459 = vector.shape_cast %458 : vector<1x8x32xbf16> to vector<8x32xbf16>
    %cst_148 = arith.constant dense<0.000000e+00> : vector<16x32xf32>
    %460 = tpu.matmul %457, %459, %cst_148 {dimension_numbers = #tpu.dot_dimension_numbers<[1], [0], [0], [1], [0, 0, 1, 1], [], []>} : vector<16x8xbf16>, vector<8x32xbf16>, vector<16x32xf32> -> vector<16x32xf32>
    %461 = arith.addf %413, %460 : vector<16x32xf32>
    %462 = vector.extract_strided_slice %300 {offsets = [3, 0, 0], sizes = [1, 32, 8], strides = [1, 1, 1]} : vector<4x32x8xbf16> to vector<1x32x8xbf16>
    %463 = vector.shape_cast %462 : vector<1x32x8xbf16> to vector<32x8xbf16>
    %cst_149 = arith.constant dense<0.000000e+00> : vector<16x8xf32>
    %464 = tpu.matmul %315, %463, %cst_149 {dimension_numbers = #tpu.dot_dimension_numbers<[1], [0], [0], [1], [0, 0, 1, 1], [], []>} : vector<16x32xbf16>, vector<32x8xbf16>, vector<16x8xf32> -> vector<16x8xf32>
    %465 = vector.extract_strided_slice %302 {offsets = [3, 0, 0], sizes = [1, 1, 8], strides = [1, 1, 1]} : vector<4x1x8xf32> to vector<1x1x8xf32>
    %466 = vector.shape_cast %465 : vector<1x1x8xf32> to vector<1x8xf32>
    %467 = vector.broadcast %466 : vector<1x8xf32> to vector<16x8xf32>
    %468 = arith.addf %464, %467 : vector<16x8xf32>
    %469 = vector.extract_strided_slice %304 {offsets = [3, 0, 0], sizes = [1, 48, 8], strides = [1, 1, 1]} : vector<4x48x8xbf16> to vector<1x48x8xbf16>
    %470 = vector.shape_cast %469 : vector<1x48x8xbf16> to vector<48x8xbf16>
    %cst_150 = arith.constant dense<0.000000e+00> : vector<16x8xf32>
    %471 = tpu.matmul %316, %470, %cst_150 {dimension_numbers = #tpu.dot_dimension_numbers<[1], [0], [0], [1], [0, 0, 1, 1], [], []>} : vector<16x48xbf16>, vector<48x8xbf16>, vector<16x8xf32> -> vector<16x8xf32>
    %472 = vector.extract_strided_slice %306 {offsets = [3, 0, 0], sizes = [1, 1, 8], strides = [1, 1, 1]} : vector<4x1x8xf32> to vector<1x1x8xf32>
    %473 = vector.shape_cast %472 : vector<1x1x8xf32> to vector<1x8xf32>
    %474 = vector.broadcast %473 : vector<1x8xf32> to vector<16x8xf32>
    %475 = arith.addf %471, %474 : vector<16x8xf32>
    %476 = vector.extract_strided_slice %308 {offsets = [3, 0, 0], sizes = [1, 48, 8], strides = [1, 1, 1]} : vector<4x48x8xbf16> to vector<1x48x8xbf16>
    %477 = vector.shape_cast %476 : vector<1x48x8xbf16> to vector<48x8xbf16>
    %cst_151 = arith.constant dense<0.000000e+00> : vector<16x8xf32>
    %478 = tpu.matmul %316, %477, %cst_151 {dimension_numbers = #tpu.dot_dimension_numbers<[1], [0], [0], [1], [0, 0, 1, 1], [], []>} : vector<16x48xbf16>, vector<48x8xbf16>, vector<16x8xf32> -> vector<16x8xf32>
    %479 = vector.extract_strided_slice %310 {offsets = [3, 0, 0], sizes = [1, 1, 8], strides = [1, 1, 1]} : vector<4x1x8xf32> to vector<1x1x8xf32>
    %480 = vector.shape_cast %479 : vector<1x1x8xf32> to vector<1x8xf32>
    %481 = vector.broadcast %480 : vector<1x8xf32> to vector<16x8xf32>
    %482 = arith.addf %478, %481 : vector<16x8xf32>
    %cst_152 = arith.constant 0.353553385 : f32
    %483 = vector.broadcast %cst_152 : f32 to vector<16x8xf32>
    %484 = arith.mulf %468, %483 : vector<16x8xf32>
    %485 = arith.truncf %484 : vector<16x8xf32> to vector<16x8xbf16>
    %486 = vector.shape_cast %485 : vector<16x8xbf16> to vector<2x8x8xbf16>
    %487 = arith.truncf %475 : vector<16x8xf32> to vector<16x8xbf16>
    %488 = vector.shape_cast %487 : vector<16x8xbf16> to vector<2x8x8xbf16>
    %489 = arith.truncf %482 : vector<16x8xf32> to vector<16x8xbf16>
    %490 = vector.shape_cast %489 : vector<16x8xbf16> to vector<2x8x8xbf16>
    "tpu.trace_start"() <{level = 10 : i32, message = "bqd,bkd->bqk"}> : () -> ()
    %cst_153 = arith.constant dense<0.000000e+00> : vector<2x8x8xf32>
    %491 = tpu.matmul %486, %488, %cst_153 {dimension_numbers = #tpu.dot_dimension_numbers<[2], [2], [1], [1], [0, 0, 0, 1, 1, 1], [0], [0]>} : vector<2x8x8xbf16>, vector<2x8x8xbf16>, vector<2x8x8xf32> -> vector<2x8x8xf32>
    "tpu.trace_stop"() : () -> ()
    %cst_154 = arith.constant dense<0xFF800000> : vector<2x8xf32>
    %492 = vector.multi_reduction <maximumf>, %491, %cst_154 [2] : vector<2x8x8xf32> to vector<2x8xf32>
    %493 = vector.shape_cast %492 : vector<2x8xf32> to vector<2x8x1xf32>
    %494 = vector.broadcast %493 : vector<2x8x1xf32> to vector<2x8x8xf32>
    %495 = arith.subf %491, %494 : vector<2x8x8xf32>
    %496 = math.exp %495 : vector<2x8x8xf32>
    %cst_155 = arith.constant dense<0.000000e+00> : vector<2x8xf32>
    %497 = vector.multi_reduction <add>, %496, %cst_155 [2] : vector<2x8x8xf32> to vector<2x8xf32>
    %498 = vector.shape_cast %497 : vector<2x8xf32> to vector<2x8x1xf32>
    %499 = tpu.reciprocal %498 {approx = true} : vector<2x8x1xf32> -> vector<2x8x1xf32>
    %500 = vector.broadcast %499 : vector<2x8x1xf32> to vector<2x8x8xf32>
    %501 = arith.mulf %496, %500 : vector<2x8x8xf32>
    %502 = arith.truncf %501 : vector<2x8x8xf32> to vector<2x8x8xbf16>
    "tpu.trace_start"() <{level = 10 : i32, message = "bqk,bkd->bqd"}> : () -> ()
    %cst_156 = arith.constant dense<0.000000e+00> : vector<2x8x8xf32>
    %503 = tpu.matmul %502, %490, %cst_156 {dimension_numbers = #tpu.dot_dimension_numbers<[2], [1], [1], [2], [0, 0, 0, 1, 1, 2], [0], [0]>} : vector<2x8x8xbf16>, vector<2x8x8xbf16>, vector<2x8x8xf32> -> vector<2x8x8xf32>
    "tpu.trace_stop"() : () -> ()
    %504 = vector.shape_cast %503 : vector<2x8x8xf32> to vector<16x8xf32>
    %505 = arith.truncf %504 : vector<16x8xf32> to vector<16x8xbf16>
    %506 = vector.extract_strided_slice %312 {offsets = [3, 0, 0], sizes = [1, 8, 32], strides = [1, 1, 1]} : vector<4x8x32xbf16> to vector<1x8x32xbf16>
    %507 = vector.shape_cast %506 : vector<1x8x32xbf16> to vector<8x32xbf16>
    %cst_157 = arith.constant dense<0.000000e+00> : vector<16x32xf32>
    %508 = tpu.matmul %505, %507, %cst_157 {dimension_numbers = #tpu.dot_dimension_numbers<[1], [0], [0], [1], [0, 0, 1, 1], [], []>} : vector<16x8xbf16>, vector<8x32xbf16>, vector<16x32xf32> -> vector<16x32xf32>
    %509 = arith.addf %461, %508 : vector<16x32xf32>
    %510 = vector.broadcast %314 : vector<1x32xf32> to vector<16x32xf32>
    %511 = arith.addf %509, %510 : vector<16x32xf32>
    %512 = vector.shape_cast %297 : vector<16x32xf32> to vector<2x8x32xf32>
    %513 = vector.shape_cast %511 : vector<16x32xf32> to vector<2x8x32xf32>
    %514 = vector.broadcast %24 : vector<2x1x32xf32> to vector<2x8x32xf32>
    %515 = arith.mulf %514, %513 : vector<2x8x32xf32>
    %516 = arith.addf %512, %515 : vector<2x8x32xf32>
    %517 = vector.shape_cast %516 : vector<2x8x32xf32> to vector<16x32xf32>
    %518 = vector.shape_cast %517 : vector<16x32xf32> to vector<2x8x32xf32>
    %cst_158 = arith.constant dense<0.000000e+00> : vector<2x8xf32>
    %519 = vector.multi_reduction <add>, %518, %cst_158 [2] : vector<2x8x32xf32> to vector<2x8xf32>
    %520 = vector.shape_cast %519 : vector<2x8xf32> to vector<2x8x1xf32>
    %cst_159 = arith.constant 3.200000e+01 : f32
    %521 = vector.broadcast %cst_159 : f32 to vector<2x8x1xf32>
    %522 = arith.divf %520, %521 : vector<2x8x1xf32>
    %523 = vector.broadcast %522 : vector<2x8x1xf32> to vector<2x8x32xf32>
    %524 = arith.subf %518, %523 : vector<2x8x32xf32>
    %525 = arith.mulf %524, %524 : vector<2x8x32xf32>
    %cst_160 = arith.constant dense<0.000000e+00> : vector<2x8xf32>
    %526 = vector.multi_reduction <add>, %525, %cst_160 [2] : vector<2x8x32xf32> to vector<2x8xf32>
    %527 = vector.shape_cast %526 : vector<2x8xf32> to vector<2x8x1xf32>
    %cst_161 = arith.constant 3.200000e+01 : f32
    %528 = vector.broadcast %cst_161 : f32 to vector<2x8x1xf32>
    %529 = arith.divf %527, %528 : vector<2x8x1xf32>
    %530 = vector.broadcast %522 : vector<2x8x1xf32> to vector<2x8x32xf32>
    %531 = arith.subf %518, %530 : vector<2x8x32xf32>
    %cst_162 = arith.constant 9.99999974E-6 : f32
    %532 = vector.broadcast %cst_162 : f32 to vector<2x8x1xf32>
    %533 = arith.addf %529, %532 : vector<2x8x1xf32>
    %534 = math.rsqrt %533 : vector<2x8x1xf32>
    %535 = vector.broadcast %534 : vector<2x8x1xf32> to vector<2x8x32xf32>
    %536 = arith.mulf %531, %535 : vector<2x8x32xf32>
    %537 = vector.broadcast %26 : vector<2x1x32xf32> to vector<2x8x32xf32>
    %538 = arith.mulf %536, %537 : vector<2x8x32xf32>
    %539 = vector.broadcast %28 : vector<2x1x32xf32> to vector<2x8x32xf32>
    %540 = arith.addf %538, %539 : vector<2x8x32xf32>
    %541 = vector.shape_cast %540 : vector<2x8x32xf32> to vector<16x32xf32>
    %542 = arith.truncf %541 : vector<16x32xf32> to vector<16x32xbf16>
    %c0_163 = arith.constant 0 : index
    %c0_164 = arith.constant 0 : index
    %c0_165 = arith.constant 0 : index
    %543 = vector.load %arg24[%c0_163, %c0_164, %c0_165] : memref<1x32x64xbf16, #tpu.memory_space<vmem>>, vector<1x32x64xbf16>
    %544 = vector.shape_cast %543 : vector<1x32x64xbf16> to vector<32x64xbf16>
    %cst_166 = arith.constant dense<0.000000e+00> : vector<16x64xf32>
    %545 = tpu.matmul %542, %544, %cst_166 {dimension_numbers = #tpu.dot_dimension_numbers<[1], [0], [0], [1], [0, 0, 1, 1], [], []>} : vector<16x32xbf16>, vector<32x64xbf16>, vector<16x64xf32> -> vector<16x64xf32>
    %c0_167 = arith.constant 0 : index
    %c0_168 = arith.constant 0 : index
    %c0_169 = arith.constant 0 : index
    %546 = vector.load %arg25[%c0_167, %c0_168, %c0_169] : memref<1x1x64xf32, #tpu.memory_space<vmem>>, vector<1x1x64xf32>
    %547 = vector.shape_cast %546 : vector<1x1x64xf32> to vector<1x64xf32>
    %548 = vector.broadcast %547 : vector<1x64xf32> to vector<16x64xf32>
    %549 = arith.addf %545, %548 : vector<16x64xf32>
    %cst_170 = arith.constant 0.000000e+00 : f32
    %550 = vector.broadcast %cst_170 : f32 to vector<16x64xf32>
    %551 = arith.maximumf %549, %550 : vector<16x64xf32>
    %552 = arith.truncf %551 : vector<16x64xf32> to vector<16x64xbf16>
    %c0_171 = arith.constant 0 : index
    %c0_172 = arith.constant 0 : index
    %c0_173 = arith.constant 0 : index
    %553 = vector.load %arg26[%c0_171, %c0_172, %c0_173] : memref<1x64x32xbf16, #tpu.memory_space<vmem>>, vector<1x64x32xbf16>
    %554 = vector.shape_cast %553 : vector<1x64x32xbf16> to vector<64x32xbf16>
    %cst_174 = arith.constant dense<0.000000e+00> : vector<16x32xf32>
    %555 = tpu.matmul %552, %554, %cst_174 {dimension_numbers = #tpu.dot_dimension_numbers<[1], [0], [0], [1], [0, 0, 1, 1], [], []>} : vector<16x64xbf16>, vector<64x32xbf16>, vector<16x32xf32> -> vector<16x32xf32>
    %c0_175 = arith.constant 0 : index
    %c0_176 = arith.constant 0 : index
    %c0_177 = arith.constant 0 : index
    %556 = vector.load %arg27[%c0_175, %c0_176, %c0_177] : memref<1x1x32xf32, #tpu.memory_space<vmem>>, vector<1x1x32xf32>
    %557 = vector.shape_cast %556 : vector<1x1x32xf32> to vector<1x32xf32>
    %558 = vector.broadcast %557 : vector<1x32xf32> to vector<16x32xf32>
    %559 = arith.addf %555, %558 : vector<16x32xf32>
    %560 = vector.shape_cast %541 : vector<16x32xf32> to vector<2x8x32xf32>
    %561 = vector.shape_cast %559 : vector<16x32xf32> to vector<2x8x32xf32>
    %562 = vector.broadcast %30 : vector<2x1x32xf32> to vector<2x8x32xf32>
    %563 = arith.mulf %562, %561 : vector<2x8x32xf32>
    %564 = arith.addf %560, %563 : vector<2x8x32xf32>
    %565 = vector.shape_cast %564 : vector<2x8x32xf32> to vector<16x32xf32>
    %c0_178 = arith.constant 0 : index
    %c0_179 = arith.constant 0 : index
    %566 = vector.load %arg28[%c0_178, %c0_179] : memref<16x32xf32, #tpu.memory_space<vmem>>, vector<16x32xf32>
    tpu.vector_store %arg28[%c0_178, %c0_179], %565 {strides = array<i32>} : memref<16x32xf32, #tpu.memory_space<vmem>>, vector<16x32xf32>,
    return
  }
  func.func @transform_0(%arg0: i32) -> (i32, i32) {
    %c0_i32 = arith.constant 0 : i32
    %c0_i32_0 = arith.constant 0 : i32
    %c0_i32_1 = arith.constant 0 : i32
    return %c0_i32, %c0_i32_0 : i32, i32
  }
  func.func @transform_1(%arg0: i32) -> (i32, i32) {
    %c0_i32 = arith.constant 0 : i32
    %c0_i32_0 = arith.constant 0 : i32
    %c0_i32_1 = arith.constant 0 : i32
    return %c0_i32, %c0_i32_0 : i32, i32
  }
  func.func @transform_2(%arg0: i32) -> (i32, i32) {
    %c0_i32 = arith.constant 0 : i32
    %c0_i32_0 = arith.constant 0 : i32
    %c0_i32_1 = arith.constant 0 : i32
    return %c0_i32, %c0_i32_0 : i32, i32
  }
  func.func @transform_3(%arg0: i32) -> (i32, i32) {
    %c0_i32 = arith.constant 0 : i32
    %c0_i32_0 = arith.constant 0 : i32
    %c0_i32_1 = arith.constant 0 : i32
    return %c0_i32, %c0_i32_0 : i32, i32
  }
  func.func @transform_4(%arg0: i32) -> (i32, i32) {
    %c0_i32 = arith.constant 0 : i32
    %c0_i32_0 = arith.constant 0 : i32
    %c0_i32_1 = arith.constant 0 : i32
    return %c0_i32, %c0_i32_0 : i32, i32
  }
  func.func @transform_5(%arg0: i32) -> (i32, i32, i32) {
    %c0_i32 = arith.constant 0 : i32
    %c0_i32_0 = arith.constant 0 : i32
    %c0_i32_1 = arith.constant 0 : i32
    return %arg0, %c0_i32, %c0_i32_0 : i32, i32, i32
  }
  func.func @transform_6(%arg0: i32) -> (i32, i32, i32) {
    %c0_i32 = arith.constant 0 : i32
    %c0_i32_0 = arith.constant 0 : i32
    %c0_i32_1 = arith.constant 0 : i32
    return %arg0, %c0_i32, %c0_i32_0 : i32, i32, i32
  }
  func.func @transform_7(%arg0: i32) -> (i32, i32, i32, i32) {
    %c0_i32 = arith.constant 0 : i32
    %c0_i32_0 = arith.constant 0 : i32
    %c0_i32_1 = arith.constant 0 : i32
    %c0_i32_2 = arith.constant 0 : i32
    return %arg0, %c0_i32, %c0_i32_0, %c0_i32_1 : i32, i32, i32, i32
  }
  func.func @transform_8(%arg0: i32) -> (i32, i32, i32, i32) {
    %c0_i32 = arith.constant 0 : i32
    %c0_i32_0 = arith.constant 0 : i32
    %c0_i32_1 = arith.constant 0 : i32
    %c0_i32_2 = arith.constant 0 : i32
    return %arg0, %c0_i32, %c0_i32_0, %c0_i32_1 : i32, i32, i32, i32
  }
  func.func @transform_9(%arg0: i32) -> (i32, i32, i32, i32) {
    %c0_i32 = arith.constant 0 : i32
    %c0_i32_0 = arith.constant 0 : i32
    %c0_i32_1 = arith.constant 0 : i32
    %c0_i32_2 = arith.constant 0 : i32
    return %arg0, %c0_i32, %c0_i32_0, %c0_i32_1 : i32, i32, i32, i32
  }
  func.func @transform_10(%arg0: i32) -> (i32, i32, i32, i32) {
    %c0_i32 = arith.constant 0 : i32
    %c0_i32_0 = arith.constant 0 : i32
    %c0_i32_1 = arith.constant 0 : i32
    %c0_i32_2 = arith.constant 0 : i32
    return %arg0, %c0_i32, %c0_i32_0, %c0_i32_1 : i32, i32, i32, i32
  }
  func.func @transform_11(%arg0: i32) -> (i32, i32, i32, i32) {
    %c0_i32 = arith.constant 0 : i32
    %c0_i32_0 = arith.constant 0 : i32
    %c0_i32_1 = arith.constant 0 : i32
    %c0_i32_2 = arith.constant 0 : i32
    return %arg0, %c0_i32, %c0_i32_0, %c0_i32_1 : i32, i32, i32, i32
  }
  func.func @transform_12(%arg0: i32) -> (i32, i32, i32, i32) {
    %c0_i32 = arith.constant 0 : i32
    %c0_i32_0 = arith.constant 0 : i32
    %c0_i32_1 = arith.constant 0 : i32
    %c0_i32_2 = arith.constant 0 : i32
    return %arg0, %c0_i32, %c0_i32_0, %c0_i32_1 : i32, i32, i32, i32
  }
  func.func @transform_13(%arg0: i32) -> (i32, i32, i32, i32) {
    %c0_i32 = arith.constant 0 : i32
    %c0_i32_0 = arith.constant 0 : i32
    %c0_i32_1 = arith.constant 0 : i32
    %c0_i32_2 = arith.constant 0 : i32
    return %arg0, %c0_i32, %c0_i32_0, %c0_i32_1 : i32, i32, i32, i32
  }
  func.func @transform_14(%arg0: i32) -> (i32, i32, i32) {
    %c0_i32 = arith.constant 0 : i32
    %c0_i32_0 = arith.constant 0 : i32
    %c0_i32_1 = arith.constant 0 : i32
    return %arg0, %c0_i32, %c0_i32_0 : i32, i32, i32
  }
  func.func @transform_15(%arg0: i32) -> (i32, i32, i32, i32) {
    %c0_i32 = arith.constant 0 : i32
    %c0_i32_0 = arith.constant 0 : i32
    %c0_i32_1 = arith.constant 0 : i32
    %c0_i32_2 = arith.constant 0 : i32
    return %arg0, %c0_i32, %c0_i32_0, %c0_i32_1 : i32, i32, i32, i32
  }
  func.func @transform_16(%arg0: i32) -> (i32, i32, i32, i32) {
    %c0_i32 = arith.constant 0 : i32
    %c0_i32_0 = arith.constant 0 : i32
    %c0_i32_1 = arith.constant 0 : i32
    %c0_i32_2 = arith.constant 0 : i32
    return %arg0, %c0_i32, %c0_i32_0, %c0_i32_1 : i32, i32, i32, i32
  }
  func.func @transform_17(%arg0: i32) -> (i32, i32, i32, i32) {
    %c0_i32 = arith.constant 0 : i32
    %c0_i32_0 = arith.constant 0 : i32
    %c0_i32_1 = arith.constant 0 : i32
    %c0_i32_2 = arith.constant 0 : i32
    return %arg0, %c0_i32, %c0_i32_0, %c0_i32_1 : i32, i32, i32, i32
  }
  func.func @transform_18(%arg0: i32) -> (i32, i32, i32, i32) {
    %c0_i32 = arith.constant 0 : i32
    %c0_i32_0 = arith.constant 0 : i32
    %c0_i32_1 = arith.constant 0 : i32
    %c0_i32_2 = arith.constant 0 : i32
    return %arg0, %c0_i32, %c0_i32_0, %c0_i32_1 : i32, i32, i32, i32
  }
  func.func @transform_19(%arg0: i32) -> (i32, i32, i32, i32) {
    %c0_i32 = arith.constant 0 : i32
    %c0_i32_0 = arith.constant 0 : i32
    %c0_i32_1 = arith.constant 0 : i32
    %c0_i32_2 = arith.constant 0 : i32
    return %arg0, %c0_i32, %c0_i32_0, %c0_i32_1 : i32, i32, i32, i32
  }
  func.func @transform_20(%arg0: i32) -> (i32, i32, i32, i32) {
    %c0_i32 = arith.constant 0 : i32
    %c0_i32_0 = arith.constant 0 : i32
    %c0_i32_1 = arith.constant 0 : i32
    %c0_i32_2 = arith.constant 0 : i32
    return %arg0, %c0_i32, %c0_i32_0, %c0_i32_1 : i32, i32, i32, i32
  }
  func.func @transform_21(%arg0: i32) -> (i32, i32, i32, i32) {
    %c0_i32 = arith.constant 0 : i32
    %c0_i32_0 = arith.constant 0 : i32
    %c0_i32_1 = arith.constant 0 : i32
    %c0_i32_2 = arith.constant 0 : i32
    return %arg0, %c0_i32, %c0_i32_0, %c0_i32_1 : i32, i32, i32, i32
  }
  func.func @transform_22(%arg0: i32) -> (i32, i32, i32) {
    %c0_i32 = arith.constant 0 : i32
    %c0_i32_0 = arith.constant 0 : i32
    %c0_i32_1 = arith.constant 0 : i32
    return %arg0, %c0_i32, %c0_i32_0 : i32, i32, i32
  }
  func.func @transform_23(%arg0: i32) -> (i32, i32, i32) {
    %c0_i32 = arith.constant 0 : i32
    %c0_i32_0 = arith.constant 0 : i32
    %c0_i32_1 = arith.constant 0 : i32
    return %arg0, %c0_i32, %c0_i32_0 : i32, i32, i32
  }
  func.func @transform_24(%arg0: i32) -> (i32, i32, i32) {
    %c0_i32 = arith.constant 0 : i32
    %c0_i32_0 = arith.constant 0 : i32
    %c0_i32_1 = arith.constant 0 : i32
    return %arg0, %c0_i32, %c0_i32_0 : i32, i32, i32
  }
  func.func @transform_25(%arg0: i32) -> (i32, i32, i32) {
    %c0_i32 = arith.constant 0 : i32
    %c0_i32_0 = arith.constant 0 : i32
    %c0_i32_1 = arith.constant 0 : i32
    return %arg0, %c0_i32, %c0_i32_0 : i32, i32, i32
  }
  func.func @transform_26(%arg0: i32) -> (i32, i32, i32) {
    %c0_i32 = arith.constant 0 : i32
    %c0_i32_0 = arith.constant 0 : i32
    %c0_i32_1 = arith.constant 0 : i32
    return %arg0, %c0_i32, %c0_i32_0 : i32, i32, i32
  }
  func.func @transform_27(%arg0: i32) -> (i32, i32) {
    %c0_i32 = arith.constant 0 : i32
    %c0_i32_0 = arith.constant 0 : i32
    %c0_i32_1 = arith.constant 0 : i32
    return %c0_i32, %c0_i32_0 : i32, i32
  }
}

</mosaic_0001>

<bundles_post_ra>
// kernel: transformer_decoder_conditional_forward.1
= control target key start
LH: loop header
LB: loop body
LE: loop exit
PB: predicated region body
PF: predicated region fallthrough
CT: control target
= control target key end

     0   :  { %s8108_s0 = inlined_call_operand.vmem [shape: f32[16,4], index: 0, kind: input, shape index: {}]   ;;  %s8109_s1 = inlined_call_operand.vmem [shape: f32[16,48], index: 1, kind: input, shape index: {}]   ;;  %s8110_s2 = inlined_call_operand.vmem [shape: f32[2,16], index: 2, kind: input, shape index: {}]   ;;  %s8111_s3 = inlined_call_operand.vmem [shape: bf16[4,32], index: 3, kind: input, shape index: {}]   ;;  %s8112_s4 = inlined_call_operand.vmem [shape: f32[1,32], index: 4, kind: input, shape index: {}]   ;;  %s8113_s5 = inlined_call_operand.vmem [shape: bf16[2,16,288], index: 5, kind: input, shape index: {}]   ;;  %s8114_s6 = inlined_call_operand.vmem [shape: f32[2,1,288], index: 6, kind: input, shape index: {}]   ;;  %s8115_s7 = inlined_call_operand.vmem [shape: bf16[2,4,32,8], index: 7, kind: input, shape index: {}]   ;;  %s8116_s8 = inlined_call_operand.vmem [shape: bf16[2,4,32,8], index: 8, kind: input, shape index: {}]   ;;  %s8117_s9 = inlined_call_operand.vmem [shape: bf16[2,4,32,8], index: 9, kind: input, shape index: {}]   ;;  %s8118_s10 = inlined_call_operand.vmem [shape: f32[2,4,1,8], index: 10, kind: input, shape index: {}]   ;;  %s8119_s11 = inlined_call_operand.vmem [shape: f32[2,4,1,8], index: 11, kind: input, shape index: {}]   ;;  %s8120_s12 = inlined_call_operand.vmem [shape: f32[2,4,1,8], index: 12, kind: input, shape index: {}]   ;;  %s8121_s13 = inlined_call_operand.vmem [shape: bf16[2,4,8,32], index: 13, kind: input, shape index: {}]   ;;  %s8122_s14 = inlined_call_operand.vmem [shape: f32[2,1,32], index: 14, kind: input, shape index: {}]   ;;  %s8123_s15 = inlined_call_operand.vmem [shape: bf16[2,4,32,8], index: 15, kind: input, shape index: {}]   ;;  %s8124_s16 = inlined_call_operand.vmem [shape: f32[2,4,1,8], index: 16, kind: input, shape index: {}]   ;;  %s8125_s17 = inlined_call_operand.vmem [shape: bf16[2,4,48,8], index: 17, kind: input, shape index: {}]   ;;  %s8126_s18 = inlined_call_operand.vmem [shape: bf16[2,4,48,8], index: 18, kind: input, shape index: {}]   ;;  %s8127_s19 = inlined_call_operand.vmem [shape: f32[2,4,1,8], index: 19, kind: input, shape index: {}]   ;;  %s8128_s20 = inlined_call_operand.vmem [shape: f32[2,4,1,8], index: 20, kind: input, shape index: {}]   ;;  %s8129_s21 = inlined_call_operand.vmem [shape: bf16[2,4,8,32], index: 21, kind: input, shape index: {}]   ;;  %s8130_s22 = inlined_call_operand.vmem [shape: f32[2,1,32], index: 22, kind: input, shape index: {}]   ;;  %s8131_s23 = inlined_call_operand.vmem [shape: bf16[2,32,64], index: 23, kind: input, shape index: {}]   ;;  %s8132_s24 = inlined_call_operand.vmem [shape: f32[2,1,64], index: 24, kind: input, shape index: {}]   ;;  %s8133_s25 = inlined_call_operand.vmem [shape: bf16[2,64,32], index: 25, kind: input, shape index: {}]   ;;  %s8134_s26 = inlined_call_operand.vmem [shape: f32[2,1,32], index: 26, kind: input, shape index: {}]   ;;  %s8135_s27 = inlined_call_operand.hbm [shape: f32[16,32], index: 27, kind: output, shape index: {}]  }
   0x1   :  { %8151 = sst [smem:[#allocation16_spill]] %s8108_s0 }
   0x2   :  { %8152 = sst [smem:[#allocation17_spill]] %s8109_s1 }
   0x3   :  { %8153 = sst [smem:[#allocation18_spill]] %s8110_s2 }
   0x4   :  { %8154 = sst [smem:[#allocation19_spill]] %s8111_s3 }
   0x5   :  { %8155 = sst [smem:[#allocation20_spill]] %s8112_s4 }
   0x6   :  { %8156 = sst [smem:[#allocation21_spill]] %s8113_s5 }
   0x7   :  { %8157 = sst [smem:[#allocation22_spill]] %s8114_s6 }
   0x8   :  { %8158 = sst [smem:[#allocation23_spill]] %s8115_s7 }
   0x9   :  { %8159 = sst [smem:[#allocation24_spill]] %s8116_s8 }
   0xa   :  { %8160 = sst [smem:[#allocation25_spill]] %s8117_s9 }
   0xb   :  { %8161 = sst [smem:[#allocation26_spill]] %s8118_s10 }
   0xc   :  { %8162 = sst [smem:[#allocation27_spill]] %s8119_s11 }
   0xd   :  { %8163 = sst [smem:[#allocation28_spill]] %s8120_s12 }
   0xe   :  { %8164 = sst [smem:[#allocation29_spill]] %s8121_s13 }
   0xf   :  { %8165 = sst [smem:[#allocation30_spill]] %s8123_s15 }
  0x10   :  { %8166 = sst [smem:[#allocation31_spill]] %s8124_s16 }
  0x11   :  { %8167 = sst [smem:[#allocation32_spill]] %s8125_s17 }
  0x12   :  { %8168 = sst [smem:[#allocation33_spill]] %s8126_s18 }
  0x13   :  { %8169 = sst [smem:[#allocation34_spill]] %s8127_s19 }
  0x14   :  { %8170 = sst [smem:[#allocation35_spill]] %s8128_s20 }
  0x15   :  { %8171 = sst [smem:[#allocation36_spill]] %s8129_s21 }
  0x16   :  { %8172 = sst [smem:[#allocation37_spill]] %s8130_s22 }
  0x17   :  { %8173 = sst [smem:[#allocation38_spill]] %s8131_s23 }
  0x18   :  { %8174 = sst [smem:[#allocation39_spill]] %s8132_s24 }
  0x19   :  { %8175 = sst [smem:[#allocation40_spill]] %s8133_s25 }
  0x1a   :  { %8176 = sst [smem:[#allocation41_spill]] %s8134_s26 }
  0x1b   :  { %8177 = sst [smem:[#allocation42_spill]] %s8135_s27 }
  0x1c   :  { %32 = vsyncpa [#allocation3], 0  ;;  %s7253_s7 = smov 0  }
  0x1d LB: > { %8178 = sst [smem:[#allocation5_spill]] %s7099_s7  ;;  %s7259_s4 = sadd.s32 4294967295, %s7099_s7   ;;  %s7099_s7 = sphi %s7253_s7, %s38_s7  }
  0x1e   : > { %8179 = sst [smem:[#allocation6_spill]] %s7259_s4  ;;  %p5940_p0 = scmp.ge.s32.totalorder %s7099_s7, 1 }
  0x1f   : > { %p928_p1 = scmp.lt.s32.totalorder %s7099_s7, 3 }
  0x21   : > { %p929_p2 = pnand %p5940_p0, %p928_p1 }
  0x23   : > { %932 = sbr.rel (%p929_p2) target bundleno = 10009 (0x2719), region = 128 }
  0x2a   : > { %p1085_p3 = scmp.lt.s32.totalorder %s7259_s4, 1  ;;  %s8180_s10 = sld [smem:[#allocation23_spill]] }
  0x2b   : > { %s8181_s11 = sld [smem:[#allocation21_spill]]  ;;  %s8182_s27 = sld [smem:[#allocation24_spill]] }
  0x2c   : > { %s7265_s8 = scalar_select %p1085_p3, %s7259_s4, 1 }
  0x2d   : > { %s8184_s24 = sld [smem:[#allocation22_spill]]  ;;  %s8185_s28 = sld [smem:[#allocation25_spill]] }
  0x2e   : > { %s6890_s30 = smul.u32 24, %s7265_s8  ;;  %s6182_s9 = sshll.u32 %s7265_s8, 6 }
  0x2f   : > { %s6891_s5 = smul.u32 3, %s7265_s8  ;;  %s6185_s1 = sshll.u32 %s7265_s8, 4 }
  0x30   : > { %s7273_s29 = scalar_lea.vmem %s8180_s10, %s6182_s9  ;;  %s5948_s10 = sshll.u32 %s7265_s8, 2 }
  0x31   : > { %s7278_s2 = scalar_lea.vmem %s8181_s11, %s6890_s30  ;;  %s7283_s4 = scalar_lea.vmem %s8182_s27, %s6182_s9 }
  0x32   : > { %8183 = sst [smem:[#allocation7_spill]] %s7283_s4  ;;  %s8186_s11 = sld [smem:[#allocation26_spill]] }
  0x33   : > { %s7288_s23 = scalar_lea.vmem %s8184_s24, %s6891_s5  ;;  %s7293_s0 = scalar_lea.vmem %s8185_s28, %s6182_s9 }
  0x34   : > { %s8188_s4 = sld [smem:[#allocation27_spill]]  ;;  %s8190_s12 = sld [smem:[#allocation28_spill]] }
  0x35   : > { %s8192_s13 = sld [smem:[#allocation29_spill]]  ;;  %s8193_s15 = sld [smem:[#allocation30_spill]] }
  0x36   : > { %s8194_s16 = sld [smem:[#allocation31_spill]]  ;;  %s6892_s26 = smul.u32 96, %s7265_s8 }
  0x37   : > { %s8196_s19 = sld [smem:[#allocation34_spill]]  ;;  %s8198_s20 = sld [smem:[#allocation35_spill]] }
  0x38   : > { %s7300_s7 = scalar_lea.vmem %s8186_s11, %s5948_s10  ;;  %s8200_s17 = sld [smem:[#allocation32_spill]] }
  0x39   : > { %8187 = sst [smem:[#allocation8_spill]] %s7300_s7  ;;  %s8201_s18 = sld [smem:[#allocation33_spill]] }
  0x3a   : > { %s7305_s24 = scalar_lea.vmem %s8188_s4, %s5948_s10  ;;  %s7310_s21 = scalar_lea.vmem %s8190_s12, %s5948_s10 }
  0x3b   : > { %8189 = sst [smem:[#allocation9_spill]] %s7305_s24  ;;  %s7315_s28 = scalar_lea.vmem %s8192_s13, %s6185_s1 }
  0x3c   : > { %8191 = sst [smem:[#allocation10_spill]] %s7310_s21  ;;  %s7324_s4 = scalar_lea.vmem %s8193_s15, %s6182_s9 }
  0x3d   : > { %s7329_s25 = scalar_lea.vmem %s8194_s16, %s5948_s10  ;;  %s7335_s22 = scalar_lea.vmem %s8196_s19, %s5948_s10 }
  0x3e   : > { %8195 = sst [smem:[#allocation11_spill]] %s7329_s25  ;;  %s7340_s30 = scalar_lea.vmem %s8198_s20, %s5948_s10 }
  0x3f   : > { %8197 = sst [smem:[#allocation12_spill]] %s7335_s22  ;;  %s7345_s9 = scalar_lea.vmem %s8200_s17, %s6892_s26 }
  0x40   : > { %8199 = sst [smem:[#allocation13_spill]] %s7340_s30  ;;  %s7350_s3 = scalar_lea.vmem %s8201_s18, %s6892_s26 }
  0x41   : > { %8202 = sst [smem:[#allocation14_spill]] %s7350_s3  ;;  %s8205_s13 = sld [smem:[#allocation37_spill]] }
  0x42   : > { %s8203_s12 = sld [smem:[#allocation36_spill]]  ;;  %s8206_s30 = sld [smem:[#allocation38_spill]] }
  0x43   : > { %s8207_s25 = sld [smem:[#allocation39_spill]]  ;;  %s6189_s26 = sshll.u32 %s7265_s8, 5 }
  0x44   : > { %s8208_s22 = sld [smem:[#allocation41_spill]]  ;;  %s8210_s16 = sld [smem:[#allocation6_spill]] }
  0x47   : > { %s1163_s10 = scalar_lea.vmem %s8205_s13, %s7265_s8 }
  0x48   : > { %s7355_s21 = scalar_lea.vmem %s8203_s12, %s6185_s1  ;;  %s7364_s6 = scalar_lea.vmem %s8206_s30, %s6185_s1 }
  0x49   : > { %8204 = sst [smem:[#allocation15_spill]] %s7355_s21  ;;  %s1171_s27 = scalar_lea.vmem %s8207_s25, %s7265_s8 }
  0x4a   : > { %s1179_s15 = scalar_lea.vmem %s8208_s22, %s7265_s8  ;;  %s8209_s21 = sld [smem:[#allocation40_spill]] }
  0x4b   : > { %p5966_p4 = scmp.ne.s32.totalorder %s8210_s16, 0 }
  0x4c   : > { %s8211_s1 = sld [smem:[#allocation19_spill]] (!%p5966_p4)  ;;  %vm1200_vm0 = vcmask (!%p5966_p4), 1041408   ;;  %s8212_s30 = sld [smem:[#allocation16_spill]] (!%p5966_p4)  ;;  %v7101_v2 = vmov (!%p5966_p4), 0.0   ;;  %vm7102_vm1 = vmmov (!%p5966_p4), 0   ;;  %vm1196_vm2 = vcmask (!%p5966_p4), 31744  }
  0x4d   : > { %1184 = sbr.rel (%p5966_p4) target bundleno = 304 (0x130), region = 132  ;;  %6410 = vmatprep.subr.bf16.mxu0 (!%p5966_p4), %v7101_v2  ;;  %6412 = vmatprep.mubr.msk.bf16.mxu0 (!%p5966_p4), %vm7102_vm1, %v7101_v2  ;;  %s8213_s5 = sld [smem:[#allocation20_spill]] (!%p5966_p4)  ;;  %vm1245_vm3 = vcmask (!%p5966_p4), 261120  }
  0x50   : > { %s7378_s3 = scalar_lea.vmem %s8209_s21, %s6189_s26 }
  0x52   : > { %v1188_v0 = vld [vmem:[%s8211_s1] sm:$0x3] (!%p5966_p4)  ;;  %v1186_v4 = vld [vmem:[%s8212_s30 + $0x8] sm:$0xff] (!%p5966_p4) }
  0x53   : > { %v1185_v1 = vld [vmem:[%s8212_s30] sm:$0xff] (!%p5966_p4)  ;;  %v1202_v3 = vsel (!%p5966_p4), %vm1200_vm0, %v1188_v0, 0 }
  0x54   : > { %6411 = vmatpush3.bf16.msra.mxu0 %v1202_v3  ;;  %v1187_v5 = vpack.c.bf16 %v1186_v4, %v1185_v1  ;;  %v5967_v6 = vld [vmem:[%s8213_s5] ss:$0 sm:$0xff] }
  0x57   : > { %6413 = vmatmul.mubr.msk.bf16.vlgmr.msra.gmra.mrb[0].mxu0 %vm1196_vm2, %v1187_v5 }
 0x12a   : > { %v1238_v7 = vpop.f32.mrb[0].mxu0 }
 0x12b   : > { %v1239_v8 = vadd.f32 %v5967_v6, %v1238_v7  ;;  %v6414_v9 = vpop.f32.mrb[1].mxu0 }
 0x12c   : > { %v1241_v10 = vpop.f32.mrb[2].mxu0 }
 0x12d   : > { %1246 = vst.msk [vmem:[#allocation2] sm:$0xff] %vm1245_vm3, %v1239_v8  ;;  %v1242_v11 = vadd.f32 %v5967_v6, %v1241_v10  ;;  %v6415_v12 = vpop.f32.mrb[3].mxu0 }
 0x12f   : > { %1247 = vst.msk [vmem:[#allocation2 + $0x8] sm:$0xff] %vm1245_vm3, %v1242_v11 }
 0x130 PF: > { %vm1443_vm4 = vcmask 261120   ;;  %vm1289_vm5 = vcmask 130048   ;;  %v6919_v15 = vld [vmem:[%s7278_s2 + $0x4] ss:$12 sps:$4 sm:$0xff]   ;;  %v6921_v16 = vld [vmem:[%s7278_s2] ss:$12 sps:$4 sm:$0xff]   ;;  %v1258_v36 = vlaneseq }
 0x131   : > { %v7103_v17 = vmov 0   ;;  %s8214_s24 = sld [smem:[#allocation18_spill]]  ;;  %1293 = vmatprep.subr.bf16.mxu0 %v6919_v15  ;;  %s8215_s11 = sld [smem:[#allocation7_spill]]  ;;  %v6922_v32 = vld [vmem:[%s7278_s2 + $0x8] ss:$12 sps:$4 sm:$0xff]   ;;  %v6923_v33 = vld [vmem:[%s7273_s29] sm:$0xff]  }
 0x132   : > { %1325 = vmatprep.mubr.bf16.mxu0 %v7103_v17  ;;  %1294 = vmatpush1.bf16.msra.mxu0 %v6921_v16  ;;  %v7104_v34 = vmov 0.0   ;;  %vm7105_vm6 = vmmov 0   ;;  %v7426_v37 = vshrl.u32 %v1258_v36, 7  ;;  %v7106_v38 = vmov 1966171168   ;;  %v6925_v44 = vld [vmem:[%s7273_s29 + $0x8] sm:$0xff]  }
 0x133   : > { %6416 = vmatprep.subr.bf16.mxu1 %v7104_v34  ;;  %6418 = vmatprep.mubr.msk.bf16.mxu1 %vm7105_vm6, %v7104_v34  ;;  %v1376_v39 = vunpack.c.l.s4 %v7106_v38  ;;  %v1256_v41 = vld [vmem:[%s7288_s23] sm:$0x7]  ;;  %s7107_s2 = smov 96   ;;  %s8216_s12 = sld [smem:[#allocation9_spill]]  ;;  %v6928_v12 = vld [vmem:[%s7293_s0 + $0x8] sm:$0xff]   ;;  %vm1757_vm7 = vcmask 64512  }
 0x134   : > { %v1248_v13 = vld [vmem:[#allocation2] sm:$0xff]  ;;  %6417 = vmatpush3.bf16.msra.mxu1 %v6922_v32  ;;  %6422 = vmatprep.subr.bf16.mxu0 %v7104_v34  ;;  %v7429_v40 = vsub.s32 0, %v7426_v37  ;;  %s8217_s16 = sld [smem:[#allocation8_spill]]  ;;  %s8218_s19 = sld [smem:[#allocation10_spill]]  ;;  %vm1877_vm8 = vcmask 1043456   ;;  %vm3623_vm9 = vcmask 392192  }
 0x135   : > { %v1444_v14 = vsel %vm1443_vm4, %v1248_v13, 0.0  ;;  %6430 = vmatprep.subr.bf16.mxu1 %v7104_v34  ;;  %v1377_v42 = vunpack.c.0.s8 %v1376_v39  ;;  %v6927_v10 = vld [vmem:[%s7293_s0] sm:$0xff]   ;;  %s7108_s20 = smov 64   ;;  %s7109_s1 = smov 32   ;;  %vm5588_vm10 = vcmask 523264  }
 0x136   : > { %v1249_v18 = vld [vmem:[#allocation2 + $0x8] sm:$0xff]  ;;  %1445 = vadd.xlane.f32.xlu0 %v1444_v14  ;;  %v1261_v43 = vrot.slane %v1256_v41, %v7429_v40  ;;  %s8220_s18 = sld [smem:[#allocation17_spill]]  ;;  %s8221_s13 = sld [smem:[#allocation14_spill]] }
 0x137   : > { %v1447_v19 = vsel %vm1443_vm4, %v1249_v18, 0.0  ;;  %v1250_v20 = vld [vmem:[%s8214_s24] sm:$0x3]  ;;  %v6926_v45 = vld [vmem:[%s8215_s11 + $0x8] sm:$0xff]   ;;  %v7436_v46 = vsub.s32 %v1377_v42, %v7426_v37  ;;  %s8222_s5 = sld [smem:[#allocation12_spill]]  ;;  %s8223_s7 = sld [smem:[#allocation11_spill]] }
 0x138   : > { %v1251_v21 = vpack.c.bf16 %v1250_v20, %v1250_v20  ;;  %v6924_v35 = vld [vmem:[%s8215_s11] sm:$0xff]   ;;  %s8224_s26 = sld [smem:[#allocation13_spill]]  ;;  %s8225_s24 = sld [smem:[#allocation15_spill]] }
 0x139   : > { %v5978_v17 = vld [vmem:[%s8216_s12] ss:$0 sm:$0xff] }
 0x13a   : > { %1448 = vadd.xlane.f32.xlu0 %v1447_v19  ;;  %5972 = vmatmul.mubr.msk.bf16.vlgmr.msra.gmra.mrb[0].mxu0 %vm1289_vm5, %v1251_v21 }
 0x13b   : > { %6423 = vmatpush3.bf16.msra.mxu0 %v6923_v33  ;;  %6426 = vmatprep.mubr.msk.bf16.mxu0 %vm7105_vm6, %v7104_v34 }
 0x13c   : > { %6424 = vmatprep.subr.bf16.mxu0 %v7104_v34  ;;  %6419 = vmatmul.mubr.msk.bf16.vlgmr.msra.gmra.mrb[0].mxu1 %vm1289_vm5, %v1251_v21 }
 0x13d   : > { %6431 = vmatpush3.bf16.msra.mxu1 %v6924_v35  ;;  %6434 = vmatprep.mubr.msk.bf16.mxu1 %vm7105_vm6, %v7104_v34  ;;  %v5982_v35 = vld [vmem:[%s8218_s19] ss:$0 sm:$0xff] }
 0x13e   : > { %6432 = vmatprep.subr.bf16.mxu1 %v7104_v34 }
 0x13f   : > { %6425 = vmatpush3.bf16.msra.mxu0 %v6925_v44 }
 0x140   : > { %6438 = vmatprep.subr.bf16.mxu0 %v7104_v34 }
 0x141   : > { %6433 = vmatpush3.bf16.msra.mxu1 %v6926_v45 }
 0x142   : > { %6446 = vmatprep.subr.bf16.mxu1 %v7104_v34 }
 0x1c3   : > { %v1446_v22 = vpop.xlane.xlu0 %1445 }
 0x1c4   : > { %v1451_v23 = vmul.f32 0.03125, %v1446_v22 }
 0x1c6   : > { %v7401_v24 = vsub.f32 %v1248_v13, %v1451_v23 }
 0x1c7   : > { %v1449_v25 = vpop.xlane.xlu0 %1448 }
 0x1c8   : > { %v1452_v26 = vmul.f32 0.03125, %v1449_v25  ;;  %v1455_v27 = vmul.f32 %v7401_v24, %v7401_v24 }
 0x1ca   : > { %v7405_v28 = vsub.f32 %v1249_v18, %v1452_v26  ;;  %v1457_v29 = vsel %vm1443_vm4, %v1455_v27, 0.0  ;;  %v5974_v18 = vld [vmem:[%s8217_s16] ss:$0 sm:$0xff] }
 0x1cb   : > { %1458 = vadd.xlane.f32.xlu1 %v1457_v29 }
 0x1cc   : > { %v1456_v30 = vmul.f32 %v7405_v28, %v7405_v28 }
 0x1ce   : > { %v1460_v31 = vsel %vm1443_vm4, %v1456_v30, 0.0 }
 0x1cf   : > { %1461 = vadd.xlane.f32.xlu1 %v1460_v31 }
 0x20d   : > { %v1327_v47 = vpop.f32.mrb[0].mxu0 }
 0x20e   : > { %v1328_v48 = vadd.f32 %v1327_v47, %v1261_v43  ;;  %v7440_v49 = vpop.f32.mrb[1].mxu0 }
 0x20f   : > { %v1331_v50 = vpop.f32.mrb[2].mxu0  ;;  %v7483_v13 = vpop.f32.mrb[0].mxu1 }
 0x210   : > { %v1381_v51 = vrot.slane %v1328_v48, %v7436_v46  ;;  %v1332_v52 = vpop.f32.mrb[3].mxu0  ;;  %v6420_v14 = vpop.f32.mrb[1].mxu1 }
 0x211   : > { %v1371_v15 = vpop.f32.mrb[2].mxu1 }
 0x212   : > { %v1382_v53 = vcombine.high %v1381_v51, %v1381_v51  ;;  %v1389_v54 = vrot.slane %v1381_v51, %v7436_v46  ;;  %v6421_v16 = vpop.f32.mrb[3].mxu1 }
 0x214   : > { %v1396_v55 = vrot.slane %v1382_v53, %v7436_v46  ;;  %v7446_v56 = vrot.slane %v1389_v54, %v7429_v40 }
 0x216   : > { %1483 = vrot.lane.b32.xlu0 %v7446_v56, %s7107_s2  ;;  %v7451_v57 = vrot.slane %v1396_v55, %v7429_v40 }
 0x218   : > { %1485 = vrot.lane.b32.xlu1 %v7451_v57, %s7107_s2 }
 0x258   : > { %v1459_v58 = vpop.xlane.xlu1 %1458 }
 0x259   : > { %v1463_v60 = vmul.f32 0.03125, %v1459_v58 }
 0x25b   : > { %v1465_v62 = vadd.f32 1e-05, %v1463_v60 }
 0x25c   : > { %v1462_v59 = vpop.xlane.xlu1 %1461 }
 0x25d   : > { %v1464_v61 = vmul.f32 0.03125, %v1462_v59  ;;  %6985 = vrsqrt.f32 %v1465_v62 }
 0x25f   : > { %v1466_v63 = vadd.f32 1e-05, %v1464_v61 }
 0x261   : > { %6987 = vrsqrt.f32 %v1466_v63 }
 0x267   : > { %v6986_v0 = vpop.eup %6985 }
 0x268   : > { %v1469_v2 = vmul.f32 %v6986_v0, %v7401_v24 }
 0x26a   : > { %v1481_v5 = vmul.f32 %v7446_v56, %v1469_v2 }
 0x26b   : > { %v6988_v1 = vpop.eup %6987 }
 0x26c   : > { %v1470_v3 = vmul.f32 %v6988_v1, %v7405_v28 }
 0x26e   : > { %v1482_v6 = vmul.f32 %v7451_v57, %v1470_v3 }
 0x288   : > { %v1484_v4 = vpop.permute.xlu0 %1483 }
 0x289   : > { %v7459_v8 = vadd.f32 %v1484_v4, %v1481_v5 }
 0x28a   : > { %v1486_v7 = vpop.permute.xlu1 %1485 }
 0x28b   : > { %v7461_v9 = vadd.f32 %v1486_v7, %v1482_v6 }
 0x28d   : > { %v7466_v11 = vpack.c.bf16 %v7461_v9, %v7459_v8 }
 0x28f   : > { %6427 = vmatmul.mubr.msk.bf16.vlgmr.msra.gmra.mrb[4].mxu0 %vm1443_vm4, %v7466_v11  ;;  %6435 = vmatmul.mubr.msk.bf16.vlgmr.msra.gmra.mrb[4].mxu1 %vm1443_vm4, %v7466_v11 }
 0x290   : > { %6439 = vmatpush3.bf16.msra.mxu0 %v6927_v10  ;;  %6442 = vmatprep.mubr.msk.bf16.mxu0 %vm7105_vm6, %v7104_v34 }
 0x291   : > { %6440 = vmatprep.subr.bf16.mxu0 %v7104_v34  ;;  %6448 = vmatprep.mubr.msk.bf16.mxu1 %vm7105_vm6, %v7104_v34 }
 0x294   : > { %6441 = vmatpush3.bf16.msra.mxu0 %v6928_v12 }
 0x295   : > { %6452 = vmatprep.subr.bf16.mxu0 %v7104_v34 }
 0x297   : > { %6443 = vmatmul.mubr.msk.bf16.vlgmr.msra.gmra.mrb[8].mxu0 %vm1443_vm4, %v7466_v11 }
 0x298   : > { %6454 = vmatprep.mubr.msk.bf16.mxu0 %vm7105_vm6, %v7104_v34 }
 0x362   : > { %v1612_v19 = vpop.f32.mrb[4].mxu0  ;;  %v1671_v20 = vpop.f32.mrb[4].mxu1 }
 0x363   : > { %v1672_v21 = vadd.f32 %v5978_v17, %v1671_v20  ;;  %v6428_v22 = vpop.f32.mrb[5].mxu0  ;;  %v6436_v23 = vpop.f32.mrb[5].mxu1  ;;  %v1613_v26 = vadd.f32 %v5974_v18, %v1612_v19 }
 0x364   : > { %v1615_v24 = vpop.f32.mrb[6].mxu0  ;;  %v1674_v25 = vpop.f32.mrb[6].mxu1  ;;  %v6929_v22 = vld [vmem:[%s7273_s29 + $0x10] sm:$0xff]  }
 0x365   : > { %v6192_v27 = vpack.c.bf16 %v1672_v21, %v1672_v21  ;;  %v1675_v28 = vadd.f32 %v5978_v17, %v1674_v25  ;;  %v6429_v29 = vpop.f32.mrb[7].mxu0  ;;  %v6437_v30 = vpop.f32.mrb[7].mxu1  ;;  %v1616_v32 = vadd.f32 %v5974_v18, %v1615_v24  ;;  %v1737_v36 = vmul.f32 0.35355338, %v1613_v26  ;;  %v6930_v25 = vld [vmem:[%s8215_s11 + $0x10] sm:$0xff]  }
 0x366   : > { %v6933_v29 = vld [vmem:[%s7293_s0 + $0x10] sm:$0xff]   ;;  %v6934_v30 = vld [vmem:[%s7293_s0 + $0x18] sm:$0xff]  }
 0x367   : > { %v1762_v31 = vsel %vm1757_vm7, %v6192_v27, 0  ;;  %v6193_v33 = vpack.c.bf16 %v1675_v28, %v1675_v28  ;;  %v1738_v41 = vmul.f32 0.35355338, %v1616_v32  ;;  %v6190_v45 = vpack.c.bf16 %v1737_v36, %v1737_v36  ;;  %v6931_v27 = vld [vmem:[%s7273_s29 + $0x18] sm:$0xff]  }
 0x368   : > { %6447 = vmatpush3.bf16.xpose.msra.mxu1 %v1762_v31  ;;  %v6932_v28 = vld [vmem:[%s8215_s11 + $0x18] sm:$0xff]  }
 0x369   : > { %v1808_v38 = vsel %vm1757_vm7, %v6193_v33, 0  ;;  %6458 = vmatprep.subr.bf16.mxu1 %v7104_v34  ;;  %v6191_v51 = vpack.c.bf16 %v1738_v41, %v1738_v41 }
 0x36a   : > { %v1730_v39 = vpop.f32.mrb[8].mxu0  ;;  %6453 = vmatpush3.bf16.xpose.msra.mxu0 %v1808_v38 }
 0x36b   : > { %v1731_v42 = vadd.f32 %v5982_v35, %v1730_v39  ;;  %v6444_v43 = vpop.f32.mrb[9].mxu0  ;;  %6464 = vmatprep.subr.bf16.mxu0 %v7104_v34 }
 0x36c   : > { %v1733_v44 = vpop.f32.mrb[10].mxu0 }
 0x36d   : > { %v6194_v47 = vpack.c.bf16 %v1731_v42, %v1731_v42  ;;  %v1734_v48 = vadd.f32 %v5982_v35, %v1733_v44  ;;  %v6445_v50 = vpop.f32.mrb[11].mxu0  ;;  %v6000_v44 = vld [vmem:[%s8216_s12 + $0x1] ss:$0 sm:$0xff] }
 0x36f   : > { %v1879_v52 = vsel %vm1877_vm8, %v6194_v47, 0  ;;  %v6195_v53 = vpack.c.bf16 %v1734_v48, %v1734_v48  ;;  %6449 = vmatmul.mubr.msk.bf16.vlgmr.msra.gmra.mrb[8].mxu1 %vm1757_vm7, %v6190_v45  ;;  %v5996_v47 = vld [vmem:[%s8217_s16 + $0x1] ss:$0 sm:$0xff] }
 0x370   : > { %6459 = vmatpush3.bf16.msra.mxu1 %v1879_v52  ;;  %6460 = vmatprep.mubr.msk.bf16.mxu1 %vm7105_vm6, %v7104_v34 }
 0x371   : > { %v1925_v54 = vsel %vm1877_vm8, %v6195_v53, 0  ;;  %6455 = vmatmul.mubr.msk.bf16.vlgmr.msra.gmra.mrb[12].mxu0 %vm1757_vm7, %v6191_v51  ;;  %6470 = vmatprep.subr.bf16.mxu1 %v7104_v34 }
 0x372   : > { %6465 = vmatpush3.bf16.msra.mxu0 %v1925_v54  ;;  %6466 = vmatprep.mubr.msk.bf16.mxu0 %vm7105_vm6, %v7104_v34 }
 0x373   : > { %6478 = vmatprep.subr.bf16.mxu0 %v7104_v34 }
 0x442   : > { %v1798_v55 = vpop.f32.mrb[8].mxu1 }
 0x443   : > { %v6450_v58 = vpop.f32.mrb[9].mxu1  ;;  %v1850_v59 = vsel %vm1757_vm7, %v1798_v55, -inf }
 0x444   : > { %1851 = vmax.xlane.f32.xlu0 %v1850_v59  ;;  %v1801_v60 = vpop.f32.mrb[10].mxu1  ;;  %v1844_v61 = vpop.f32.mrb[12].mxu0 }
 0x445   : > { %v6451_v62 = vpop.f32.mrb[11].mxu1  ;;  %v6456_v63 = vpop.f32.mrb[13].mxu0  ;;  %v1853_v0 = vsel %vm1757_vm7, %v1844_v61, -inf }
 0x446   : > { %1854 = vmax.xlane.f32.xlu1 %v1853_v0  ;;  %v1847_v1 = vpop.f32.mrb[14].mxu0 }
 0x447   : > { %v6457_v2 = vpop.f32.mrb[15].mxu0 }
 0x4d1   : > { %v1852_v3 = vpop.xlane.xlu0 %1851 }
 0x4d2   : > { %v1856_v4 = vsub.f32 %v1798_v55, %v1852_v3 }
 0x4d3   : > { %v1855_v5 = vpop.xlane.xlu1 %1854 }
 0x4d4   : > { %v1858_v6 = vmul.f32 1.442695, %v1856_v4  ;;  %v1857_v7 = vsub.f32 %v1844_v61, %v1855_v5  ;;  %v6004_v61 = vld [vmem:[%s8218_s19 + $0x1] ss:$0 sm:$0xff] }
 0x4d6   : > { %6989 = vpow2.f32 %v1858_v6  ;;  %v1860_v10 = vmul.f32 1.442695, %v1857_v7 }
 0x4d8   : > { %6991 = vpow2.f32 %v1860_v10 }
 0x4e0   : > { %v6990_v12 = vpop.eup %6989 }
 0x4e1   : > { %v1862_v14 = vsel %vm1757_vm7, %v6990_v12, 0.0 }
 0x4e2   : > { %v6992_v15 = vpop.eup %6991  ;;  %1863 = vadd.xlane.f32.xlu1 %v1862_v14 }
 0x4e3   : > { %v1865_v16 = vsel %vm1757_vm7, %v6992_v15, 0.0 }
 0x4e4   : > { %1866 = vadd.xlane.f32.xlu0 %v1865_v16 }
 0x56f   : > { %v1864_v17 = vpop.xlane.xlu1 %1863 }
 0x570   : > { %6993 = vrcp.f32 %v1864_v17 }
 0x571   : > { %v1867_v18 = vpop.xlane.xlu0 %1866 }
 0x572   : > { %6995 = vrcp.f32 %v1867_v18 }
 0x57a   : > { %v6994_v19 = vpop.eup %6993 }
 0x57b   : > { %v1870_v20 = vmul.f32 %v6994_v19, %v6990_v12 }
 0x57c   : > { %v6996_v21 = vpop.eup %6995 }
 0x57d   : > { %v1871_v23 = vmul.f32 %v6996_v21, %v6992_v15  ;;  %v1872_v24 = vpack.c.bf16 %v1870_v20, %v1870_v20 }
 0x57f   : > { %6461 = vmatmul.mubr.msk.bf16.vlgmr.msra.gmra.mrb[12].mxu1 %vm1757_vm7, %v1872_v24  ;;  %v1873_v26 = vpack.c.bf16 %v1871_v23, %v1871_v23 }
 0x580   : > { %6471 = vmatpush3.bf16.msra.mxu1 %v6929_v22  ;;  %6474 = vmatprep.mubr.msk.bf16.mxu1 %vm7105_vm6, %v7104_v34 }
 0x581   : > { %6467 = vmatmul.mubr.msk.bf16.vlgmr.msra.gmra.mrb[16].mxu0 %vm1757_vm7, %v1873_v26  ;;  %6472 = vmatprep.subr.bf16.mxu1 %v7104_v34 }
 0x582   : > { %6479 = vmatpush3.bf16.msra.mxu0 %v6930_v25  ;;  %6482 = vmatprep.mubr.msk.bf16.mxu0 %vm7105_vm6, %v7104_v34 }
 0x583   : > { %6480 = vmatprep.subr.bf16.mxu0 %v7104_v34 }
 0x584   : > { %6473 = vmatpush3.bf16.msra.mxu1 %v6931_v27 }
 0x585   : > { %6486 = vmatprep.subr.bf16.mxu1 %v7104_v34 }
 0x586   : > { %6481 = vmatpush3.bf16.msra.mxu0 %v6932_v28 }
 0x587   : > { %6475 = vmatmul.mubr.msk.bf16.vlgmr.msra.gmra.mrb[16].mxu1 %vm1443_vm4, %v7466_v11  ;;  %6494 = vmatprep.subr.bf16.mxu0 %v7104_v34 }
 0x588   : > { %6487 = vmatpush3.bf16.msra.mxu1 %v6933_v29  ;;  %6490 = vmatprep.mubr.msk.bf16.mxu1 %vm7105_vm6, %v7104_v34 }
 0x589   : > { %6483 = vmatmul.mubr.msk.bf16.vlgmr.msra.gmra.mrb[20].mxu0 %vm1443_vm4, %v7466_v11  ;;  %6488 = vmatprep.subr.bf16.mxu1 %v7104_v34 }
 0x58a   : > { %6496 = vmatprep.mubr.msk.bf16.mxu0 %vm7105_vm6, %v7104_v34 }
 0x58c   : > { %6489 = vmatpush3.bf16.msra.mxu1 %v6934_v30 }
 0x58d   : > { %6500 = vmatprep.subr.bf16.mxu1 %v7104_v34 }
 0x58f   : > { %6491 = vmatmul.mubr.msk.bf16.vlgmr.msra.gmra.mrb[20].mxu1 %vm1443_vm4, %v7466_v11 }
 0x590   : > { %6502 = vmatprep.mubr.msk.bf16.mxu1 %vm7105_vm6, %v7104_v34 }
 0x652   : > { %v7536_v31 = vpop.f32.mrb[12].mxu1 }
 0x653   : > { %v6462_v32 = vpop.f32.mrb[13].mxu1 }
 0x654   : > { %v1918_v33 = vpop.f32.mrb[14].mxu1  ;;  %v7538_v35 = vpop.f32.mrb[16].mxu0 }
 0x655   : > { %v1967_v36 = vpack.c.bf16 %v7538_v35, %v7536_v31  ;;  %v6463_v38 = vpop.f32.mrb[15].mxu1  ;;  %v6468_v39 = vpop.f32.mrb[17].mxu0 }
 0x656   : > { %v1964_v41 = vpop.f32.mrb[18].mxu0 }
 0x657   : > { %v6469_v42 = vpop.f32.mrb[19].mxu0 }
 0x65a   : > { %v2020_v43 = vpop.f32.mrb[16].mxu1 }
 0x65b   : > { %v6476_v45 = vpop.f32.mrb[17].mxu1  ;;  %v2021_v55 = vadd.f32 %v5996_v47, %v2020_v43 }
 0x65c   : > { %v2023_v48 = vpop.f32.mrb[18].mxu1  ;;  %v2079_v50 = vpop.f32.mrb[20].mxu0 }
 0x65d   : > { %v2080_v51 = vadd.f32 %v6000_v44, %v2079_v50  ;;  %v6477_v52 = vpop.f32.mrb[19].mxu1  ;;  %v6484_v53 = vpop.f32.mrb[21].mxu0  ;;  %v2024_v62 = vadd.f32 %v5996_v47, %v2023_v48  ;;  %v2145_v2 = vmul.f32 0.35355338, %v2021_v55 }
 0x65e   : > { %v2082_v54 = vpop.f32.mrb[22].mxu0 }
 0x65f   : > { %v6198_v58 = vpack.c.bf16 %v2080_v51, %v2080_v51  ;;  %v2083_v59 = vadd.f32 %v6000_v44, %v2082_v54  ;;  %v6485_v60 = vpop.f32.mrb[23].mxu0  ;;  %v2146_v7 = vmul.f32 0.35355338, %v2024_v62  ;;  %v6196_v15 = vpack.c.bf16 %v2145_v2, %v2145_v2  ;;  %v1552_v51 = vld [vmem:[%s7315_s28 + $0x4] sm:$0xf] }
 0x660   : > { %v1551_v54 = vld [vmem:[%s7315_s28] sm:$0xf] }
 0x661   : > { %v2169_v63 = vsel %vm1757_vm7, %v6198_v58, 0  ;;  %v6199_v0 = vpack.c.bf16 %v2083_v59, %v2083_v59  ;;  %v6197_v17 = vpack.c.bf16 %v2146_v7, %v2146_v7  ;;  %v2378_v59 = vsel %vm1877_vm8, %v1552_v51, 0  ;;  %v6935_v62 = vld [vmem:[%s8215_s11 + $0x20] sm:$0xff]   ;;  %v6938_v7 = vld [vmem:[%s7273_s29 + $0x28] sm:$0xff]  }
 0x662   : > { %v2138_v1 = vpop.f32.mrb[20].mxu1  ;;  %6495 = vmatpush3.bf16.xpose.msra.mxu0 %v2169_v63  ;;  %v6936_v63 = vld [vmem:[%s8215_s11 + $0x28] sm:$0xff]  }
 0x663   : > { %v2215_v3 = vsel %vm1757_vm7, %v6199_v0, 0  ;;  %v2139_v4 = vadd.f32 %v6004_v61, %v2138_v1  ;;  %v6492_v5 = vpop.f32.mrb[21].mxu1  ;;  %6506 = vmatprep.subr.bf16.mxu0 %v7104_v34  ;;  %v6937_v1 = vld [vmem:[%s7273_s29 + $0x20] sm:$0xff]  }
 0x664   : > { %v2141_v6 = vpop.f32.mrb[22].mxu1  ;;  %6501 = vmatpush3.bf16.xpose.msra.mxu1 %v2215_v3 }
 0x665   : > { %v6200_v10 = vpack.c.bf16 %v2139_v4, %v2139_v4  ;;  %v2142_v12 = vadd.f32 %v6004_v61, %v2141_v6  ;;  %v6493_v14 = vpop.f32.mrb[23].mxu1  ;;  %6512 = vmatprep.subr.bf16.mxu1 %v7104_v34  ;;  %v2425_v61 = vsel %vm1877_vm8, %v1551_v54, 0 }
 0x667   : > { %v6201_v16 = vpack.c.bf16 %v2142_v12, %v2142_v12  ;;  %v2285_v18 = vsel %vm1877_vm8, %v6200_v10, 0  ;;  %v6939_v12 = vld [vmem:[%s7293_s0 + $0x20] sm:$0xff]  }
 0x669   : > { %6497 = vmatmul.mubr.msk.bf16.vlgmr.msra.gmra.mrb[24].mxu0 %vm1757_vm7, %v6196_v15  ;;  %v2331_v19 = vsel %vm1877_vm8, %v6201_v16, 0 }
 0x66a   : > { %6507 = vmatpush3.bf16.msra.mxu0 %v2285_v18  ;;  %6508 = vmatprep.mubr.msk.bf16.mxu0 %vm7105_vm6, %v7104_v34  ;;  %v6024_v18 = vld [vmem:[%s8216_s12 + $0x2] ss:$0 sm:$0xff] }
 0x66b   : > { %6503 = vmatmul.mubr.msk.bf16.vlgmr.msra.gmra.mrb[24].mxu1 %vm1757_vm7, %v6197_v17  ;;  %6518 = vmatprep.subr.bf16.mxu0 %v7104_v34  ;;  %v6940_v17 = vld [vmem:[%s7293_s0 + $0x28] sm:$0xff]  }
 0x66c   : > { %6513 = vmatpush3.bf16.msra.mxu1 %v2331_v19  ;;  %6514 = vmatprep.mubr.msk.bf16.mxu1 %vm7105_vm6, %v7104_v34 }
 0x66d   : > { %6524 = vmatprep.subr.bf16.mxu1 %v7104_v34 }
 0x73c   : > { %v2205_v20 = vpop.f32.mrb[24].mxu0 }
 0x73d   : > { %v6498_v21 = vpop.f32.mrb[25].mxu0  ;;  %v2257_v22 = vsel %vm1757_vm7, %v2205_v20, -inf }
 0x73e   : > { %v2251_v23 = vpop.f32.mrb[24].mxu1  ;;  %2258 = vmax.xlane.f32.xlu0 %v2257_v22  ;;  %v2208_v24 = vpop.f32.mrb[26].mxu0 }
 0x73f   : > { %v6499_v25 = vpop.f32.mrb[27].mxu0  ;;  %v6504_v26 = vpop.f32.mrb[25].mxu1  ;;  %v2260_v27 = vsel %vm1757_vm7, %v2251_v23, -inf }
 0x740   : > { %2261 = vmax.xlane.f32.xlu1 %v2260_v27  ;;  %v2254_v28 = vpop.f32.mrb[26].mxu1 }
 0x741   : > { %v6505_v29 = vpop.f32.mrb[27].mxu1 }
 0x7cb   : > { %v2259_v30 = vpop.xlane.xlu0 %2258 }
 0x7cc   : > { %v2263_v32 = vsub.f32 %v2205_v20, %v2259_v30 }
 0x7cd   : > { %v2262_v33 = vpop.xlane.xlu1 %2261 }
 0x7ce   : > { %v2265_v38 = vmul.f32 1.442695, %v2263_v32  ;;  %v2264_v39 = vsub.f32 %v2251_v23, %v2262_v33 }
 0x7d0   : > { %6997 = vpow2.f32 %v2265_v38  ;;  %v2267_v41 = vmul.f32 1.442695, %v2264_v39 }
 0x7d2   : > { %6999 = vpow2.f32 %v2267_v41  ;;  %v6020_v41 = vld [vmem:[%s8217_s16 + $0x2] ss:$0 sm:$0xff] }
 0x7da   : > { %v6998_v42 = vpop.eup %6997 }
 0x7db   : > { %v2269_v43 = vsel %vm1757_vm7, %v6998_v42, 0.0 }
 0x7dc   : > { %v7000_v44 = vpop.eup %6999  ;;  %2270 = vadd.xlane.f32.xlu0 %v2269_v43 }
 0x7dd   : > { %v2272_v45 = vsel %vm1757_vm7, %v7000_v44, 0.0 }
 0x7de   : > { %2273 = vadd.xlane.f32.xlu1 %v2272_v45 }
 0x869   : > { %v2271_v47 = vpop.xlane.xlu0 %2270 }
 0x86a   : > { %7001 = vrcp.f32 %v2271_v47 }
 0x86b   : > { %v2274_v48 = vpop.xlane.xlu1 %2273 }
 0x86c   : > { %7003 = vrcp.f32 %v2274_v48 }
 0x874   : > { %v7002_v50 = vpop.eup %7001 }
 0x875   : > { %v2277_v52 = vmul.f32 %v7002_v50, %v6998_v42 }
 0x876   : > { %v7004_v53 = vpop.eup %7003 }
 0x877   : > { %v2278_v55 = vmul.f32 %v7004_v53, %v7000_v44  ;;  %v2279_v58 = vpack.c.bf16 %v2277_v52, %v2277_v52  ;;  %v6028_v53 = vld [vmem:[%s8218_s19 + $0x2] ss:$0 sm:$0xff] }
 0x879   : > { %6509 = vmatmul.mubr.msk.bf16.vlgmr.msra.gmra.mrb[28].mxu0 %vm1757_vm7, %v2279_v58  ;;  %v2280_v60 = vpack.c.bf16 %v2278_v55, %v2278_v55 }
 0x87a   : > { %6519 = vmatpush3.bf16.msra.mxu0 %v2378_v59  ;;  %6520 = vmatprep.mubr.msk.bf16.mxu0 %vm7105_vm6, %v7104_v34 }
 0x87b   : > { %6515 = vmatmul.mubr.msk.bf16.vlgmr.msra.gmra.mrb[28].mxu1 %vm1757_vm7, %v2280_v60  ;;  %6530 = vmatprep.subr.bf16.mxu0 %v7104_v34 }
 0x87c   : > { %6525 = vmatpush3.bf16.msra.mxu1 %v2425_v61  ;;  %6526 = vmatprep.mubr.msk.bf16.mxu1 %vm7105_vm6, %v7104_v34 }
 0x87d   : > { %6538 = vmatprep.subr.bf16.mxu1 %v7104_v34 }
 0x883   : > { %6527 = vmatmul.mubr.msk.bf16.vlgmr.msra.gmra.mrb[32].mxu1 %vm1757_vm7, %v1967_v36 }
 0x884   : > { %6539 = vmatpush3.bf16.msra.mxu1 %v6935_v62  ;;  %6542 = vmatprep.mubr.msk.bf16.mxu1 %vm7105_vm6, %v7104_v34 }
 0x885   : > { %6540 = vmatprep.subr.bf16.mxu1 %v7104_v34 }
 0x888   : > { %6541 = vmatpush3.bf16.msra.mxu1 %v6936_v63 }
 0x889   : > { %6554 = vmatprep.subr.bf16.mxu1 %v7104_v34 }
 0x88b   : > { %6543 = vmatmul.mubr.msk.bf16.vlgmr.msra.gmra.mrb[36].mxu1 %vm1443_vm4, %v7466_v11 }
 0x88c   : > { %6556 = vmatprep.mubr.msk.bf16.mxu1 %vm7105_vm6, %v7104_v34 }
 0x94c   : > { %v2321_v31 = vpop.f32.mrb[28].mxu0 }
 0x94d   : > { %v6510_v35 = vpop.f32.mrb[29].mxu0 }
 0x94e   : > { %v2324_v36 = vpop.f32.mrb[30].mxu0  ;;  %v2367_v0 = vpop.f32.mrb[28].mxu1 }
 0x94f   : > { %v2373_v2 = vpack.c.bf16 %v2367_v0, %v2321_v31  ;;  %v6511_v3 = vpop.f32.mrb[31].mxu0  ;;  %v6516_v4 = vpop.f32.mrb[29].mxu1 }
 0x950   : > { %v2370_v5 = vpop.f32.mrb[30].mxu1 }
 0x951   : > { %v6517_v6 = vpop.f32.mrb[31].mxu1  ;;  %6521 = vmatmul.mubr.msk.bf16.vlgmr.msra.gmra.mrb[32].mxu0 %vm1757_vm7, %v2373_v2 }
 0x952   : > { %6531 = vmatpush3.bf16.msra.mxu0 %v6937_v1  ;;  %6534 = vmatprep.mubr.msk.bf16.mxu0 %vm7105_vm6, %v7104_v34 }
 0x953   : > { %6532 = vmatprep.subr.bf16.mxu0 %v7104_v34 }
 0x956   : > { %6533 = vmatpush3.bf16.msra.mxu0 %v6938_v7  ;;  %v2461_v10 = vpop.f32.mrb[32].mxu1 }
 0x957   : > { %v6528_v14 = vpop.f32.mrb[33].mxu1  ;;  %6546 = vmatprep.subr.bf16.mxu0 %v7104_v34 }
 0x958   : > { %v2464_v15 = vpop.f32.mrb[34].mxu1 }
 0x959   : > { %v6529_v16 = vpop.f32.mrb[35].mxu1  ;;  %6535 = vmatmul.mubr.msk.bf16.vlgmr.msra.gmra.mrb[36].mxu0 %vm1443_vm4, %v7466_v11 }
 0x95a   : > { %6547 = vmatpush3.bf16.msra.mxu0 %v6939_v12  ;;  %6550 = vmatprep.mubr.msk.bf16.mxu0 %vm7105_vm6, %v7104_v34 }
 0x95b   : > { %6548 = vmatprep.subr.bf16.mxu0 %v7104_v34 }
 0x95e   : > { %6549 = vmatpush3.bf16.msra.mxu0 %v6940_v17  ;;  %v2579_v19 = vpop.f32.mrb[36].mxu1 }
 0x95f   : > { %v2580_v20 = vadd.f32 %v6024_v18, %v2579_v19  ;;  %v6544_v21 = vpop.f32.mrb[37].mxu1  ;;  %6560 = vmatprep.subr.bf16.mxu0 %v7104_v34 }
 0x960   : > { %v2582_v22 = vpop.f32.mrb[38].mxu1 }
 0x961   : > { %v6204_v23 = vpack.c.bf16 %v2580_v20, %v2580_v20  ;;  %v2583_v24 = vadd.f32 %v6024_v18, %v2582_v22  ;;  %v6545_v25 = vpop.f32.mrb[39].mxu1  ;;  %6551 = vmatmul.mubr.msk.bf16.vlgmr.msra.gmra.mrb[40].mxu0 %vm1443_vm4, %v7466_v11 }
 0x962   : > { %6562 = vmatprep.mubr.msk.bf16.mxu0 %vm7105_vm6, %v7104_v34 }
 0x963   : > { %v2669_v26 = vsel %vm1757_vm7, %v6204_v23, 0  ;;  %v6205_v27 = vpack.c.bf16 %v2583_v24, %v2583_v24 }
 0x964   : > { %6555 = vmatpush3.bf16.xpose.msra.mxu1 %v2669_v26 }
 0x965   : > { %v2715_v28 = vsel %vm1757_vm7, %v6205_v27, 0  ;;  %6566 = vmatprep.subr.bf16.mxu1 %v7104_v34  ;;  %v1553_v27 = vld [vmem:[%s7315_s28 + $0x8] sm:$0xf] }
 0x967   : > { %6561 = vmatpush3.bf16.xpose.msra.mxu0 %v2715_v28 }
 0x968   : > { %6572 = vmatprep.subr.bf16.mxu0 %v7104_v34 }
 0xa24   : > { %v2414_v29 = vpop.f32.mrb[32].mxu0 }
 0xa25   : > { %v7613_v30 = vadd.f32 %v2461_v10, %v2414_v29  ;;  %v6522_v32 = vpop.f32.mrb[33].mxu0 }
 0xa26   : > { %v2417_v33 = vpop.f32.mrb[34].mxu0 }
 0xa27   : > { %v7615_v38 = vadd.f32 %v2464_v15, %v2417_v33  ;;  %v6523_v39 = vpop.f32.mrb[35].mxu0 }
 0xa28   : > { %v2878_v39 = vsel %vm1877_vm8, %v1553_v27, 0 }
 0xa2c   : > { %v2520_v42 = vpop.f32.mrb[36].mxu0 }
 0xa2d   : > { %v2521_v43 = vadd.f32 %v6020_v41, %v2520_v42  ;;  %v6536_v44 = vpop.f32.mrb[37].mxu0 }
 0xa2e   : > { %v2523_v45 = vpop.f32.mrb[38].mxu0  ;;  %v6943_v44 = vld [vmem:[%s7293_s0 + $0x30] sm:$0xff]  }
 0xa2f   : > { %v2645_v47 = vmul.f32 0.35355338, %v2521_v43  ;;  %v2524_v48 = vadd.f32 %v6020_v41, %v2523_v45  ;;  %v6537_v50 = vpop.f32.mrb[39].mxu0  ;;  %v6941_v41 = vld [vmem:[%s7273_s29 + $0x30] sm:$0xff]   ;;  %v6942_v43 = vld [vmem:[%s7273_s29 + $0x38] sm:$0xff]  }
 0xa30   : > { %v6944_v45 = vld [vmem:[%s7293_s0 + $0x38] sm:$0xff]  }
 0xa31   : > { %v6202_v51 = vpack.c.bf16 %v2645_v47, %v2645_v47  ;;  %v2646_v52 = vmul.f32 0.35355338, %v2524_v48 }
 0xa33   : > { %v6203_v54 = vpack.c.bf16 %v2646_v52, %v2646_v52  ;;  %6557 = vmatmul.mubr.msk.bf16.vlgmr.msra.gmra.mrb[40].mxu1 %vm1757_vm7, %v6202_v51  ;;  %v6945_v52 = vld [vmem:[%s8215_s11 + $0x30] sm:$0xff]  }
 0xa34   : > { %v2638_v55 = vpop.f32.mrb[40].mxu0  ;;  %6568 = vmatprep.mubr.msk.bf16.mxu1 %vm7105_vm6, %v7104_v34 }
 0xa35   : > { %v2639_v58 = vadd.f32 %v6028_v53, %v2638_v55  ;;  %v6552_v59 = vpop.f32.mrb[41].mxu0  ;;  %6563 = vmatmul.mubr.msk.bf16.vlgmr.msra.gmra.mrb[44].mxu0 %vm1757_vm7, %v6203_v54 }
 0xa36   : > { %v2641_v60 = vpop.f32.mrb[42].mxu0  ;;  %6574 = vmatprep.mubr.msk.bf16.mxu0 %vm7105_vm6, %v7104_v34 }
 0xa37   : > { %v6206_v61 = vpack.c.bf16 %v2639_v58, %v2639_v58  ;;  %v2642_v62 = vadd.f32 %v6028_v53, %v2641_v60  ;;  %v6553_v63 = vpop.f32.mrb[43].mxu0  ;;  %v6946_v60 = vld [vmem:[%s8215_s11 + $0x38] sm:$0xff]  }
 0xa39   : > { %v2785_v31 = vsel %vm1877_vm8, %v6206_v61, 0  ;;  %v6207_v35 = vpack.c.bf16 %v2642_v62, %v2642_v62 }
 0xa3a   : > { %6567 = vmatpush3.bf16.msra.mxu1 %v2785_v31 }
 0xa3b   : > { %v2831_v36 = vsel %vm1877_vm8, %v6207_v35, 0  ;;  %6578 = vmatprep.subr.bf16.mxu1 %v7104_v34 }
 0xa3c   : > { %6573 = vmatpush3.bf16.msra.mxu0 %v2831_v36 }
 0xa3d   : > { %6584 = vmatprep.subr.bf16.mxu0 %v7104_v34 }
 0xb06   : > { %v2705_v0 = vpop.f32.mrb[40].mxu1 }
 0xb07   : > { %v6558_v1 = vpop.f32.mrb[41].mxu1  ;;  %v2757_v2 = vsel %vm1757_vm7, %v2705_v0, -inf }
 0xb08   : > { %2758 = vmax.xlane.f32.xlu0 %v2757_v2  ;;  %v2708_v3 = vpop.f32.mrb[42].mxu1  ;;  %v2751_v4 = vpop.f32.mrb[44].mxu0 }
 0xb09   : > { %v6559_v5 = vpop.f32.mrb[43].mxu1  ;;  %v6564_v6 = vpop.f32.mrb[45].mxu0  ;;  %v2760_v7 = vsel %vm1757_vm7, %v2751_v4, -inf }
 0xb0a   : > { %2761 = vmax.xlane.f32.xlu1 %v2760_v7  ;;  %v2754_v10 = vpop.f32.mrb[46].mxu0 }
 0xb0b   : > { %v6565_v12 = vpop.f32.mrb[47].mxu0  ;;  %v6047_v10 = vld [vmem:[%s8216_s12 + $0x3] ss:$0 sm:$0xff] }
 0xb95   : > { %v2759_v14 = vpop.xlane.xlu0 %2758 }
 0xb96   : > { %v2763_v15 = vsub.f32 %v2705_v0, %v2759_v14 }
 0xb97   : > { %v2762_v16 = vpop.xlane.xlu1 %2761 }
 0xb98   : > { %v2765_v17 = vmul.f32 1.442695, %v2763_v15  ;;  %v2764_v18 = vsub.f32 %v2751_v4, %v2762_v16  ;;  %v6051_v16 = vld [vmem:[%s8218_s19 + $0x3] ss:$0 sm:$0xff] }
 0xb9a   : > { %7005 = vpow2.f32 %v2765_v17  ;;  %v2767_v19 = vmul.f32 1.442695, %v2764_v18 }
 0xb9c   : > { %7007 = vpow2.f32 %v2767_v19 }
 0xba4   : > { %v7006_v20 = vpop.eup %7005 }
 0xba5   : > { %v2769_v21 = vsel %vm1757_vm7, %v7006_v20, 0.0 }
 0xba6   : > { %v7008_v22 = vpop.eup %7007  ;;  %2770 = vadd.xlane.f32.xlu0 %v2769_v21 }
 0xba7   : > { %v2772_v23 = vsel %vm1757_vm7, %v7008_v22, 0.0 }
 0xba8   : > { %2773 = vadd.xlane.f32.xlu1 %v2772_v23 }
 0xc33   : > { %v2771_v24 = vpop.xlane.xlu0 %2770 }
 0xc34   : > { %7009 = vrcp.f32 %v2771_v24 }
 0xc35   : > { %v2774_v25 = vpop.xlane.xlu1 %2773 }
 0xc36   : > { %7011 = vrcp.f32 %v2774_v25 }
 0xc3e   : > { %v7010_v26 = vpop.eup %7009 }
 0xc3f   : > { %v2777_v28 = vmul.f32 %v7010_v26, %v7006_v20 }
 0xc40   : > { %v7012_v29 = vpop.eup %7011 }
 0xc41   : > { %v2778_v32 = vmul.f32 %v7012_v29, %v7008_v22  ;;  %v2779_v33 = vpack.c.bf16 %v2777_v28, %v2777_v28 }
 0xc43   : > { %6569 = vmatmul.mubr.msk.bf16.vlgmr.msra.gmra.mrb[44].mxu1 %vm1757_vm7, %v2779_v33  ;;  %v2780_v42 = vpack.c.bf16 %v2778_v32, %v2778_v32 }
 0xc44   : > { %6579 = vmatpush3.bf16.msra.mxu1 %v2878_v39  ;;  %6580 = vmatprep.mubr.msk.bf16.mxu1 %vm7105_vm6, %v7104_v34 }
 0xc45   : > { %6575 = vmatmul.mubr.msk.bf16.vlgmr.msra.gmra.mrb[48].mxu0 %vm1757_vm7, %v2780_v42  ;;  %6592 = vmatprep.subr.bf16.mxu1 %v7104_v34 }
 0xc46   : > { %6585 = vmatpush3.bf16.msra.mxu0 %v6941_v41  ;;  %6588 = vmatprep.mubr.msk.bf16.mxu0 %vm7105_vm6, %v7104_v34 }
 0xc47   : > { %6586 = vmatprep.subr.bf16.mxu0 %v7104_v34 }
 0xc4a   : > { %6587 = vmatpush3.bf16.msra.mxu0 %v6942_v43 }
 0xc4b   : > { %6600 = vmatprep.subr.bf16.mxu0 %v7104_v34 }
 0xc4d   : > { %6589 = vmatmul.mubr.msk.bf16.vlgmr.msra.gmra.mrb[52].mxu0 %vm1443_vm4, %v7466_v11 }
 0xc4e   : > { %6601 = vmatpush3.bf16.msra.mxu0 %v6943_v44  ;;  %6604 = vmatprep.mubr.msk.bf16.mxu0 %vm7105_vm6, %v7104_v34 }
 0xc4f   : > { %6602 = vmatprep.subr.bf16.mxu0 %v7104_v34 }
 0xc52   : > { %6603 = vmatpush3.bf16.msra.mxu0 %v6944_v45 }
 0xc53   : > { %6614 = vmatprep.subr.bf16.mxu0 %v7104_v34 }
 0xc55   : > { %6605 = vmatmul.mubr.msk.bf16.vlgmr.msra.gmra.mrb[56].mxu0 %vm1443_vm4, %v7466_v11 }
 0xc56   : > { %6616 = vmatprep.mubr.msk.bf16.mxu0 %vm7105_vm6, %v7104_v34 }
 0xd16   : > { %v2821_v47 = vpop.f32.mrb[44].mxu1 }
 0xd17   : > { %v6570_v48 = vpop.f32.mrb[45].mxu1 }
 0xd18   : > { %v2824_v50 = vpop.f32.mrb[46].mxu1  ;;  %v2867_v51 = vpop.f32.mrb[48].mxu0 }
 0xd19   : > { %v2873_v53 = vpack.c.bf16 %v2867_v51, %v2821_v47  ;;  %v6571_v54 = vpop.f32.mrb[47].mxu1  ;;  %v6576_v55 = vpop.f32.mrb[49].mxu0 }
 0xd1a   : > { %v2870_v58 = vpop.f32.mrb[50].mxu0 }
 0xd1b   : > { %v6577_v59 = vpop.f32.mrb[51].mxu0  ;;  %6581 = vmatmul.mubr.msk.bf16.vlgmr.msra.gmra.mrb[48].mxu1 %vm1757_vm7, %v2873_v53 }
 0xd1c   : > { %6593 = vmatpush3.bf16.msra.mxu1 %v6945_v52  ;;  %6596 = vmatprep.mubr.msk.bf16.mxu1 %vm7105_vm6, %v7104_v34 }
 0xd1d   : > { %6594 = vmatprep.subr.bf16.mxu1 %v7104_v34 }
 0xd20   : > { %v2975_v61 = vpop.f32.mrb[52].mxu0  ;;  %6595 = vmatpush3.bf16.msra.mxu1 %v6946_v60 }
 0xd21   : > { %v6590_v62 = vpop.f32.mrb[53].mxu0  ;;  %6608 = vmatprep.subr.bf16.mxu1 %v7104_v34 }
 0xd22   : > { %v2978_v63 = vpop.f32.mrb[54].mxu0 }
 0xd23   : > { %v6591_v31 = vpop.f32.mrb[55].mxu0  ;;  %6597 = vmatmul.mubr.msk.bf16.vlgmr.msra.gmra.mrb[52].mxu1 %vm1443_vm4, %v7466_v11  ;;  %v6043_v11 = vld [vmem:[%s8217_s16 + $0x3] ss:$0 sm:$0xff]  ;;  %s8229_s16 = sld [smem:[#allocation6_spill]] }
 0xd24   : > { %6610 = vmatprep.mubr.msk.bf16.mxu1 %vm7105_vm6, %v7104_v34  ;;  %v2976_v18 = vadd.f32 %v6043_v11, %v2975_v61  ;;  %v2979_v22 = vadd.f32 %v6043_v11, %v2978_v63 }
 0xd26   : > { %v3101_v27 = vmul.f32 0.35355338, %v2979_v22 }
 0xd28   : > { %v3093_v35 = vpop.f32.mrb[56].mxu0  ;;  %v6209_v33 = vpack.c.bf16 %v3101_v27, %v3101_v27 }
 0xd29   : > { %v6606_v36 = vpop.f32.mrb[57].mxu0  ;;  %p6897_p5 = scmp.eq.s32.totalorder %s8229_s16, 1 }
 0xd2a   : > { %v3096_v0 = vpop.f32.mrb[58].mxu0 }
 0xd2b   : > { %v6607_v1 = vpop.f32.mrb[59].mxu0  ;;  %v3097_v25 = vadd.f32 %v6051_v16, %v3096_v0 }
 0xd2d   : > { %v6213_v32 = vpack.c.bf16 %v3097_v25, %v3097_v25 }
 0xd2f   : > { %v3286_v41 = vsel %vm1877_vm8, %v6213_v32, 0 }
 0xdee   : > { %v2914_v2 = vpop.f32.mrb[48].mxu1 }
 0xdef   : > { %v7670_v3 = vadd.f32 %v2914_v2, %v7613_v30  ;;  %v6582_v4 = vpop.f32.mrb[49].mxu1  ;;  %v3094_v30 = vadd.f32 %v6051_v16, %v3093_v35  ;;  %v1554_v2 = vld [vmem:[%s7315_s28 + $0xc] sm:$0xf]  ;;  %s8219_s28 = scalar_lea.vmem %s8122_s14, %s7265_s8 }
 0xdf0   : > { %v2917_v5 = vpop.f32.mrb[50].mxu1  ;;  %v3333_v11 = vsel %vm1877_vm8, %v1554_v2, 0 }
 0xdf1   : > { %v7673_v6 = vadd.f32 %v2917_v5, %v7615_v38  ;;  %v6583_v7 = vpop.f32.mrb[51].mxu1  ;;  %v3100_v38 = vmul.f32 0.35355338, %v2976_v18  ;;  %v6212_v28 = vpack.c.bf16 %v3094_v30, %v3094_v30  ;;  %v6066_v30 = vld [vmem:[%s8219_s28] ss:$0 sm:$0xff] }
 0xdf3   : > { %v6208_v29 = vpack.c.bf16 %v3100_v38, %v3100_v38  ;;  %v3240_v39 = vsel %vm1877_vm8, %v6212_v28, 0 }
 0xdf6   : > { %v3034_v12 = vpop.f32.mrb[52].mxu1 }
 0xdf7   : > { %v3035_v14 = vadd.f32 %v6047_v10, %v3034_v12  ;;  %v6598_v15 = vpop.f32.mrb[53].mxu1 }
 0xdf8   : > { %v3037_v17 = vpop.f32.mrb[54].mxu1 }
 0xdf9   : > { %v6210_v19 = vpack.c.bf16 %v3035_v14, %v3035_v14  ;;  %v3038_v20 = vadd.f32 %v6047_v10, %v3037_v17  ;;  %v6599_v21 = vpop.f32.mrb[55].mxu1 }
 0xdfb   : > { %v3124_v23 = vsel %vm1757_vm7, %v6210_v19, 0  ;;  %v6211_v24 = vpack.c.bf16 %v3038_v20, %v3038_v20 }
 0xdfc   : > { %6609 = vmatpush3.bf16.xpose.msra.mxu1 %v3124_v23 }
 0xdfd   : > { %v3170_v26 = vsel %vm1757_vm7, %v6211_v24, 0  ;;  %6620 = vmatprep.subr.bf16.mxu1 %v7104_v34 }
 0xdfe   : > { %6615 = vmatpush3.bf16.xpose.msra.mxu0 %v3170_v26 }
 0xdff   : > { %6626 = vmatprep.subr.bf16.mxu0 %v7104_v34 }
 0xe03   : > { %6611 = vmatmul.mubr.msk.bf16.vlgmr.msra.gmra.mrb[56].mxu1 %vm1757_vm7, %v6208_v29 }
 0xe04   : > { %6621 = vmatpush3.bf16.msra.mxu1 %v3240_v39  ;;  %6622 = vmatprep.mubr.msk.bf16.mxu1 %vm7105_vm6, %v7104_v34 }
 0xe05   : > { %6617 = vmatmul.mubr.msk.bf16.vlgmr.msra.gmra.mrb[60].mxu0 %vm1757_vm7, %v6209_v33  ;;  %6632 = vmatprep.subr.bf16.mxu1 %v7104_v34 }
 0xe06   : > { %6627 = vmatpush3.bf16.msra.mxu0 %v3286_v41  ;;  %6628 = vmatprep.mubr.msk.bf16.mxu0 %vm7105_vm6, %v7104_v34 }
 0xe07   : > { %6638 = vmatprep.subr.bf16.mxu0 %v7104_v34 }
 0xed6   : > { %v3160_v42 = vpop.f32.mrb[56].mxu1 }
 0xed7   : > { %v6612_v43 = vpop.f32.mrb[57].mxu1  ;;  %v3212_v44 = vsel %vm1757_vm7, %v3160_v42, -inf }
 0xed8   : > { %3213 = vmax.xlane.f32.xlu0 %v3212_v44  ;;  %v3163_v45 = vpop.f32.mrb[58].mxu1  ;;  %v3206_v47 = vpop.f32.mrb[60].mxu0 }
 0xed9   : > { %v6613_v48 = vpop.f32.mrb[59].mxu1  ;;  %v6618_v50 = vpop.f32.mrb[61].mxu0  ;;  %v3215_v51 = vsel %vm1757_vm7, %v3206_v47, -inf }
 0xeda   : > { %3216 = vmax.xlane.f32.xlu1 %v3215_v51  ;;  %v3209_v52 = vpop.f32.mrb[62].mxu0 }
 0xedb   : > { %v6619_v53 = vpop.f32.mrb[63].mxu0 }
 0xf65   : > { %v3214_v54 = vpop.xlane.xlu0 %3213 }
 0xf66   : > { %v3218_v55 = vsub.f32 %v3160_v42, %v3214_v54 }
 0xf67   : > { %v3217_v58 = vpop.xlane.xlu1 %3216 }
 0xf68   : > { %v3220_v59 = vmul.f32 1.442695, %v3218_v55  ;;  %v3219_v60 = vsub.f32 %v3206_v47, %v3217_v58  ;;  %v6947_v58 = vld [vmem:[%s7345_s9] sm:$0xff]  }
 0xf6a   : > { %7013 = vpow2.f32 %v3220_v59  ;;  %v3222_v61 = vmul.f32 1.442695, %v3219_v60  ;;  %v6949_v59 = vld [vmem:[%s7345_s9 + $0x10] sm:$0xff]   ;;  %v3452_v60 = vld [vmem:[%s8220_s18] sm:$0xff] }
 0xf6c   : > { %7015 = vpow2.f32 %v3222_v61  ;;  %v3453_v61 = vld [vmem:[%s8220_s18 + $0x8] sm:$0xff] }
 0xf74   : > { %v7014_v62 = vpop.eup %7013 }
 0xf75   : > { %v3224_v63 = vsel %vm1757_vm7, %v7014_v62, 0.0 }
 0xf76   : > { %v7016_v31 = vpop.eup %7015  ;;  %3225 = vadd.xlane.f32.xlu0 %v3224_v63  ;;  %v6951_v63 = vld [vmem:[%s7324_s4 + $0x8] sm:$0xff]  }
 0xf77   : > { %v3227_v35 = vsel %vm1757_vm7, %v7016_v31, 0.0 }
 0xf78   : > { %3228 = vadd.xlane.f32.xlu1 %v3227_v35 }
0x1003   : > { %v3226_v36 = vpop.xlane.xlu0 %3225 }
0x1004   : > { %7017 = vrcp.f32 %v3226_v36 }
0x1005   : > { %v3229_v0 = vpop.xlane.xlu1 %3228 }
0x1006   : > { %7019 = vrcp.f32 %v3229_v0  ;;  %v7061_v0 = vld [vmem:[%s7288_s23] sm:$0x7] }
0x100e   : > { %v7018_v1 = vpop.eup %7017 }
0x100f   : > { %v3232_v4 = vmul.f32 %v7018_v1, %v7014_v62  ;;  %v7742_v62 = vpack.c.bf16 %v3453_v61, %v3452_v60 }
0x1010   : > { %v7020_v5 = vpop.eup %7019 }
0x1011   : > { %v3233_v7 = vmul.f32 %v7020_v5, %v7016_v31  ;;  %v3234_v10 = vpack.c.bf16 %v3232_v4, %v3232_v4  ;;  %v1264_v31 = vsub.s32 1, %v7426_v37 }
0x1013   : > { %6623 = vmatmul.mubr.msk.bf16.vlgmr.msra.gmra.mrb[60].mxu1 %vm1757_vm7, %v3234_v10  ;;  %v3235_v12 = vpack.c.bf16 %v3233_v7, %v3233_v7  ;;  %v1265_v1 = vrot.slane %v7061_v0, %v1264_v31 }
0x1014   : > { %6633 = vmatpush3.bf16.msra.mxu1 %v3333_v11  ;;  %6634 = vmatprep.mubr.msk.bf16.mxu1 %vm7105_vm6, %v7104_v34 }
0x1015   : > { %6629 = vmatmul.mubr.msk.bf16.vlgmr.msra.gmra.mrb[64].mxu0 %vm1757_vm7, %v3235_v12  ;;  %6646 = vmatprep.subr.bf16.mxu1 %v7104_v34  ;;  %v1330_v7 = vadd.f32 %v7440_v49, %v1265_v1 }
0x1016   : > { %6642 = vmatprep.mubr.msk.bf16.mxu0 %vm7105_vm6, %v7104_v34 }
0x1017   : > { %v1404_v11 = vrot.slane %v1330_v7, %v7436_v46 }
0x1019   : > { %v1405_v12 = vcombine.high %v1404_v11, %v1404_v11 }
0x10e6   : > { %v3276_v14 = vpop.f32.mrb[60].mxu1 }
0x10e7   : > { %v6624_v15 = vpop.f32.mrb[61].mxu1 }
0x10e8   : > { %v3279_v16 = vpop.f32.mrb[62].mxu1  ;;  %v3322_v17 = vpop.f32.mrb[64].mxu0 }
0x10e9   : > { %v3328_v18 = vpack.c.bf16 %v3322_v17, %v3276_v14  ;;  %v6625_v19 = vpop.f32.mrb[63].mxu1  ;;  %v6630_v20 = vpop.f32.mrb[65].mxu0  ;;  %v1412_v16 = vrot.slane %v1404_v11, %v7436_v46  ;;  %v1419_v17 = vrot.slane %v1405_v12, %v7436_v46 }
0x10ea   : > { %v3325_v21 = vpop.f32.mrb[66].mxu0 }
0x10eb   : > { %v6631_v22 = vpop.f32.mrb[67].mxu0  ;;  %6635 = vmatmul.mubr.msk.bf16.vlgmr.msra.gmra.mrb[64].mxu1 %vm1757_vm7, %v3328_v18  ;;  %v7760_v49 = vrot.slane %v1412_v16, %v7429_v40 }
0x10ec   : > { %6652 = vmatprep.mubr.msk.bf16.mxu1 %vm7105_vm6, %v7104_v34  ;;  %6647 = vmatpush3.bf16.msra.mxu1 %v6947_v58 }
0x10ed   : > { %6648 = vmatprep.subr.bf16.mxu1 %v7104_v34 }
0x11be   : > { %v3369_v23 = vpop.f32.mrb[64].mxu1 }
0x11bf   : > { %v3376_v24 = vadd.f32 %v3369_v23, %v7670_v3  ;;  %v6636_v38 = vpop.f32.mrb[65].mxu1 }
0x11c0   : > { %v3372_v25 = vpop.f32.mrb[66].mxu1 }
0x11c1   : > { %v3384_v26 = vadd.f32 %v6066_v30, %v3376_v24  ;;  %v3377_v27 = vadd.f32 %v3372_v25, %v7673_v6  ;;  %v6637_v28 = vpop.f32.mrb[67].mxu1  ;;  %v6952_v25 = vld [vmem:[%s8221_s13] sm:$0xff]  }
0x11c2   : > { %v6954_v28 = vld [vmem:[%s8221_s13 + $0x10] sm:$0xff]  }
0x11c3   : > { %v3385_v29 = vadd.f32 %v6066_v30, %v3377_v27  ;;  %3388 = vrot.lane.b32.xlu0 %v3384_v26, %s7108_s20  ;;  %v7763_v30 = vrot.slane %v1419_v17, %v7429_v40  ;;  %v6953_v27 = vld [vmem:[%s8221_s13 + $0x8] sm:$0xff]  }
0x11c5   : > { %3390 = vrot.lane.b32.xlu1 %v3385_v29, %s7108_s20  ;;  %v6071_v29 = vld [vmem:[%s8222_s5] ss:$0 sm:$0xff] }
0x1235   : > { %v3389_v32 = vpop.permute.xlu0 %3388 }
0x1236   : > { %v3394_v33 = vmul.f32 %v3389_v32, %v7446_v56 }
0x1237   : > { %v3391_v39 = vpop.permute.xlu1 %3390 }
0x1238   : > { %3398 = vrot.lane.b32.xlu1 %v3394_v33, %s7108_s20  ;;  %v3395_v3 = vmul.f32 %v3391_v39, %v7451_v57 }
0x123c   : > { %3400 = vrot.lane.b32.xlu1 %v3395_v3, %s7108_s20 }
0x12aa   : > { %v3399_v41 = vpop.permute.xlu1 %3398 }
0x12ab   : > { %v3404_v6 = vadd.f32 %v3399_v41, %v7459_v8 }
0x12ad   : > { %v3406_v42 = vsel %vm1443_vm4, %v3404_v6, 0.0 }
0x12ae   : > { %3407 = vadd.xlane.f32.xlu0 %v3406_v42  ;;  %v3401_v43 = vpop.permute.xlu1 %3400 }
0x12af   : > { %v3405_v44 = vadd.f32 %v3401_v43, %v7461_v9 }
0x12b1   : > { %v3409_v45 = vsel %vm1443_vm4, %v3405_v44, 0.0 }
0x12b2   : > { %3410 = vadd.xlane.f32.xlu1 %v3409_v45 }
0x12c3   : > { %3434 = vrot.lane.b32.xlu1 %v7451_v57, %s7109_s1  ;;  %v6948_v57 = vld [vmem:[%s7345_s9 + $0x8] sm:$0xff]  }
0x12c4   : > { %6649 = vmatpush3.bf16.msra.mxu1 %v6948_v57  ;;  %v6076_v57 = vld [vmem:[%s8224_s26] ss:$0 sm:$0xff] }
0x12c5   : > { %6650 = vmatprep.subr.bf16.mxu1 %v7104_v34 }
0x12c8   : > { %6651 = vmatpush3.bf16.msra.mxu1 %v6949_v59 }
0x12c9   : > { %6666 = vmatprep.subr.bf16.mxu1 %v7104_v34 }
0x12cb   : > { %6653 = vmatmul.mubr.msk.bf16.vlgmr.msra.gmra.mrb[68].mxu1 %vm3623_vm9, %v7742_v62 }
0x12cc   : > { %6668 = vmatprep.mubr.msk.bf16.mxu1 %vm7105_vm6, %v7104_v34 }
0x133b   : > { %v3408_v47 = vpop.xlane.xlu0 %3407 }
0x133c   : > { %v3412_v48 = vmul.f32 0.03125, %v3408_v47  ;;  %v6067_v47 = vld [vmem:[%s8223_s7] ss:$0 sm:$0xff] }
0x133e   : > { %v3414_v50 = vsub.f32 %v3404_v6, %v3412_v48 }
0x133f   : > { %v3411_v51 = vpop.xlane.xlu1 %3410 }
0x1340   : > { %v3413_v8 = vmul.f32 0.03125, %v3411_v51  ;;  %v3416_v52 = vmul.f32 %v3414_v50, %v3414_v50 }
0x1342   : > { %v3415_v53 = vsub.f32 %v3405_v44, %v3413_v8  ;;  %v3418_v54 = vsel %vm1443_vm4, %v3416_v52, 0.0 }
0x1343   : > { %3419 = vadd.xlane.f32.xlu0 %v3418_v54  ;;  %v3435_v22 = vpop.permute.xlu1 %3434 }
0x1344   : > { %v3417_v9 = vmul.f32 %v3415_v53, %v3415_v53 }
0x1346   : > { %v3421_v55 = vsel %vm1443_vm4, %v3417_v9, 0.0 }
0x1347   : > { %3422 = vadd.xlane.f32.xlu0 %v3421_v55 }
0x135d   : > { %3432 = vrot.lane.b32.xlu0 %v7446_v56, %s7109_s1  ;;  %v6950_v56 = vld [vmem:[%s7324_s4] sm:$0xff]  }
0x135e   : > { %6639 = vmatpush3.bf16.msra.mxu0 %v6950_v56 }
0x135f   : > { %6640 = vmatprep.subr.bf16.mxu0 %v7104_v34 }
0x1362   : > { %6641 = vmatpush3.bf16.msra.mxu0 %v6951_v63 }
0x1363   : > { %6656 = vmatprep.subr.bf16.mxu0 %v7104_v34 }
0x139e   : > { %v3661_v32 = vpop.f32.mrb[68].mxu1 }
0x139f   : > { %v3662_v33 = vadd.f32 %v6071_v29, %v3661_v32  ;;  %v6654_v39 = vpop.f32.mrb[69].mxu1 }
0x13a0   : > { %v3664_v3 = vpop.f32.mrb[70].mxu1 }
0x13a1   : > { %v6216_v41 = vpack.c.bf16 %v3662_v33, %v3662_v33  ;;  %v3665_v6 = vadd.f32 %v6071_v29, %v3664_v3  ;;  %v6655_v42 = vpop.f32.mrb[71].mxu1 }
0x13a3   : > { %v3757_v43 = vsel %vm1757_vm7, %v6216_v41, 0  ;;  %v6217_v44 = vpack.c.bf16 %v3665_v6, %v3665_v6  ;;  %v6955_v41 = vld [vmem:[%s7324_s4 + $0x10] sm:$0xff]  }
0x13a4   : > { %6667 = vmatpush3.bf16.xpose.msra.mxu1 %v3757_v43  ;;  %v6956_v43 = vld [vmem:[%s7345_s9 + $0x18] sm:$0xff]  }
0x13a5   : > { %v3803_v45 = vsel %vm1757_vm7, %v6217_v44, 0  ;;  %6678 = vmatprep.subr.bf16.mxu1 %v7104_v34 }
0x13d0   : > { %v3420_v35 = vpop.xlane.xlu0 %3419 }
0x13d1   : > { %v3424_v36 = vmul.f32 0.03125, %v3420_v35 }
0x13d3   : > { %v3426_v2 = vadd.f32 1e-05, %v3424_v36 }
0x13d4   : > { %v3423_v4 = vpop.xlane.xlu0 %3422 }
0x13d5   : > { %7021 = vrsqrt.f32 %v3426_v2  ;;  %v3425_v5 = vmul.f32 0.03125, %v3423_v4 }
0x13d7   : > { %v3427_v10 = vadd.f32 1e-05, %v3425_v5 }
0x13d8   : > { %v3433_v19 = vpop.permute.xlu0 %3432 }
0x13d9   : > { %7023 = vrsqrt.f32 %v3427_v10 }
0x13df   : > { %v7022_v14 = vpop.eup %7021 }
0x13e0   : > { %v3430_v15 = vmul.f32 %v7022_v14, %v3414_v50 }
0x13e2   : > { %v3438_v21 = vmul.f32 %v3433_v19, %v3430_v15 }
0x13e3   : > { %v7024_v18 = vpop.eup %7023 }
0x13e4   : > { %v3431_v20 = vmul.f32 %v7024_v18, %v3415_v53  ;;  %v7766_v24 = vadd.f32 %v7760_v49, %v3438_v21 }
0x13e6   : > { %v3439_v23 = vmul.f32 %v3435_v22, %v3431_v20 }
0x13e8   : > { %v7769_v38 = vadd.f32 %v7763_v30, %v3439_v23 }
0x13ea   : > { %v7774_v26 = vpack.c.bf16 %v7769_v38, %v7766_v24 }
0x13ec   : > { %6643 = vmatmul.mubr.msk.bf16.vlgmr.msra.gmra.mrb[68].mxu0 %vm1443_vm4, %v7774_v26 }
0x13ed   : > { %6657 = vmatpush3.bf16.msra.mxu0 %v6952_v25  ;;  %6662 = vmatprep.mubr.msk.bf16.mxu0 %vm7105_vm6, %v7104_v34 }
0x13ee   : > { %6658 = vmatprep.subr.bf16.mxu0 %v7104_v34 }
0x13f1   : > { %6659 = vmatpush3.bf16.msra.mxu0 %v6953_v27 }
0x13f2   : > { %6660 = vmatprep.subr.bf16.mxu0 %v7104_v34 }
0x13f5   : > { %6661 = vmatpush3.bf16.msra.mxu0 %v6954_v28 }
0x13f6   : > { %6672 = vmatprep.subr.bf16.mxu0 %v7104_v34 }
0x13f8   : > { %6663 = vmatmul.mubr.msk.bf16.vlgmr.msra.gmra.mrb[72].mxu0 %vm3623_vm9, %v7742_v62 }
0x13f9   : > { %6674 = vmatprep.mubr.msk.bf16.mxu0 %vm7105_vm6, %v7104_v34 }
0x13fe   : > { %6673 = vmatpush3.bf16.xpose.msra.mxu0 %v3803_v45  ;;  %v6957_v45 = vld [vmem:[%s7324_s4 + $0x18] sm:$0xff]  }
0x13ff   : > { %6684 = vmatprep.subr.bf16.mxu0 %v7104_v34 }
0x14bf   : > { %v3592_v48 = vpop.f32.mrb[68].mxu0 }
0x14c0   : > { %v3593_v50 = vadd.f32 %v6067_v47, %v3592_v48  ;;  %v6644_v51 = vpop.f32.mrb[69].mxu0  ;;  %v6959_v48 = vld [vmem:[%s7345_s9 + $0x28] sm:$0xff]  }
0x14c1   : > { %v3595_v8 = vpop.f32.mrb[70].mxu0  ;;  %v6961_v51 = vld [vmem:[%s8221_s13 + $0x20] sm:$0xff]  }
0x14c2   : > { %v3733_v52 = vmul.f32 0.35355338, %v3593_v50  ;;  %v3596_v53 = vadd.f32 %v6067_v47, %v3595_v8  ;;  %v6645_v54 = vpop.f32.mrb[71].mxu0  ;;  %v6958_v47 = vld [vmem:[%s7345_s9 + $0x20] sm:$0xff]   ;;  %v6960_v50 = vld [vmem:[%s8221_s13 + $0x18] sm:$0xff]   ;;  %v6962_v8 = vld [vmem:[%s8221_s13 + $0x28] sm:$0xff]  }
0x14c4   : > { %v6214_v9 = vpack.c.bf16 %v3733_v52, %v3733_v52  ;;  %v3734_v55 = vmul.f32 0.35355338, %v3596_v53 }
0x14c6   : > { %v6215_v58 = vpack.c.bf16 %v3734_v55, %v3734_v55  ;;  %6669 = vmatmul.mubr.msk.bf16.vlgmr.msra.gmra.mrb[72].mxu1 %vm1757_vm7, %v6214_v9 }
0x14c7   : > { %6680 = vmatprep.mubr.msk.bf16.mxu1 %vm7105_vm6, %v7104_v34 }
0x14c8   : > { %6675 = vmatmul.mubr.msk.bf16.vlgmr.msra.gmra.mrb[76].mxu0 %vm1757_vm7, %v6215_v58 }
0x14c9   : > { %6686 = vmatprep.mubr.msk.bf16.mxu0 %vm7105_vm6, %v7104_v34 }
0x14cb   : > { %v3726_v59 = vpop.f32.mrb[72].mxu0 }
0x14cc   : > { %v3727_v60 = vadd.f32 %v6076_v57, %v3726_v59  ;;  %v6664_v61 = vpop.f32.mrb[73].mxu0 }
0x14cd   : > { %v3729_v56 = vpop.f32.mrb[74].mxu0 }
0x14ce   : > { %v6218_v63 = vpack.c.bf16 %v3727_v60, %v3727_v60  ;;  %v3730_v31 = vadd.f32 %v6076_v57, %v3729_v56  ;;  %v6665_v35 = vpop.f32.mrb[75].mxu0 }
0x14cf   : > { %v6095_v35 = vld [vmem:[%s8222_s5 + $0x1] ss:$0 sm:$0xff] }
0x14d0   : > { %v3873_v36 = vsel %vm1877_vm8, %v6218_v63, 0  ;;  %v6219_v0 = vpack.c.bf16 %v3730_v31, %v3730_v31 }
0x14d1   : > { %6679 = vmatpush3.bf16.msra.mxu1 %v3873_v36  ;;  %v6091_v36 = vld [vmem:[%s8223_s7 + $0x1] ss:$0 sm:$0xff] }
0x14d2   : > { %v3919_v1 = vsel %vm1877_vm8, %v6219_v0, 0  ;;  %6690 = vmatprep.subr.bf16.mxu1 %v7104_v34 }
0x14d3   : > { %6685 = vmatpush3.bf16.msra.mxu0 %v3919_v1 }
0x14d4   : > { %6698 = vmatprep.subr.bf16.mxu0 %v7104_v34 }
0x1599   : > { %v3793_v2 = vpop.f32.mrb[72].mxu1 }
0x159a   : > { %v6670_v4 = vpop.f32.mrb[73].mxu1  ;;  %v3845_v5 = vsel %vm1757_vm7, %v3793_v2, -inf }
0x159b   : > { %3846 = vmax.xlane.f32.xlu0 %v3845_v5  ;;  %v3796_v7 = vpop.f32.mrb[74].mxu1  ;;  %v3839_v10 = vpop.f32.mrb[76].mxu0 }
0x159c   : > { %v6671_v11 = vpop.f32.mrb[75].mxu1  ;;  %v6676_v12 = vpop.f32.mrb[77].mxu0  ;;  %v3848_v14 = vsel %vm1757_vm7, %v3839_v10, -inf }
0x159d   : > { %3849 = vmax.xlane.f32.xlu1 %v3848_v14  ;;  %v3842_v15 = vpop.f32.mrb[78].mxu0 }
0x159e   : > { %v6677_v16 = vpop.f32.mrb[79].mxu0 }
0x1628   : > { %v3847_v17 = vpop.xlane.xlu0 %3846 }
0x1629   : > { %v3851_v18 = vsub.f32 %v3793_v2, %v3847_v17 }
0x162a   : > { %v3850_v19 = vpop.xlane.xlu1 %3849 }
0x162b   : > { %v3853_v20 = vmul.f32 1.442695, %v3851_v18  ;;  %v3852_v21 = vsub.f32 %v3839_v10, %v3850_v19 }
0x162d   : > { %7025 = vpow2.f32 %v3853_v20  ;;  %v3855_v22 = vmul.f32 1.442695, %v3852_v21  ;;  %v6100_v21 = vld [vmem:[%s8224_s26 + $0x1] ss:$0 sm:$0xff] }
0x162f   : > { %7027 = vpow2.f32 %v3855_v22 }
0x1637   : > { %v7026_v23 = vpop.eup %7025 }
0x1638   : > { %v3857_v25 = vsel %vm1757_vm7, %v7026_v23, 0.0 }
0x1639   : > { %v7028_v27 = vpop.eup %7027  ;;  %3858 = vadd.xlane.f32.xlu1 %v3857_v25 }
0x163a   : > { %v3860_v28 = vsel %vm1757_vm7, %v7028_v27, 0.0 }
0x163b   : > { %3861 = vadd.xlane.f32.xlu0 %v3860_v28 }
0x16c6   : > { %v3859_v29 = vpop.xlane.xlu1 %3858 }
0x16c7   : > { %7029 = vrcp.f32 %v3859_v29 }
0x16c8   : > { %v3862_v32 = vpop.xlane.xlu0 %3861 }
0x16c9   : > { %7031 = vrcp.f32 %v3862_v32 }
0x16d1   : > { %v7030_v33 = vpop.eup %7029 }
0x16d2   : > { %v3865_v39 = vmul.f32 %v7030_v33, %v7026_v23 }
0x16d3   : > { %v7032_v3 = vpop.eup %7031 }
0x16d4   : > { %v3866_v6 = vmul.f32 %v7032_v3, %v7028_v27  ;;  %v3867_v42 = vpack.c.bf16 %v3865_v39, %v3865_v39 }
0x16d6   : > { %6681 = vmatmul.mubr.msk.bf16.vlgmr.msra.gmra.mrb[76].mxu1 %vm1757_vm7, %v3867_v42  ;;  %v3868_v44 = vpack.c.bf16 %v3866_v6, %v3866_v6 }
0x16d7   : > { %6691 = vmatpush3.bf16.msra.mxu1 %v6955_v41  ;;  %6694 = vmatprep.mubr.msk.bf16.mxu1 %vm7105_vm6, %v7104_v34 }
0x16d8   : > { %6687 = vmatmul.mubr.msk.bf16.vlgmr.msra.gmra.mrb[80].mxu0 %vm1757_vm7, %v3868_v44  ;;  %6692 = vmatprep.subr.bf16.mxu1 %v7104_v34 }
0x16d9   : > { %6699 = vmatpush3.bf16.msra.mxu0 %v6956_v43  ;;  %6704 = vmatprep.mubr.msk.bf16.mxu0 %vm7105_vm6, %v7104_v34 }
0x16da   : > { %6700 = vmatprep.subr.bf16.mxu0 %v7104_v34 }
0x16db   : > { %6693 = vmatpush3.bf16.msra.mxu1 %v6957_v45 }
0x16dc   : > { %6708 = vmatprep.subr.bf16.mxu1 %v7104_v34 }
0x16dd   : > { %6701 = vmatpush3.bf16.msra.mxu0 %v6958_v47 }
0x16de   : > { %6695 = vmatmul.mubr.msk.bf16.vlgmr.msra.gmra.mrb[80].mxu1 %vm1443_vm4, %v7774_v26  ;;  %6702 = vmatprep.subr.bf16.mxu0 %v7104_v34 }
0x16df   : > { %6714 = vmatprep.mubr.msk.bf16.mxu1 %vm7105_vm6, %v7104_v34  ;;  %6709 = vmatpush3.bf16.msra.mxu1 %v6960_v50 }
0x16e0   : > { %6710 = vmatprep.subr.bf16.mxu1 %v7104_v34 }
0x16e1   : > { %6703 = vmatpush3.bf16.msra.mxu0 %v6959_v48 }
0x16e2   : > { %6718 = vmatprep.subr.bf16.mxu0 %v7104_v34 }
0x16e3   : > { %6711 = vmatpush3.bf16.msra.mxu1 %v6961_v51 }
0x16e4   : > { %6705 = vmatmul.mubr.msk.bf16.vlgmr.msra.gmra.mrb[84].mxu0 %vm3623_vm9, %v7742_v62  ;;  %6712 = vmatprep.subr.bf16.mxu1 %v7104_v34 }
0x16e5   : > { %6720 = vmatprep.mubr.msk.bf16.mxu0 %vm7105_vm6, %v7104_v34 }
0x16e7   : > { %6713 = vmatpush3.bf16.msra.mxu1 %v6962_v8 }
0x16e8   : > { %6724 = vmatprep.subr.bf16.mxu1 %v7104_v34 }
0x16ea   : > { %6715 = vmatmul.mubr.msk.bf16.vlgmr.msra.gmra.mrb[84].mxu1 %vm3623_vm9, %v7742_v62 }
0x16eb   : > { %6726 = vmatprep.mubr.msk.bf16.mxu1 %vm7105_vm6, %v7104_v34 }
0x17a9   : > { %v7844_v52 = vpop.f32.mrb[76].mxu1 }
0x17aa   : > { %v6682_v53 = vpop.f32.mrb[77].mxu1 }
0x17ab   : > { %v3912_v54 = vpop.f32.mrb[78].mxu1  ;;  %v7846_v9 = vpop.f32.mrb[80].mxu0 }
0x17ac   : > { %v3961_v55 = vpack.c.bf16 %v7846_v9, %v7844_v52  ;;  %v6683_v58 = vpop.f32.mrb[79].mxu1  ;;  %v6688_v57 = vpop.f32.mrb[81].mxu0 }
0x17ad   : > { %v3958_v59 = vpop.f32.mrb[82].mxu0 }
0x17ae   : > { %v6689_v60 = vpop.f32.mrb[83].mxu0 }
0x17b1   : > { %v4014_v61 = vpop.f32.mrb[80].mxu1 }
0x17b2   : > { %v6696_v56 = vpop.f32.mrb[81].mxu1  ;;  %v4015_v5 = vadd.f32 %v6091_v36, %v4014_v61 }
0x17b3   : > { %v4017_v63 = vpop.f32.mrb[82].mxu1 }
0x17b4   : > { %v6697_v31 = vpop.f32.mrb[83].mxu1  ;;  %v4018_v12 = vadd.f32 %v6091_v36, %v4017_v63  ;;  %v4151_v16 = vmul.f32 0.35355338, %v4015_v5 }
0x17b6   : > { %v4152_v18 = vmul.f32 0.35355338, %v4018_v12  ;;  %v6220_v19 = vpack.c.bf16 %v4151_v16, %v4151_v16  ;;  %v6965_v16 = vld [vmem:[%s7345_s9 + $0x40] sm:$0xff]  }
0x17b7   : > { %v4079_v0 = vpop.f32.mrb[84].mxu0 }
0x17b8   : > { %v4080_v1 = vadd.f32 %v6095_v35, %v4079_v0  ;;  %v6706_v2 = vpop.f32.mrb[85].mxu0  ;;  %v6221_v20 = vpack.c.bf16 %v4152_v18, %v4152_v18  ;;  %v3531_v0 = vld [vmem:[%s8225_s24 + $0x4] sm:$0xf] }
0x17b9   : > { %v4082_v4 = vpop.f32.mrb[86].mxu0  ;;  %v6966_v18 = vld [vmem:[%s7324_s4 + $0x20] sm:$0xff]  }
0x17ba   : > { %v6222_v7 = vpack.c.bf16 %v4080_v1, %v4080_v1  ;;  %v4083_v10 = vadd.f32 %v6095_v35, %v4082_v4  ;;  %v6707_v11 = vpop.f32.mrb[87].mxu0  ;;  %v3530_v4 = vld [vmem:[%s8225_s24] sm:$0xf] }
0x17bb   : > { %v4431_v12 = vsel %vm1877_vm8, %v3530_v4, 0 }
0x17bc   : > { %v4175_v14 = vsel %vm1757_vm7, %v6222_v7, 0  ;;  %v6223_v15 = vpack.c.bf16 %v4083_v10, %v4083_v10  ;;  %v4384_v10 = vsel %vm1877_vm8, %v3531_v0, 0 }
0x17bd   : > { %6719 = vmatpush3.bf16.xpose.msra.mxu0 %v4175_v14  ;;  %v4144_v22 = vpop.f32.mrb[84].mxu1  ;;  %v6963_v14 = vld [vmem:[%s7345_s9 + $0x30] sm:$0xff]  }
0x17be   : > { %v4221_v17 = vsel %vm1757_vm7, %v6223_v15, 0  ;;  %6730 = vmatprep.subr.bf16.mxu0 %v7104_v34  ;;  %v4145_v23 = vadd.f32 %v6100_v21, %v4144_v22  ;;  %v6716_v25 = vpop.f32.mrb[85].mxu1  ;;  %v6964_v15 = vld [vmem:[%s7345_s9 + $0x38] sm:$0xff]  }
0x17bf   : > { %6725 = vmatpush3.bf16.xpose.msra.mxu1 %v4221_v17  ;;  %v4147_v27 = vpop.f32.mrb[86].mxu1  ;;  %v6967_v25 = vld [vmem:[%s7324_s4 + $0x28] sm:$0xff]  }
0x17c0   : > { %6736 = vmatprep.subr.bf16.mxu1 %v7104_v34  ;;  %v6224_v28 = vpack.c.bf16 %v4145_v23, %v4145_v23  ;;  %v4148_v29 = vadd.f32 %v6100_v21, %v4147_v27  ;;  %v6717_v32 = vpop.f32.mrb[87].mxu1 }
0x17c2   : > { %v4291_v33 = vsel %vm1877_vm8, %v6224_v28, 0  ;;  %v6225_v39 = vpack.c.bf16 %v4148_v29, %v4148_v29  ;;  %v6968_v28 = vld [vmem:[%s8221_s13 + $0x30] sm:$0xff]  }
0x17c4   : > { %6721 = vmatmul.mubr.msk.bf16.vlgmr.msra.gmra.mrb[88].mxu0 %vm1757_vm7, %v6220_v19  ;;  %v4337_v3 = vsel %vm1877_vm8, %v6225_v39, 0  ;;  %v6969_v39 = vld [vmem:[%s8221_s13 + $0x38] sm:$0xff]  }
0x17c5   : > { %6732 = vmatprep.mubr.msk.bf16.mxu0 %vm7105_vm6, %v7104_v34  ;;  %6731 = vmatpush3.bf16.msra.mxu0 %v4291_v33 }
0x17c6   : > { %6727 = vmatmul.mubr.msk.bf16.vlgmr.msra.gmra.mrb[88].mxu1 %vm1757_vm7, %v6221_v20  ;;  %6742 = vmatprep.subr.bf16.mxu0 %v7104_v34 }
0x17c7   : > { %6738 = vmatprep.mubr.msk.bf16.mxu1 %vm7105_vm6, %v7104_v34  ;;  %6737 = vmatpush3.bf16.msra.mxu1 %v4337_v3  ;;  %v6970_v3 = vld [vmem:[%s8221_s13 + $0x40] sm:$0xff]  }
0x17c8   : > { %6748 = vmatprep.subr.bf16.mxu1 %v7104_v34 }
0x1897   : > { %v4211_v41 = vpop.f32.mrb[88].mxu0 }
0x1898   : > { %v6722_v6 = vpop.f32.mrb[89].mxu0  ;;  %v4263_v42 = vsel %vm1757_vm7, %v4211_v41, -inf }
0x1899   : > { %v4257_v43 = vpop.f32.mrb[88].mxu1  ;;  %4264 = vmax.xlane.f32.xlu0 %v4263_v42  ;;  %v4214_v44 = vpop.f32.mrb[90].mxu0 }
0x189a   : > { %v6723_v45 = vpop.f32.mrb[91].mxu0  ;;  %v6728_v47 = vpop.f32.mrb[89].mxu1  ;;  %v4266_v48 = vsel %vm1757_vm7, %v4257_v43, -inf }
0x189b   : > { %4267 = vmax.xlane.f32.xlu1 %v4266_v48  ;;  %v4260_v50 = vpop.f32.mrb[90].mxu1 }
0x189c   : > { %v6729_v51 = vpop.f32.mrb[91].mxu1 }
0x1926   : > { %v4265_v8 = vpop.xlane.xlu0 %4264 }
0x1927   : > { %v4269_v53 = vsub.f32 %v4211_v41, %v4265_v8  ;;  %v6121_v41 = vld [vmem:[%s8222_s5 + $0x2] ss:$0 sm:$0xff] }
0x1928   : > { %v4268_v54 = vpop.xlane.xlu1 %4267 }
0x1929   : > { %v4271_v58 = vmul.f32 1.442695, %v4269_v53  ;;  %v4270_v57 = vsub.f32 %v4257_v43, %v4268_v54 }
0x192b   : > { %7033 = vpow2.f32 %v4271_v58  ;;  %v4273_v59 = vmul.f32 1.442695, %v4270_v57 }
0x192d   : > { %7035 = vpow2.f32 %v4273_v59 }
0x1935   : > { %v7034_v60 = vpop.eup %7033 }
0x1936   : > { %v4275_v61 = vsel %vm1757_vm7, %v7034_v60, 0.0 }
0x1937   : > { %v7036_v56 = vpop.eup %7035  ;;  %4276 = vadd.xlane.f32.xlu0 %v4275_v61  ;;  %v6117_v61 = vld [vmem:[%s8223_s7 + $0x2] ss:$0 sm:$0xff] }
0x1938   : > { %v4278_v63 = vsel %vm1757_vm7, %v7036_v56, 0.0 }
0x1939   : > { %4279 = vadd.xlane.f32.xlu1 %v4278_v63 }
0x19c4   : > { %v4277_v31 = vpop.xlane.xlu0 %4276 }
0x19c5   : > { %7037 = vrcp.f32 %v4277_v31 }
0x19c6   : > { %v4280_v35 = vpop.xlane.xlu1 %4279 }
0x19c7   : > { %7039 = vrcp.f32 %v4280_v35 }
0x19cf   : > { %v7038_v36 = vpop.eup %7037 }
0x19d0   : > { %v4283_v1 = vmul.f32 %v7038_v36, %v7034_v60 }
0x19d1   : > { %v7040_v2 = vpop.eup %7039 }
0x19d2   : > { %v4284_v5 = vmul.f32 %v7040_v2, %v7036_v56  ;;  %v4285_v7 = vpack.c.bf16 %v4283_v1, %v4283_v1 }
0x19d4   : > { %6733 = vmatmul.mubr.msk.bf16.vlgmr.msra.gmra.mrb[92].mxu0 %vm1757_vm7, %v4285_v7  ;;  %v4286_v11 = vpack.c.bf16 %v4284_v5, %v4284_v5  ;;  %v6126_v7 = vld [vmem:[%s8224_s26 + $0x2] ss:$0 sm:$0xff] }
0x19d5   : > { %6743 = vmatpush3.bf16.msra.mxu0 %v4384_v10  ;;  %6744 = vmatprep.mubr.msk.bf16.mxu0 %vm7105_vm6, %v7104_v34 }
0x19d6   : > { %6739 = vmatmul.mubr.msk.bf16.vlgmr.msra.gmra.mrb[92].mxu1 %vm1757_vm7, %v4286_v11  ;;  %6754 = vmatprep.subr.bf16.mxu0 %v7104_v34 }
0x19d7   : > { %6749 = vmatpush3.bf16.msra.mxu1 %v4431_v12  ;;  %6750 = vmatprep.mubr.msk.bf16.mxu1 %vm7105_vm6, %v7104_v34 }
0x19d8   : > { %6762 = vmatprep.subr.bf16.mxu1 %v7104_v34 }
0x19de   : > { %6751 = vmatmul.mubr.msk.bf16.vlgmr.msra.gmra.mrb[96].mxu1 %vm1757_vm7, %v3961_v55 }
0x19df   : > { %6763 = vmatpush3.bf16.msra.mxu1 %v6963_v14  ;;  %6768 = vmatprep.mubr.msk.bf16.mxu1 %vm7105_vm6, %v7104_v34 }
0x19e0   : > { %6764 = vmatprep.subr.bf16.mxu1 %v7104_v34 }
0x19e3   : > { %6765 = vmatpush3.bf16.msra.mxu1 %v6964_v15 }
0x19e4   : > { %6766 = vmatprep.subr.bf16.mxu1 %v7104_v34 }
0x19e7   : > { %6767 = vmatpush3.bf16.msra.mxu1 %v6965_v16 }
0x19e8   : > { %6782 = vmatprep.subr.bf16.mxu1 %v7104_v34 }
0x19ea   : > { %6769 = vmatmul.mubr.msk.bf16.vlgmr.msra.gmra.mrb[100].mxu1 %vm3623_vm9, %v7742_v62 }
0x19eb   : > { %6784 = vmatprep.mubr.msk.bf16.mxu1 %vm7105_vm6, %v7104_v34 }
0x1aa7   : > { %v4327_v52 = vpop.f32.mrb[92].mxu0 }
0x1aa8   : > { %v6734_v9 = vpop.f32.mrb[93].mxu0 }
0x1aa9   : > { %v4330_v55 = vpop.f32.mrb[94].mxu0  ;;  %v4373_v17 = vpop.f32.mrb[92].mxu1 }
0x1aaa   : > { %v4379_v19 = vpack.c.bf16 %v4373_v17, %v4327_v52  ;;  %v6735_v20 = vpop.f32.mrb[95].mxu0  ;;  %v6740_v21 = vpop.f32.mrb[93].mxu1 }
0x1aab   : > { %v4376_v22 = vpop.f32.mrb[94].mxu1 }
0x1aac   : > { %v6741_v23 = vpop.f32.mrb[95].mxu1  ;;  %6745 = vmatmul.mubr.msk.bf16.vlgmr.msra.gmra.mrb[96].mxu0 %vm1757_vm7, %v4379_v19 }
0x1aad   : > { %6755 = vmatpush3.bf16.msra.mxu0 %v6966_v18  ;;  %6758 = vmatprep.mubr.msk.bf16.mxu0 %vm7105_vm6, %v7104_v34 }
0x1aae   : > { %6756 = vmatprep.subr.bf16.mxu0 %v7104_v34 }
0x1ab1   : > { %v4467_v27 = vpop.f32.mrb[96].mxu1  ;;  %6757 = vmatpush3.bf16.msra.mxu0 %v6967_v25 }
0x1ab2   : > { %v6752_v29 = vpop.f32.mrb[97].mxu1  ;;  %6772 = vmatprep.subr.bf16.mxu0 %v7104_v34 }
0x1ab3   : > { %v4470_v32 = vpop.f32.mrb[98].mxu1 }
0x1ab4   : > { %v6753_v33 = vpop.f32.mrb[99].mxu1  ;;  %6759 = vmatmul.mubr.msk.bf16.vlgmr.msra.gmra.mrb[100].mxu0 %vm1443_vm4, %v7774_v26 }
0x1ab5   : > { %6773 = vmatpush3.bf16.msra.mxu0 %v6968_v28  ;;  %6778 = vmatprep.mubr.msk.bf16.mxu0 %vm7105_vm6, %v7104_v34 }
0x1ab6   : > { %6774 = vmatprep.subr.bf16.mxu0 %v7104_v34 }
0x1ab9   : > { %6775 = vmatpush3.bf16.msra.mxu0 %v6969_v39 }
0x1aba   : > { %6776 = vmatprep.subr.bf16.mxu0 %v7104_v34 }
0x1abd   : > { %6777 = vmatpush3.bf16.msra.mxu0 %v6970_v3  ;;  %v4591_v6 = vpop.f32.mrb[100].mxu1 }
0x1abe   : > { %6788 = vmatprep.subr.bf16.mxu0 %v7104_v34  ;;  %v4592_v42 = vadd.f32 %v6121_v41, %v4591_v6  ;;  %v6770_v43 = vpop.f32.mrb[101].mxu1 }
0x1abf   : > { %v4594_v44 = vpop.f32.mrb[102].mxu1 }
0x1ac0   : > { %6779 = vmatmul.mubr.msk.bf16.vlgmr.msra.gmra.mrb[104].mxu0 %vm3623_vm9, %v7742_v62  ;;  %v6228_v45 = vpack.c.bf16 %v4592_v42, %v4592_v42  ;;  %v4595_v47 = vadd.f32 %v6121_v41, %v4594_v44  ;;  %v6771_v48 = vpop.f32.mrb[103].mxu1 }
0x1ac1   : > { %6790 = vmatprep.mubr.msk.bf16.mxu0 %vm7105_vm6, %v7104_v34 }
0x1ac2   : > { %v4687_v50 = vsel %vm1757_vm7, %v6228_v45, 0  ;;  %v6229_v51 = vpack.c.bf16 %v4595_v47, %v4595_v47 }
0x1ac3   : > { %6783 = vmatpush3.bf16.xpose.msra.mxu1 %v4687_v50 }
0x1ac4   : > { %v4733_v8 = vsel %vm1757_vm7, %v6229_v51, 0  ;;  %6794 = vmatprep.subr.bf16.mxu1 %v7104_v34  ;;  %v3532_v51 = vld [vmem:[%s8225_s24 + $0x8] sm:$0xf] }
0x1ac6   : > { %6789 = vmatpush3.bf16.xpose.msra.mxu0 %v4733_v8 }
0x1ac7   : > { %6800 = vmatprep.subr.bf16.mxu0 %v7104_v34 }
0x1b7f   : > { %v4420_v53 = vpop.f32.mrb[96].mxu0 }
0x1b80   : > { %v7925_v54 = vadd.f32 %v4467_v27, %v4420_v53  ;;  %v6746_v58 = vpop.f32.mrb[97].mxu0 }
0x1b81   : > { %v4423_v57 = vpop.f32.mrb[98].mxu0 }
0x1b82   : > { %v7927_v59 = vadd.f32 %v4470_v32, %v4423_v57  ;;  %v6747_v60 = vpop.f32.mrb[99].mxu0 }
0x1b83   : > { %v4896_v60 = vsel %vm1877_vm8, %v3532_v51, 0 }
0x1b87   : > { %v4526_v56 = vpop.f32.mrb[100].mxu0 }
0x1b88   : > { %v4527_v63 = vadd.f32 %v6117_v61, %v4526_v56  ;;  %v6760_v31 = vpop.f32.mrb[101].mxu0 }
0x1b89   : > { %v4529_v35 = vpop.f32.mrb[102].mxu0 }
0x1b8a   : > { %v4663_v36 = vmul.f32 0.35355338, %v4527_v63  ;;  %v4530_v0 = vadd.f32 %v6117_v61, %v4529_v35  ;;  %v6761_v1 = vpop.f32.mrb[103].mxu0  ;;  %v6971_v61 = vld [vmem:[%s7324_s4 + $0x30] sm:$0xff]   ;;  %v6972_v63 = vld [vmem:[%s7324_s4 + $0x38] sm:$0xff]  }
0x1b8b   : > { %v6973_v1 = vld [vmem:[%s7345_s9 + $0x48] sm:$0xff]  }
0x1b8c   : > { %v6226_v2 = vpack.c.bf16 %v4663_v36, %v4663_v36  ;;  %v4664_v4 = vmul.f32 0.35355338, %v4530_v0 }
0x1b8e   : > { %v6227_v5 = vpack.c.bf16 %v4664_v4, %v4664_v4  ;;  %6785 = vmatmul.mubr.msk.bf16.vlgmr.msra.gmra.mrb[104].mxu1 %vm1757_vm7, %v6226_v2 }
0x1b8f   : > { %6796 = vmatprep.mubr.msk.bf16.mxu1 %vm7105_vm6, %v7104_v34 }
0x1b90   : > { %6791 = vmatmul.mubr.msk.bf16.vlgmr.msra.gmra.mrb[108].mxu0 %vm1757_vm7, %v6227_v5 }
0x1b91   : > { %6802 = vmatprep.mubr.msk.bf16.mxu0 %vm7105_vm6, %v7104_v34 }
0x1b93   : > { %v4656_v10 = vpop.f32.mrb[104].mxu0 }
0x1b94   : > { %v4657_v11 = vadd.f32 %v6126_v7, %v4656_v10  ;;  %v6780_v12 = vpop.f32.mrb[105].mxu0 }
0x1b95   : > { %v4659_v14 = vpop.f32.mrb[106].mxu0  ;;  %v6975_v12 = vld [vmem:[%s7345_s9 + $0x58] sm:$0xff]  }
0x1b96   : > { %v6230_v15 = vpack.c.bf16 %v4657_v11, %v4657_v11  ;;  %v4660_v16 = vadd.f32 %v6126_v7, %v4659_v14  ;;  %v6781_v52 = vpop.f32.mrb[107].mxu0  ;;  %v6974_v11 = vld [vmem:[%s7345_s9 + $0x50] sm:$0xff]  }
0x1b97   : > { %v6976_v52 = vld [vmem:[%s8221_s13 + $0x48] sm:$0xff]  }
0x1b98   : > { %v4803_v9 = vsel %vm1877_vm8, %v6230_v15, 0  ;;  %v6231_v55 = vpack.c.bf16 %v4660_v16, %v4660_v16 }
0x1b99   : > { %6795 = vmatpush3.bf16.msra.mxu1 %v4803_v9  ;;  %v6977_v9 = vld [vmem:[%s8221_s13 + $0x50] sm:$0xff]  }
0x1b9a   : > { %v4849_v17 = vsel %vm1877_vm8, %v6231_v55, 0  ;;  %6806 = vmatprep.subr.bf16.mxu1 %v7104_v34  ;;  %v6978_v55 = vld [vmem:[%s8221_s13 + $0x58] sm:$0xff]  }
0x1b9b   : > { %6801 = vmatpush3.bf16.msra.mxu0 %v4849_v17 }
0x1b9c   : > { %6812 = vmatprep.subr.bf16.mxu0 %v7104_v34 }
0x1c61   : > { %v4723_v18 = vpop.f32.mrb[104].mxu1 }
0x1c62   : > { %v6786_v19 = vpop.f32.mrb[105].mxu1  ;;  %v4775_v20 = vsel %vm1757_vm7, %v4723_v18, -inf }
0x1c63   : > { %4776 = vmax.xlane.f32.xlu0 %v4775_v20  ;;  %v4726_v21 = vpop.f32.mrb[106].mxu1  ;;  %v4769_v22 = vpop.f32.mrb[108].mxu0 }
0x1c64   : > { %v6787_v23 = vpop.f32.mrb[107].mxu1  ;;  %v6792_v25 = vpop.f32.mrb[109].mxu0  ;;  %v4778_v27 = vsel %vm1757_vm7, %v4769_v22, -inf }
0x1c65   : > { %4779 = vmax.xlane.f32.xlu1 %v4778_v27  ;;  %v4772_v28 = vpop.f32.mrb[110].mxu0  ;;  %v6146_v23 = vld [vmem:[%s8222_s5 + $0x3] ss:$0 sm:$0xff] }
0x1c66   : > { %v6793_v29 = vpop.f32.mrb[111].mxu0  ;;  %v6142_v25 = vld [vmem:[%s8223_s7 + $0x3] ss:$0 sm:$0xff] }
0x1cf0   : > { %v4777_v32 = vpop.xlane.xlu0 %4776 }
0x1cf1   : > { %v4781_v33 = vsub.f32 %v4723_v18, %v4777_v32 }
0x1cf2   : > { %v4780_v39 = vpop.xlane.xlu1 %4779 }
0x1cf3   : > { %v4783_v3 = vmul.f32 1.442695, %v4781_v33  ;;  %v4782_v41 = vsub.f32 %v4769_v22, %v4780_v39 }
0x1cf5   : > { %7041 = vpow2.f32 %v4783_v3  ;;  %v4785_v6 = vmul.f32 1.442695, %v4782_v41 }
0x1cf7   : > { %7043 = vpow2.f32 %v4785_v6 }
0x1cff   : > { %v7042_v42 = vpop.eup %7041 }
0x1d00   : > { %v4787_v43 = vsel %vm1757_vm7, %v7042_v42, 0.0 }
0x1d01   : > { %v7044_v44 = vpop.eup %7043  ;;  %4788 = vadd.xlane.f32.xlu0 %v4787_v43 }
0x1d02   : > { %v4790_v45 = vsel %vm1757_vm7, %v7044_v44, 0.0 }
0x1d03   : > { %4791 = vadd.xlane.f32.xlu1 %v4790_v45 }
0x1d8e   : > { %v4789_v47 = vpop.xlane.xlu0 %4788 }
0x1d8f   : > { %7045 = vrcp.f32 %v4789_v47  ;;  %v6151_v47 = vld [vmem:[%s8224_s26 + $0x3] ss:$0 sm:$0xff] }
0x1d90   : > { %v4792_v48 = vpop.xlane.xlu1 %4791 }
0x1d91   : > { %7047 = vrcp.f32 %v4792_v48 }
0x1d99   : > { %v7046_v50 = vpop.eup %7045 }
0x1d9a   : > { %v4795_v8 = vmul.f32 %v7046_v50, %v7042_v42 }
0x1d9b   : > { %v7048_v53 = vpop.eup %7047 }
0x1d9c   : > { %v4796_v58 = vmul.f32 %v7048_v53, %v7044_v44  ;;  %v4797_v57 = vpack.c.bf16 %v4795_v8, %v4795_v8 }
0x1d9e   : > { %6797 = vmatmul.mubr.msk.bf16.vlgmr.msra.gmra.mrb[108].mxu1 %vm1757_vm7, %v4797_v57  ;;  %v4798_v56 = vpack.c.bf16 %v4796_v58, %v4796_v58 }
0x1d9f   : > { %6807 = vmatpush3.bf16.msra.mxu1 %v4896_v60  ;;  %6808 = vmatprep.mubr.msk.bf16.mxu1 %vm7105_vm6, %v7104_v34 }
0x1da0   : > { %6803 = vmatmul.mubr.msk.bf16.vlgmr.msra.gmra.mrb[112].mxu0 %vm1757_vm7, %v4798_v56  ;;  %6820 = vmatprep.subr.bf16.mxu1 %v7104_v34 }
0x1da1   : > { %6813 = vmatpush3.bf16.msra.mxu0 %v6971_v61  ;;  %6816 = vmatprep.mubr.msk.bf16.mxu0 %vm7105_vm6, %v7104_v34 }
0x1da2   : > { %6814 = vmatprep.subr.bf16.mxu0 %v7104_v34 }
0x1da5   : > { %6815 = vmatpush3.bf16.msra.mxu0 %v6972_v63 }
0x1da6   : > { %6830 = vmatprep.subr.bf16.mxu0 %v7104_v34 }
0x1da8   : > { %6817 = vmatmul.mubr.msk.bf16.vlgmr.msra.gmra.mrb[116].mxu0 %vm1443_vm4, %v7774_v26 }
0x1da9   : > { %6836 = vmatprep.mubr.msk.bf16.mxu0 %vm7105_vm6, %v7104_v34  ;;  %6831 = vmatpush3.bf16.msra.mxu0 %v6976_v52 }
0x1daa   : > { %6832 = vmatprep.subr.bf16.mxu0 %v7104_v34 }
0x1dad   : > { %6833 = vmatpush3.bf16.msra.mxu0 %v6977_v9 }
0x1dae   : > { %6834 = vmatprep.subr.bf16.mxu0 %v7104_v34 }
0x1db1   : > { %6835 = vmatpush3.bf16.msra.mxu0 %v6978_v55 }
0x1db2   : > { %6846 = vmatprep.subr.bf16.mxu0 %v7104_v34 }
0x1db4   : > { %6837 = vmatmul.mubr.msk.bf16.vlgmr.msra.gmra.mrb[120].mxu0 %vm3623_vm9, %v7742_v62 }
0x1db5   : > { %6848 = vmatprep.mubr.msk.bf16.mxu0 %vm7105_vm6, %v7104_v34 }
0x1e71   : > { %v4839_v31 = vpop.f32.mrb[108].mxu1 }
0x1e72   : > { %v6798_v35 = vpop.f32.mrb[109].mxu1 }
0x1e73   : > { %v4842_v36 = vpop.f32.mrb[110].mxu1  ;;  %v4885_v0 = vpop.f32.mrb[112].mxu0 }
0x1e74   : > { %v4891_v2 = vpack.c.bf16 %v4885_v0, %v4839_v31  ;;  %v6799_v4 = vpop.f32.mrb[111].mxu1  ;;  %v6804_v5 = vpop.f32.mrb[113].mxu0 }
0x1e75   : > { %v4888_v7 = vpop.f32.mrb[114].mxu0 }
0x1e76   : > { %v6805_v10 = vpop.f32.mrb[115].mxu0  ;;  %6809 = vmatmul.mubr.msk.bf16.vlgmr.msra.gmra.mrb[112].mxu1 %vm1757_vm7, %v4891_v2 }
0x1e77   : > { %6821 = vmatpush3.bf16.msra.mxu1 %v6973_v1  ;;  %6826 = vmatprep.mubr.msk.bf16.mxu1 %vm7105_vm6, %v7104_v34 }
0x1e78   : > { %6822 = vmatprep.subr.bf16.mxu1 %v7104_v34 }
0x1e7b   : > { %6823 = vmatpush3.bf16.msra.mxu1 %v6974_v11  ;;  %v4993_v26 = vpop.f32.mrb[116].mxu0 }
0x1e7c   : > { %v6818_v14 = vpop.f32.mrb[117].mxu0  ;;  %6824 = vmatprep.subr.bf16.mxu1 %v7104_v34 }
0x1e7d   : > { %v4996_v15 = vpop.f32.mrb[118].mxu0 }
0x1e7e   : > { %v6819_v16 = vpop.f32.mrb[119].mxu0  ;;  %v4997_v41 = vadd.f32 %v6142_v25, %v4996_v15 }
0x1e7f   : > { %6825 = vmatpush3.bf16.msra.mxu1 %v6975_v12 }
0x1e80   : > { %6840 = vmatprep.subr.bf16.mxu1 %v7104_v34  ;;  %v5131_v43 = vmul.f32 0.35355338, %v4997_v41 }
0x1e82   : > { %6827 = vmatmul.mubr.msk.bf16.vlgmr.msra.gmra.mrb[116].mxu1 %vm3623_vm9, %v7742_v62  ;;  %v4994_v62 = vadd.f32 %v6142_v25, %v4993_v26  ;;  %v6233_v45 = vpack.c.bf16 %v5131_v43, %v5131_v43  ;;  %v6167_v43 = vld [vmem:[%s1163_s10] ss:$0 sm:$0xff] }
0x1e83   : > { %6842 = vmatprep.mubr.msk.bf16.mxu1 %vm7105_vm6, %v7104_v34 }
0x1e84   : > { %v5130_v42 = vmul.f32 0.35355338, %v4994_v62 }
0x1e86   : > { %v6232_v44 = vpack.c.bf16 %v5130_v42, %v5130_v42 }
0x1e87   : > { %v5123_v48 = vpop.f32.mrb[120].mxu0 }
0x1e88   : > { %v5124_v50 = vadd.f32 %v6151_v47, %v5123_v48  ;;  %v6838_v51 = vpop.f32.mrb[121].mxu0 }
0x1e89   : > { %v5126_v8 = vpop.f32.mrb[122].mxu0 }
0x1e8a   : > { %v6236_v53 = vpack.c.bf16 %v5124_v50, %v5124_v50  ;;  %v5127_v58 = vadd.f32 %v6151_v47, %v5126_v8  ;;  %v6839_v57 = vpop.f32.mrb[123].mxu0 }
0x1e8c   : > { %v5270_v60 = vsel %vm1877_vm8, %v6236_v53, 0  ;;  %v6237_v61 = vpack.c.bf16 %v5127_v58, %v5127_v58 }
0x1e8e   : > { %v5316_v56 = vsel %vm1877_vm8, %v6237_v61, 0 }
0x1f49   : > { %v4932_v17 = vpop.f32.mrb[112].mxu1 }
0x1f4a   : > { %v7986_v18 = vadd.f32 %v4932_v17, %v7925_v54  ;;  %v6810_v19 = vpop.f32.mrb[113].mxu1 }
0x1f4b   : > { %v4935_v20 = vpop.f32.mrb[114].mxu1 }
0x1f4c   : > { %v7989_v21 = vadd.f32 %v4935_v20, %v7927_v59  ;;  %v6811_v22 = vpop.f32.mrb[115].mxu1 }
0x1f4d   : > { %v3533_v22 = vld [vmem:[%s8225_s24 + $0xc] sm:$0xf] }
0x1f55   : > { %v5058_v27 = vpop.f32.mrb[116].mxu1 }
0x1f56   : > { %v5059_v28 = vadd.f32 %v6146_v23, %v5058_v27  ;;  %v6828_v29 = vpop.f32.mrb[117].mxu1 }
0x1f57   : > { %v5061_v32 = vpop.f32.mrb[118].mxu1  ;;  %v5363_v29 = vsel %vm1877_vm8, %v3533_v22, 0 }
0x1f58   : > { %v6234_v33 = vpack.c.bf16 %v5059_v28, %v5059_v28  ;;  %v5062_v39 = vadd.f32 %v6146_v23, %v5061_v32  ;;  %v6829_v3 = vpop.f32.mrb[119].mxu1 }
0x1f5a   : > { %v5154_v54 = vsel %vm1757_vm7, %v6234_v33, 0  ;;  %v6235_v6 = vpack.c.bf16 %v5062_v39, %v5062_v39 }
0x1f5b   : > { %6841 = vmatpush3.bf16.xpose.msra.mxu1 %v5154_v54 }
0x1f5c   : > { %v5200_v59 = vsel %vm1757_vm7, %v6235_v6, 0  ;;  %6852 = vmatprep.subr.bf16.mxu1 %v7104_v34 }
0x1f5d   : > { %6847 = vmatpush3.bf16.xpose.msra.mxu0 %v5200_v59 }
0x1f5e   : > { %6858 = vmatprep.subr.bf16.mxu0 %v7104_v34 }
0x1f62   : > { %6843 = vmatmul.mubr.msk.bf16.vlgmr.msra.gmra.mrb[120].mxu1 %vm1757_vm7, %v6232_v44 }
0x1f63   : > { %6854 = vmatprep.mubr.msk.bf16.mxu1 %vm7105_vm6, %v7104_v34  ;;  %6853 = vmatpush3.bf16.msra.mxu1 %v5270_v60 }
0x1f64   : > { %6849 = vmatmul.mubr.msk.bf16.vlgmr.msra.gmra.mrb[124].mxu0 %vm1757_vm7, %v6233_v45  ;;  %6864 = vmatprep.subr.bf16.mxu1 %v7104_v34 }
0x1f65   : > { %6860 = vmatprep.mubr.msk.bf16.mxu0 %vm7105_vm6, %v7104_v34  ;;  %6859 = vmatpush3.bf16.msra.mxu0 %v5316_v56 }
0x1f66   : > { %6870 = vmatprep.subr.bf16.mxu0 %v7104_v34 }
0x2035   : > { %v5190_v63 = vpop.f32.mrb[120].mxu1 }
0x2036   : > { %v6844_v31 = vpop.f32.mrb[121].mxu1  ;;  %v5242_v35 = vsel %vm1757_vm7, %v5190_v63, -inf }
0x2037   : > { %5243 = vmax.xlane.f32.xlu0 %v5242_v35  ;;  %v5193_v36 = vpop.f32.mrb[122].mxu1  ;;  %v5236_v0 = vpop.f32.mrb[124].mxu0 }
0x2038   : > { %v6845_v1 = vpop.f32.mrb[123].mxu1  ;;  %v6850_v2 = vpop.f32.mrb[125].mxu0  ;;  %v5245_v4 = vsel %vm1757_vm7, %v5236_v0, -inf }
0x2039   : > { %5246 = vmax.xlane.f32.xlu1 %v5245_v4  ;;  %v5239_v5 = vpop.f32.mrb[126].mxu0 }
0x203a   : > { %v6851_v7 = vpop.f32.mrb[127].mxu0 }
0x20c4   : > { %v5244_v10 = vpop.xlane.xlu0 %5243 }
0x20c5   : > { %v5248_v11 = vsub.f32 %v5190_v63, %v5244_v10 }
0x20c6   : > { %v5247_v26 = vpop.xlane.xlu1 %5246 }
0x20c7   : > { %v5250_v12 = vmul.f32 1.442695, %v5248_v11  ;;  %v5249_v14 = vsub.f32 %v5236_v0, %v5247_v26  ;;  %v6980_v11 = vld [vmem:[%s7364_s6 + $0x8] sm:$0xff]   ;;  %v6981_v26 = vld [vmem:[%s7378_s3] sm:$0xff]  }
0x20c9   : > { %7049 = vpow2.f32 %v5250_v12  ;;  %v5252_v15 = vmul.f32 1.442695, %v5249_v14  ;;  %v6982_v12 = vld [vmem:[%s7378_s3 + $0x8] sm:$0xff]  }
0x20cb   : > { %7051 = vpow2.f32 %v5252_v15 }
0x20d3   : > { %v7050_v16 = vpop.eup %7049 }
0x20d4   : > { %v5254_v52 = vsel %vm1757_vm7, %v7050_v16, 0.0 }
0x20d5   : > { %v7052_v9 = vpop.eup %7051  ;;  %5255 = vadd.xlane.f32.xlu0 %v5254_v52 }
0x20d6   : > { %v5257_v55 = vsel %vm1757_vm7, %v7052_v9, 0.0 }
0x20d7   : > { %5258 = vadd.xlane.f32.xlu1 %v5257_v55 }
0x2162   : > { %v5256_v17 = vpop.xlane.xlu0 %5255 }
0x2163   : > { %7053 = vrcp.f32 %v5256_v17 }
0x2164   : > { %v5259_v19 = vpop.xlane.xlu1 %5258 }
0x2165   : > { %7055 = vrcp.f32 %v5259_v19 }
0x216d   : > { %v7054_v20 = vpop.eup %7053 }
0x216e   : > { %v5262_v23 = vmul.f32 %v7054_v20, %v7050_v16 }
0x216f   : > { %v7056_v25 = vpop.eup %7055 }
0x2170   : > { %v5263_v27 = vmul.f32 %v7056_v25, %v7052_v9  ;;  %v5264_v28 = vpack.c.bf16 %v5262_v23, %v5262_v23 }
0x2172   : > { %6855 = vmatmul.mubr.msk.bf16.vlgmr.msra.gmra.mrb[124].mxu1 %vm1757_vm7, %v5264_v28  ;;  %v5265_v32 = vpack.c.bf16 %v5263_v27, %v5263_v27 }
0x2173   : > { %6865 = vmatpush3.bf16.msra.mxu1 %v5363_v29  ;;  %6866 = vmatprep.mubr.msk.bf16.mxu1 %vm7105_vm6, %v7104_v34 }
0x2174   : > { %6861 = vmatmul.mubr.msk.bf16.vlgmr.msra.gmra.mrb[128].mxu0 %vm1757_vm7, %v5265_v32  ;;  %6878 = vmatprep.subr.bf16.mxu1 %v7104_v34 }
0x2175   : > { %6874 = vmatprep.mubr.msk.bf16.mxu0 %vm7105_vm6, %v7104_v34 }
0x2245   : > { %v5306_v62 = vpop.f32.mrb[124].mxu1 }
0x2246   : > { %v6856_v33 = vpop.f32.mrb[125].mxu1 }
0x2247   : > { %v5309_v39 = vpop.f32.mrb[126].mxu1  ;;  %v5352_v3 = vpop.f32.mrb[128].mxu0 }
0x2248   : > { %v5358_v41 = vpack.c.bf16 %v5352_v3, %v5306_v62  ;;  %v6857_v54 = vpop.f32.mrb[127].mxu1  ;;  %v6862_v6 = vpop.f32.mrb[129].mxu0  ;;  %v6983_v39 = vld [vmem:[%s7378_s3 + $0x10] sm:$0xff]   ;;  %v6984_v3 = vld [vmem:[%s7378_s3 + $0x18] sm:$0xff]  }
0x2249   : > { %v5355_v42 = vpop.f32.mrb[130].mxu0 }
0x224a   : > { %v6863_v59 = vpop.f32.mrb[131].mxu0  ;;  %6867 = vmatmul.mubr.msk.bf16.vlgmr.msra.gmra.mrb[128].mxu1 %vm1757_vm7, %v5358_v41  ;;  %v6168_v41 = vld [vmem:[%s1171_s27] ss:$0 sm:$0xff] }
0x224b   : > { %6886 = vmatprep.mubr.msk.bf16.mxu1 %vm7105_vm6, %v7104_v34  ;;  %6879 = vmatpush3.bf16.msra.mxu1 %v6981_v26 }
0x224c   : > { %6880 = vmatprep.subr.bf16.mxu1 %v7104_v34 }
0x224f   : > { %6881 = vmatpush3.bf16.msra.mxu1 %v6982_v12 }
0x2250   : > { %6882 = vmatprep.subr.bf16.mxu1 %v7104_v34 }
0x2253   : > { %6883 = vmatpush3.bf16.msra.mxu1 %v6983_v39 }
0x2254   : > { %6884 = vmatprep.subr.bf16.mxu1 %v7104_v34 }
0x2257   : > { %6885 = vmatpush3.bf16.msra.mxu1 %v6984_v3 }
0x231d   : > { %v5399_v44 = vpop.f32.mrb[128].mxu1 }
0x231e   : > { %v5406_v45 = vadd.f32 %v5399_v44, %v7986_v18  ;;  %v6868_v47 = vpop.f32.mrb[129].mxu1 }
0x231f   : > { %v5402_v48 = vpop.f32.mrb[130].mxu1 }
0x2320   : > { %v5414_v50 = vadd.f32 %v6167_v43, %v5406_v45  ;;  %v5407_v51 = vadd.f32 %v5402_v48, %v7989_v21  ;;  %v6869_v8 = vpop.f32.mrb[131].mxu1 }
0x2322   : > { %v5415_v53 = vadd.f32 %v6167_v43, %v5407_v51  ;;  %5418 = vrot.lane.b32.xlu0 %v5414_v50, %s7109_s1  ;;  %v7062_v50 = vld [vmem:[%s7288_s23] sm:$0x7]  ;;  %s7110_s23 = smov [#allocation2]  }
0x2323   : > { %s5655_s19 = sshll.u32 %s7110_s23, 4  ;;  %s5656_s19 = int_to_ptr.vmem [resolvable:$true] %s5655_s19 }
0x2324   : > { %5420 = vrot.lane.b32.xlu1 %v5415_v53, %s7109_s1  ;;  %s7063_s8 = scalar_lea.vmem %s5656_s19, 256  ;;  %p7070_p9 = scmp.lt.s32.totalorder %s5656_s19, %s5656_s19 }
0x2325   : > { %p7064_p6 = scmp.ne.s32.totalorder %s5656_s19, %s7063_s8  ;;  %p7071_p10 = scmp.lt.s32.totalorder %s7063_s8, %s7063_s8 }
0x2327   : > { %p7065_p7 = pnand %p7064_p6, %p6897_p5  ;;  %p7072_p11 = por %p7071_p10, %p7070_p9 }
0x2329   : > { %p7066_p8 = pneg %p7065_p7 }
0x232b   : > { %p7073_p12 = pnand %p7072_p11, %p7066_p8 }
0x2394   : > { %v5419_v58 = vpop.permute.xlu0 %5418 }
0x2395   : > { %v5424_v57 = vmul.f32 %v5419_v58, %v7760_v49 }
0x2396   : > { %v5421_v60 = vpop.permute.xlu1 %5420 }
0x2397   : > { %5428 = vrot.lane.b32.xlu1 %v5424_v57, %s7107_s2  ;;  %v5425_v61 = vmul.f32 %v5421_v60, %v7763_v30  ;;  %v6172_v60 = vld [vmem:[%s1179_s15] ss:$0 sm:$0xff] }
0x239b   : > { %5430 = vrot.lane.b32.xlu1 %v5425_v61, %s7107_s2 }
0x2409   : > { %v5429_v18 = vpop.permute.xlu1 %5428 }
0x240a   : > { %v5434_v56 = vadd.f32 %v5429_v18, %v7766_v24 }
0x240c   : > { %v5436_v21 = vsel %vm1443_vm4, %v5434_v56, 0.0 }
0x240d   : > { %5437 = vadd.xlane.f32.xlu0 %v5436_v21  ;;  %v5431_v63 = vpop.permute.xlu1 %5430 }
0x240e   : > { %v5435_v31 = vadd.f32 %v5431_v63, %v7769_v38 }
0x2410   : > { %v5439_v35 = vsel %vm1443_vm4, %v5435_v31, 0.0 }
0x2411   : > { %5440 = vadd.xlane.f32.xlu1 %v5439_v35 }
0x2422   : > { %5464 = vrot.lane.b32.xlu1 %v7763_v30, %s7108_s20 }
0x2426   : > { %5470 = vrot.lane.b32.xlu1 %v7760_v49, %s7109_s1 }
0x242a   : > { %5472 = vrot.lane.b32.xlu1 %v7763_v30, %s7109_s1  ;;  %v6979_v30 = vld [vmem:[%s7364_s6] sm:$0xff]  }
0x242b   : > { %6871 = vmatpush3.bf16.msra.mxu0 %v6979_v30 }
0x242c   : > { %6872 = vmatprep.subr.bf16.mxu0 %v7104_v34  ;;  %v1268_v34 = vsub.s32 2, %v7426_v37 }
0x242e   : > { %v1269_v51 = vrot.slane %v7062_v50, %v1268_v34 }
0x242f   : > { %6873 = vmatpush3.bf16.msra.mxu0 %v6980_v11 }
0x2430   : > { %v1369_v8 = vadd.f32 %v7483_v13, %v1269_v51 }
0x2432   : > { %v1427_v53 = vrot.slane %v1369_v8, %v7436_v46 }
0x2434   : > { %v1428_v58 = vcombine.high %v1427_v53, %v1427_v53  ;;  %v1435_v57 = vrot.slane %v1427_v53, %v7436_v46 }
0x2436   : > { %v1442_v61 = vrot.slane %v1428_v58, %v7436_v46  ;;  %v5636_v37 = vrot.slane %v1435_v57, %v7429_v40 }
0x2438   : > { %v5640_v35 = vrot.slane %v1442_v61, %v7429_v40 }
0x249a   : > { %v5438_v24 = vpop.xlane.xlu0 %5437 }
0x249b   : > { %v5442_v36 = vmul.f32 0.03125, %v5438_v24 }
0x249d   : > { %v5444_v0 = vsub.f32 %v5434_v56, %v5442_v36 }
0x249e   : > { %v5441_v1 = vpop.xlane.xlu1 %5440 }
0x249f   : > { %v5443_v38 = vmul.f32 0.03125, %v5441_v1  ;;  %v5446_v2 = vmul.f32 %v5444_v0, %v5444_v0 }
0x24a1   : > { %v5445_v4 = vsub.f32 %v5435_v31, %v5443_v38  ;;  %v5448_v5 = vsel %vm1443_vm4, %v5446_v2, 0.0 }
0x24a2   : > { %5449 = vadd.xlane.f32.xlu0 %v5448_v5  ;;  %v5465_v55 = vpop.permute.xlu1 %5464 }
0x24a3   : > { %v5447_v7 = vmul.f32 %v5445_v4, %v5445_v4 }
0x24a5   : > { %v5451_v10 = vsel %vm1443_vm4, %v5447_v7, 0.0 }
0x24a6   : > { %5452 = vadd.xlane.f32.xlu0 %v5451_v10  ;;  %v5471_v20 = vpop.permute.xlu1 %5470 }
0x24aa   : > { %v5473_v29 = vpop.permute.xlu1 %5472 }
0x24bc   : > { %5462 = vrot.lane.b32.xlu0 %v7760_v49, %s7108_s20 }
0x252f   : > { %v5450_v14 = vpop.xlane.xlu0 %5449 }
0x2530   : > { %v5454_v15 = vmul.f32 0.03125, %v5450_v14 }
0x2532   : > { %v5456_v16 = vadd.f32 1e-05, %v5454_v15 }
0x2533   : > { %v5453_v52 = vpop.xlane.xlu0 %5452 }
0x2534   : > { %7057 = vrsqrt.f32 %v5456_v16  ;;  %v5455_v49 = vmul.f32 0.03125, %v5453_v52 }
0x2536   : > { %v5457_v9 = vadd.f32 1e-05, %v5455_v49 }
0x2537   : > { %v5463_v23 = vpop.permute.xlu0 %5462 }
0x2538   : > { %7059 = vrsqrt.f32 %v5457_v9 }
0x253e   : > { %v7058_v17 = vpop.eup %7057 }
0x253f   : > { %v5460_v19 = vmul.f32 %v7058_v17, %v5444_v0 }
0x2541   : > { %v5468_v27 = vmul.f32 %v5463_v23, %v5460_v19 }
0x2542   : > { %v7060_v22 = vpop.eup %7059 }
0x2543   : > { %v5461_v25 = vmul.f32 %v7060_v22, %v5445_v4  ;;  %v5476_v32 = vadd.f32 %v5471_v20, %v5468_v27 }
0x2545   : > { %v5469_v28 = vmul.f32 %v5465_v55, %v5461_v25 }
0x2547   : > { %v5477_v62 = vadd.f32 %v5473_v29, %v5469_v28 }
0x2549   : > { %v5478_v33 = vpack.c.bf16 %v5477_v62, %v5476_v32 }
0x254b   : > { %6875 = vmatmul.mubr.msk.bf16.vlgmr.msra.gmra.mrb[132].mxu0 %vm1443_vm4, %v5478_v33 }
0x261e   : > { %v5539_v54 = vpop.f32.mrb[132].mxu0 }
0x261f   : > { %v5540_v6 = vadd.f32 %v6168_v41, %v5539_v54  ;;  %v6876_v42 = vpop.f32.mrb[133].mxu0 }
0x2620   : > { %v5542_v59 = vpop.f32.mrb[134].mxu0 }
0x2621   : > { %v5543_v43 = vadd.f32 %v6168_v41, %v5542_v59  ;;  %v6877_v44 = vpop.f32.mrb[135].mxu0  ;;  %v5546_v45 = vmax.f32 %v5540_v6, 0.0 }
0x2623   : > { %v5547_v47 = vmax.f32 %v5543_v43, 0.0 }
0x2625   : > { %v5548_v48 = vpack.c.bf16 %v5547_v47, %v5546_v45 }
0x2627   : > { %6887 = vmatmul.mubr.msk.bf16.vlgmr.msra.gmra.mrb[132].mxu1 %vm5588_vm10, %v5548_v48 }
0x26fa   : > { %v5626_v18 = vpop.f32.mrb[132].mxu1 }
0x26fb   : > { %v5627_v56 = vadd.f32 %v6172_v60, %v5626_v18  ;;  %v6888_v21 = vpop.f32.mrb[133].mxu1 }
0x26fc   : > { %v5629_v63 = vpop.f32.mrb[134].mxu1 }
0x26fd   : > { %v5643_v13 = vmul.f32 %v5636_v37, %v5627_v56  ;;  %v5630_v31 = vadd.f32 %v6172_v60, %v5629_v63  ;;  %v6889_v24 = vpop.f32.mrb[135].mxu1 }
0x26ff   : > { %v5645_v36 = vadd.f32 %v5643_v13, %v5476_v32  ;;  %v5644_v0 = vmul.f32 %v5640_v35, %v5630_v31 }
0x2701   : > { %5647 = vst.msk [vmem:[#allocation2] sm:$0xff] %vm1443_vm4, %v5645_v36  ;;  %v5646_v46 = vadd.f32 %v5644_v0, %v5477_v62 }
0x2703   : > { %5648 = vst.msk [vmem:[#allocation2 + $0x8] sm:$0xff] %vm1443_vm4, %v5646_v46 }
0x2704   : > { %7076 = shalt.err (!%p7073_p12)
}
0x2705   : > { %s8230_s0 = sld [smem:[#allocation42_spill]] }
0x270b   : > { %s7077_s28 = scalar_lea.hbm %s8230_s0, 256 }
0x270c   : > { %p7078_p13 = scmp.ne.s32.totalorder %s8230_s0, %s7077_s28  ;;  %p7083_p2 = scmp.lt.u32.totalorder %s7077_s28, %s8230_s0 }
0x270e   : > { %p7079_p0 = pnand %p7078_p13, %p6897_p5 }
0x2710   : > { %p7080_p1 = pneg %p7079_p0 }
0x2712   : > { %p7085_p3 = pnand %p7083_p2, %p7080_p1 }
0x2714   : > { %7088 = shalt.err (!%p7085_p3)
}
0x2715   : > { %s7111_s22 = smov 128   ;;  %s7112_s21 = smov 8  }
0x2716   : > { %6894 = dma.vmem_to_hbm [thread:$0]  (%p6897_p5), %s5656_s19, 256, %s8230_s0, [#allocation3], %s7111_s22, %s7111_s22, %s7112_s21  }
0x2717   : > { %7094 = dma.done.wait (%p6897_p5), [#allocation3], 256  }
0x2718   : > { %7096 = vsyncadd (%p6897_p5), [#allocation3], 4294967040 }
0x2719 PF: > { %s8231_s7 = sld [smem:[#allocation5_spill]] }
0x271f   : > { %s38_s7 = sadd.s32 1, %s8231_s7  }
0x2720   : > { %p35_p4 = scmp.ge.s32.totalorder %s38_s7, 4  }
0x2722   :  { %37 = sbr.rel (!%p35_p4) target bundleno = 29 (0x1d), region = 222 }
0x2729   :  { %5671 = vsyncpa [#allocation3], 1 }
0x272a   :  { %5673 = vsyncpa [#allocation3 + $0x1], 1 }

</bundles_post_ra>
